<compile_context>
chip_gen: v6e
topology: v6e:2x2x1
jax: 0.10.0
libtpu: 0.0.40
codegen_flags: <defaults>
</compile_context>

<pallas_src>
import jax
import jax.numpy as jnp
from jax.experimental import pallas as pl
from jax.experimental.pallas import tpu as pltpu


K_IN = 4096      # layer-1 input features
TK = 2048        # layer-1 K tile -> 2 reduction steps
N1, N2, N3 = 512, 256, 128
N4_REAL = 40     # true output width
N4_PAD = 128     # lane-dense padded output width


def _mlp_kernel(x_ref, w1_ref, b1_ref, w2_ref, b2_ref,
                w3_ref, b3_ref, w4_ref, b4_ref, o_ref, acc_ref):
    k = pl.program_id(1)

    @pl.when(k == 0)
    def _():
        # Seed accumulator with layer-1 bias (saves a VPU add in the epilogue).
        acc_ref[...] = jnp.broadcast_to(b1_ref[...], acc_ref.shape)

    # Partial layer-1 matmul for this K tile: bf16 inputs, f32 accumulation.
    acc_ref[...] += jnp.dot(
        x_ref[...].astype(jnp.bfloat16), w1_ref[...],
        preferred_element_type=jnp.float32)

    @pl.when(k == pl.num_programs(1) - 1)
    def _():
        # layer-1 ReLU (bias already folded in); dropout = identity at eval
        h = jnp.maximum(acc_ref[...], 0.0)
        # linear2 + ReLU
        h = jnp.dot(h.astype(jnp.bfloat16), w2_ref[...],
                    preferred_element_type=jnp.float32)
        h = jnp.maximum(h + b2_ref[...], 0.0)
        # linear3 + ReLU
        h = jnp.dot(h.astype(jnp.bfloat16), w3_ref[...],
                    preferred_element_type=jnp.float32)
        h = jnp.maximum(h + b3_ref[...], 0.0)
        # linear4 (padded to 128 lanes, no activation)
        h = jnp.dot(h.astype(jnp.bfloat16), w4_ref[...],
                    preferred_element_type=jnp.float32)
        o_ref[...] = (h + b4_ref[...]).astype(o_ref.dtype)


def _pick_batch_block(B):
    """>=2 row blocks when possible (v7x dual-TC), rows a multiple of 8."""
    for tb in (256, 128, 64, 32, 16, 8):
        if B % tb == 0 and B // tb >= 2:
            return tb
    return B


@jax.jit
def neural_network_forward(x, kparams):
    """Fused MLP forward. x: (B, 4096) f32 or bf16; kparams from prepare_params()."""
    B = x.shape[0]
    w1, b1 = kparams["w1"], kparams["b1"]
    w2, b2 = kparams["w2"], kparams["b2"]
    w3, b3 = kparams["w3"], kparams["b3"]
    w4, b4 = kparams["w4"], kparams["b4"]

    tb = _pick_batch_block(B)
    n_b = B // tb
    n_k = K_IN // TK

    const2d = lambda shape: pl.BlockSpec(shape, lambda i, k: (0, 0))

    flops = 2 * B * (K_IN * N1 + N1 * N2 + N2 * N3 + N3 * N4_PAD)
    bytes_accessed = (
        x.size * x.dtype.itemsize
        + sum(v.size * v.dtype.itemsize for v in kparams.values())
        + B * N4_PAD * 4)

    out_padded = pl.pallas_call(
        _mlp_kernel,
        out_shape=jax.ShapeDtypeStruct((B, N4_PAD), jnp.float32),
        grid=(n_b, n_k),
        in_specs=[
            pl.BlockSpec((tb, TK), lambda i, k: (i, k)),   # x: batch x K tiles
            pl.BlockSpec((TK, N1), lambda i, k: (k, 0)),   # w1: stream K tiles
            const2d(b1.shape),
            const2d(w2.shape), const2d(b2.shape),
            const2d(w3.shape), const2d(b3.shape),
            const2d(w4.shape), const2d(b4.shape),
        ],
        out_specs=pl.BlockSpec((tb, N4_PAD), lambda i, k: (i, 0)),
        scratch_shapes=[pltpu.VMEM((tb, N1), jnp.float32)],
        compiler_params=pltpu.CompilerParams(
            dimension_semantics=("parallel", "arbitrary"),
            vmem_limit_bytes=32 << 20,
        ),
        cost_estimate=pl.CostEstimate(
            flops=flops, transcendentals=0, bytes_accessed=bytes_accessed),
    )(x, w1, b1, w2, b2, w3, b3, w4, b4)

    return out_padded[:, :N4_REAL]


def init_params(key):
    """Deterministic f32 params matching nn.Linear(in, out) shapes.

    PyTorch's weight is (out, in); we store the transpose (in, out) so the
    kernel computes x @ W directly.
    """
    sizes = [(K_IN, N1), (N1, N2), (N2, N3), (N3, N4_REAL)]
    params = {}
    for i, (fan_in, fan_out) in enumerate(sizes, start=1):
        key, kw, kb = jax.random.split(key, 3)
        bound = 1.0 / jnp.sqrt(fan_in)
        params[f"w{i}"] = jax.random.uniform(
            kw, (fan_in, fan_out), jnp.float32, -bound, bound)
        params[f"b{i}"] = jax.random.uniform(
            kb, (1, fan_out), jnp.float32, -bound, bound)
    return params


def prepare_params(params):
    """One-time setup: cast weights to bf16, pad layer 4 to 128 lanes."""
    kp = {}
    for i in (1, 2, 3):
        kp[f"w{i}"] = params[f"w{i}"].astype(jnp.bfloat16)
        kp[f"b{i}"] = params[f"b{i}"].astype(jnp.float32)
    w4p = jnp.zeros((N3, N4_PAD), jnp.bfloat16)
    w4p = w4p.at[:, :N4_REAL].set(params["w4"].astype(jnp.bfloat16))
    b4p = jnp.zeros((1, N4_PAD), jnp.float32)
    b4p = b4p.at[:, :N4_REAL].set(params["b4"])
    kp["w4"], kp["b4"] = w4p, b4p
    return kp


def _reference_forward(x, kparams):
    """Plain-JAX reference using the same bf16 weights / f32 accumulation."""
    h = x
    for i in (1, 2, 3):
        h = jnp.dot(h.astype(jnp.bfloat16), kparams[f"w{i}"],
                    preferred_element_type=jnp.float32) + kparams[f"b{i}"]
        h = jnp.maximum(h, 0.0)
    h = jnp.dot(h.astype(jnp.bfloat16), kparams["w4"],
                preferred_element_type=jnp.float32) + kparams["b4"]
    return h[:, :N4_REAL]


if __name__ == "__main__":
    key = jax.random.PRNGKey(0)
    kx, kp = jax.random.split(key)

    B = 8  # small batch (multiple of 8 for f32 sublane tiling)
    x = jax.random.normal(kx, (B, K_IN), jnp.float32)
    params = init_params(kp)
    kparams = prepare_params(params)

    out = neural_network_forward(x, kparams)
    out = jax.block_until_ready(out)

    ref = _reference_forward(x, kparams)
    assert out.shape == (B, N4_REAL)
    assert jnp.allclose(out, ref, atol=2e-3, rtol=2e-3), (
        float(jnp.max(jnp.abs(out - ref))))

    print("KERNEL_OK")
</pallas_src>

<mosaic_0001>
module attributes {stable_mosaic.version = 11 : i64} {
  func.func @_mlp_kernel(%arg0: i32, %arg1: i32, %arg2: memref<8x2048xf32, #tpu.memory_space<vmem>>, %arg3: memref<2048x512xbf16, #tpu.memory_space<vmem>>, %arg4: memref<1x512xf32, #tpu.memory_space<vmem>>, %arg5: memref<512x256xbf16, #tpu.memory_space<vmem>>, %arg6: memref<1x256xf32, #tpu.memory_space<vmem>>, %arg7: memref<256x128xbf16, #tpu.memory_space<vmem>>, %arg8: memref<1x128xf32, #tpu.memory_space<vmem>>, %arg9: memref<128x128xbf16, #tpu.memory_space<vmem>>, %arg10: memref<1x128xf32, #tpu.memory_space<vmem>>, %arg11: memref<8x128xf32, #tpu.memory_space<vmem>>, %arg12: memref<8x512xf32, #tpu.memory_space<vmem>>) attributes {dimension_semantics = [#tpu.dimension_semantics<parallel>, #tpu.dimension_semantics<arbitrary>], iteration_bounds = array<i64: 1, 2>, scalar_prefetch = 0 : i64, scratch_operands = 1 : i64, tpu.core_type = #tpu.core_type<tc>, window_params = [{transform_indices = @transform_0, window_bounds = array<i64: 8, 2048>}, {transform_indices = @transform_1, window_bounds = array<i64: 2048, 512>}, {pipeline_mode = #tpu.pipeline_mode<synchronous>, transform_indices = @transform_2, window_bounds = array<i64: 1, 512>}, {pipeline_mode = #tpu.pipeline_mode<synchronous>, transform_indices = @transform_3, window_bounds = array<i64: 512, 256>}, {pipeline_mode = #tpu.pipeline_mode<synchronous>, transform_indices = @transform_4, window_bounds = array<i64: 1, 256>}, {pipeline_mode = #tpu.pipeline_mode<synchronous>, transform_indices = @transform_5, window_bounds = array<i64: 256, 128>}, {pipeline_mode = #tpu.pipeline_mode<synchronous>, transform_indices = @transform_6, window_bounds = array<i64: 1, 128>}, {pipeline_mode = #tpu.pipeline_mode<synchronous>, transform_indices = @transform_7, window_bounds = array<i64: 128, 128>}, {pipeline_mode = #tpu.pipeline_mode<synchronous>, transform_indices = @transform_8, window_bounds = array<i64: 1, 128>}, {transform_indices = @transform_9, window_bounds = array<i64: 8, 128>}]} {
    %c0_i32 = arith.constant 0 : i32
    %0 = arith.cmpi eq, %arg1, %c0_i32 : i32
    %1 = arith.extui %0 : i1 to i32
    %c0_i32_0 = arith.constant 0 : i32
    %2 = arith.cmpi ne, %1, %c0_i32_0 : i32
    scf.if %2 {
      %c0_9 = arith.constant 0 : index
      %c0_10 = arith.constant 0 : index
      %13 = vector.load %arg4[%c0_9, %c0_10] : memref<1x512xf32, #tpu.memory_space<vmem>>, vector<1x512xf32>
      %14 = vector.shape_cast %13 : vector<1x512xf32> to vector<1x512xf32>
      %15 = vector.broadcast %14 : vector<1x512xf32> to vector<8x512xf32>
      %c0_11 = arith.constant 0 : index
      %c0_12 = arith.constant 0 : index
      %16 = vector.load %arg12[%c0_11, %c0_12] : memref<8x512xf32, #tpu.memory_space<vmem>>, vector<8x512xf32>
      tpu.vector_store %arg12[%c0_11, %c0_12], %15 {strides = array<i32>} : memref<8x512xf32, #tpu.memory_space<vmem>>, vector<8x512xf32>,
    } else {
    }
    %c0 = arith.constant 0 : index
    %c0_1 = arith.constant 0 : index
    %3 = vector.load %arg12[%c0, %c0_1] : memref<8x512xf32, #tpu.memory_space<vmem>>, vector<8x512xf32>
    %c0_2 = arith.constant 0 : index
    %c0_3 = arith.constant 0 : index
    %4 = vector.load %arg2[%c0_2, %c0_3] : memref<8x2048xf32, #tpu.memory_space<vmem>>, vector<8x2048xf32>
    %5 = arith.truncf %4 : vector<8x2048xf32> to vector<8x2048xbf16>
    %c0_4 = arith.constant 0 : index
    %c0_5 = arith.constant 0 : index
    %6 = vector.load %arg3[%c0_4, %c0_5] : memref<2048x512xbf16, #tpu.memory_space<vmem>>, vector<2048x512xbf16>
    %cst = arith.constant dense<0.000000e+00> : vector<8x512xf32>
    %7 = tpu.matmul %5, %6, %cst {dimension_numbers = #tpu.dot_dimension_numbers<[1], [0], [0], [1], [0, 0, 1, 1], [], []>} : vector<8x2048xbf16>, vector<2048x512xbf16>, vector<8x512xf32> -> vector<8x512xf32>
    %8 = arith.addf %3, %7 : vector<8x512xf32>
    %c0_6 = arith.constant 0 : index
    %c0_7 = arith.constant 0 : index
    %9 = vector.load %arg12[%c0_6, %c0_7] : memref<8x512xf32, #tpu.memory_space<vmem>>, vector<8x512xf32>
    tpu.vector_store %arg12[%c0_6, %c0_7], %8 {strides = array<i32>} : memref<8x512xf32, #tpu.memory_space<vmem>>, vector<8x512xf32>,
    %c1_i32 = arith.constant 1 : i32
    %10 = arith.cmpi eq, %arg1, %c1_i32 : i32
    %11 = arith.extui %10 : i1 to i32
    %c0_i32_8 = arith.constant 0 : i32
    %12 = arith.cmpi ne, %11, %c0_i32_8 : i32
    scf.if %12 {
      %c0_9 = arith.constant 0 : index
      %c0_10 = arith.constant 0 : index
      %13 = vector.load %arg12[%c0_9, %c0_10] : memref<8x512xf32, #tpu.memory_space<vmem>>, vector<8x512xf32>
      %cst_11 = arith.constant 0.000000e+00 : f32
      %14 = vector.broadcast %cst_11 : f32 to vector<8x512xf32>
      %15 = arith.maximumf %13, %14 : vector<8x512xf32>
      %16 = arith.truncf %15 : vector<8x512xf32> to vector<8x512xbf16>
      %c0_12 = arith.constant 0 : index
      %c0_13 = arith.constant 0 : index
      %17 = vector.load %arg5[%c0_12, %c0_13] : memref<512x256xbf16, #tpu.memory_space<vmem>>, vector<512x256xbf16>
      %cst_14 = arith.constant dense<0.000000e+00> : vector<8x256xf32>
      %18 = tpu.matmul %16, %17, %cst_14 {dimension_numbers = #tpu.dot_dimension_numbers<[1], [0], [0], [1], [0, 0, 1, 1], [], []>} : vector<8x512xbf16>, vector<512x256xbf16>, vector<8x256xf32> -> vector<8x256xf32>
      %c0_15 = arith.constant 0 : index
      %c0_16 = arith.constant 0 : index
      %19 = vector.load %arg6[%c0_15, %c0_16] : memref<1x256xf32, #tpu.memory_space<vmem>>, vector<1x256xf32>
      %20 = vector.broadcast %19 : vector<1x256xf32> to vector<8x256xf32>
      %21 = arith.addf %18, %20 : vector<8x256xf32>
      %cst_17 = arith.constant 0.000000e+00 : f32
      %22 = vector.broadcast %cst_17 : f32 to vector<8x256xf32>
      %23 = arith.maximumf %21, %22 : vector<8x256xf32>
      %24 = arith.truncf %23 : vector<8x256xf32> to vector<8x256xbf16>
      %c0_18 = arith.constant 0 : index
      %c0_19 = arith.constant 0 : index
      %25 = vector.load %arg7[%c0_18, %c0_19] : memref<256x128xbf16, #tpu.memory_space<vmem>>, vector<256x128xbf16>
      %cst_20 = arith.constant dense<0.000000e+00> : vector<8x128xf32>
      %26 = tpu.matmul %24, %25, %cst_20 {dimension_numbers = #tpu.dot_dimension_numbers<[1], [0], [0], [1], [0, 0, 1, 1], [], []>} : vector<8x256xbf16>, vector<256x128xbf16>, vector<8x128xf32> -> vector<8x128xf32>
      %c0_21 = arith.constant 0 : index
      %c0_22 = arith.constant 0 : index
      %27 = vector.load %arg8[%c0_21, %c0_22] : memref<1x128xf32, #tpu.memory_space<vmem>>, vector<1x128xf32>
      %28 = vector.broadcast %27 : vector<1x128xf32> to vector<8x128xf32>
      %29 = arith.addf %26, %28 : vector<8x128xf32>
      %cst_23 = arith.constant 0.000000e+00 : f32
      %30 = vector.broadcast %cst_23 : f32 to vector<8x128xf32>
      %31 = arith.maximumf %29, %30 : vector<8x128xf32>
      %32 = arith.truncf %31 : vector<8x128xf32> to vector<8x128xbf16>
      %c0_24 = arith.constant 0 : index
      %c0_25 = arith.constant 0 : index
      %33 = vector.load %arg9[%c0_24, %c0_25] : memref<128x128xbf16, #tpu.memory_space<vmem>>, vector<128x128xbf16>
      %cst_26 = arith.constant dense<0.000000e+00> : vector<8x128xf32>
      %34 = tpu.matmul %32, %33, %cst_26 {dimension_numbers = #tpu.dot_dimension_numbers<[1], [0], [0], [1], [0, 0, 1, 1], [], []>} : vector<8x128xbf16>, vector<128x128xbf16>, vector<8x128xf32> -> vector<8x128xf32>
      %c0_27 = arith.constant 0 : index
      %c0_28 = arith.constant 0 : index
      %35 = vector.load %arg10[%c0_27, %c0_28] : memref<1x128xf32, #tpu.memory_space<vmem>>, vector<1x128xf32>
      %36 = vector.broadcast %35 : vector<1x128xf32> to vector<8x128xf32>
      %37 = arith.addf %34, %36 : vector<8x128xf32>
      %c0_29 = arith.constant 0 : index
      %c0_30 = arith.constant 0 : index
      %38 = vector.load %arg11[%c0_29, %c0_30] : memref<8x128xf32, #tpu.memory_space<vmem>>, vector<8x128xf32>
      tpu.vector_store %arg11[%c0_29, %c0_30], %37 {strides = array<i32>} : memref<8x128xf32, #tpu.memory_space<vmem>>, vector<8x128xf32>,
    } else {
    }
    return
  }
  func.func @transform_0(%arg0: i32, %arg1: i32) -> (i32, i32) {
    %c0_i32 = arith.constant 0 : i32
    return %arg0, %arg1 : i32, i32
  }
  func.func @transform_1(%arg0: i32, %arg1: i32) -> (i32, i32) {
    %c0_i32 = arith.constant 0 : i32
    %c0_i32_0 = arith.constant 0 : i32
    return %arg1, %c0_i32 : i32, i32
  }
  func.func @transform_2(%arg0: i32, %arg1: i32) -> (i32, i32) {
    %c0_i32 = arith.constant 0 : i32
    %c0_i32_0 = arith.constant 0 : i32
    %c0_i32_1 = arith.constant 0 : i32
    return %c0_i32, %c0_i32_0 : i32, i32
  }
  func.func @transform_3(%arg0: i32, %arg1: i32) -> (i32, i32) {
    %c0_i32 = arith.constant 0 : i32
    %c0_i32_0 = arith.constant 0 : i32
    %c0_i32_1 = arith.constant 0 : i32
    return %c0_i32, %c0_i32_0 : i32, i32
  }
  func.func @transform_4(%arg0: i32, %arg1: i32) -> (i32, i32) {
    %c0_i32 = arith.constant 0 : i32
    %c0_i32_0 = arith.constant 0 : i32
    %c0_i32_1 = arith.constant 0 : i32
    return %c0_i32, %c0_i32_0 : i32, i32
  }
  func.func @transform_5(%arg0: i32, %arg1: i32) -> (i32, i32) {
    %c0_i32 = arith.constant 0 : i32
    %c0_i32_0 = arith.constant 0 : i32
    %c0_i32_1 = arith.constant 0 : i32
    return %c0_i32, %c0_i32_0 : i32, i32
  }
  func.func @transform_6(%arg0: i32, %arg1: i32) -> (i32, i32) {
    %c0_i32 = arith.constant 0 : i32
    %c0_i32_0 = arith.constant 0 : i32
    %c0_i32_1 = arith.constant 0 : i32
    return %c0_i32, %c0_i32_0 : i32, i32
  }
  func.func @transform_7(%arg0: i32, %arg1: i32) -> (i32, i32) {
    %c0_i32 = arith.constant 0 : i32
    %c0_i32_0 = arith.constant 0 : i32
    %c0_i32_1 = arith.constant 0 : i32
    return %c0_i32, %c0_i32_0 : i32, i32
  }
  func.func @transform_8(%arg0: i32, %arg1: i32) -> (i32, i32) {
    %c0_i32 = arith.constant 0 : i32
    %c0_i32_0 = arith.constant 0 : i32
    %c0_i32_1 = arith.constant 0 : i32
    return %c0_i32, %c0_i32_0 : i32, i32
  }
  func.func @transform_9(%arg0: i32, %arg1: i32) -> (i32, i32) {
    %c0_i32 = arith.constant 0 : i32
    %c0_i32_0 = arith.constant 0 : i32
    return %arg0, %c0_i32 : i32, i32
  }
}

</mosaic_0001>

<bundles_post_ra>
// kernel: neural_network_forward.1
= control target key start
LH: loop header
LB: loop body
LE: loop exit
PB: predicated region body
PF: predicated region fallthrough
CT: control target
= control target key end

     0   :  { %s8211_s0 = inlined_call_operand.hbm [shape: f32[8,4096], index: 0, kind: input, shape index: {}]   ;;  %s8212_s1 = inlined_call_operand.hbm [shape: bf16[4096,512], index: 1, kind: input, shape index: {}]   ;;  %s8213_s2 = inlined_call_operand.hbm [shape: f32[1,512], index: 2, kind: input, shape index: {}]   ;;  %s8214_s3 = inlined_call_operand.hbm [shape: bf16[512,256], index: 3, kind: input, shape index: {}]   ;;  %s8215_s4 = inlined_call_operand.hbm [shape: f32[1,256], index: 4, kind: input, shape index: {}]   ;;  %s8216_s5 = inlined_call_operand.hbm [shape: bf16[256,128], index: 5, kind: input, shape index: {}]   ;;  %s8217_s6 = inlined_call_operand.hbm [shape: f32[1,128], index: 6, kind: input, shape index: {}]   ;;  %s8218_s7 = inlined_call_operand.hbm [shape: bf16[128,128], index: 7, kind: input, shape index: {}]   ;;  %s8219_s8 = inlined_call_operand.hbm [shape: f32[1,128], index: 8, kind: input, shape index: {}]   ;;  %s8220_s9 = inlined_call_operand.hbm [shape: f32[8,128], index: 9, kind: output, shape index: {}]  }
   0x1   :  { %8223 = sst [smem:[#allocation26_spill]] %s8211_s0 }
   0x2   :  { %8224 = sst [smem:[#allocation27_spill]] %s8213_s2 }
   0x3   :  { %8225 = sst [smem:[#allocation28_spill]] %s8214_s3 }
   0x4   :  { %8226 = sst [smem:[#allocation29_spill]] %s8215_s4 }
   0x5   :  { %8227 = sst [smem:[#allocation30_spill]] %s8216_s5 }
   0x6   :  { %14 = vsyncpa [#allocation4], 0 }
   0x7   :  { %16 = vsyncpa [#allocation4 + $0x1], 0 }
   0x8   :  { %17 = vsyncpa [#allocation7], 0 }
   0x9   :  { %19 = vsyncpa [#allocation7 + $0x1], 0 }
   0xa   :  { %20 = vsyncpa [#allocation10], 0 }
   0xb   :  { %21 = vsyncpa [#allocation13], 0 }
   0xc   :  { %22 = vsyncpa [#allocation16], 0 }
   0xd   :  { %23 = vsyncpa [#allocation5], 0  ;;  %s7375_s30 = smov 0   ;;  %s7377_s10 = smov 0  }
   0xe   :  { %s7379_s11 = smov 0   ;;  %s7381_s12 = smov 0  }
   0xf   :  { %s7383_s13 = smov 0   ;;  %s7385_s14 = smov 0  }
  0x10 LB: > { %s7406_s15 = sadd.s32 4294967295, %s7305_s14   ;;  %p5247_p0 = scmp.ge.s32.totalorder %s7305_s14, 1  ;;  %s7305_s14 = sphi %s7385_s14, %s29_s14   ;;  %s7301_s13 = sphi %s7383_s13, %s8253_s13   ;;  %s7297_s12 = sphi %s7381_s12, %s8252_s12   ;;  %s7293_s11 = sphi %s7379_s11, %s8251_s11   ;;  %s7289_s10 = sphi %s7377_s10, %s8250_s10   ;;  %s7285_s30 = sphi %s7375_s30, %s8249_s30  }
  0x11   : > { %p8221_p1 = scmp.eq.s32.totalorder %s7406_s15, 0  ;;  %p273_p2 = scmp.lt.s32.totalorder %s7305_s14, 3 }
  0x12   : > { %s7307_s17 = smov [#allocation8]   ;;  %s7308_s19 = smov [#allocation9]  }
  0x13   : > { %p7411_p3 = pnand %p5247_p0, %p273_p2  ;;  %s286_s18 = sshll.u32 %s7307_s17, 4  ;;  %s287_s18 = int_to_ptr.vmem [resolvable:$true] %s286_s18 }
  0x14   : > { %s296_s20 = sshll.u32 %s7308_s19, 4  ;;  %s7309_s22 = smov [#allocation12]   ;;  %s297_s20 = int_to_ptr.vmem [resolvable:$true] %s296_s20 }
  0x15   : > { %s8228_s16 = scalar_select %p7411_p3, 1, 0 }
  0x16   : > { %p5971_p4 = pneg %p7411_p3  ;;  %s320_s23 = sshll.u32 %s7309_s22, 4  ;;  %s321_s23 = int_to_ptr.vmem [resolvable:$true] %s320_s23 }
  0x17   : > { %s6980_s25 = scalar_lea.vmem %s287_s18, 64  ;;  %p6988_p10 = scmp.lt.s32.totalorder %s287_s18, %s287_s18 }
  0x18   : > { %p7419_p5 = pnand %p5971_p4, %p8221_p1  ;;  %p6981_p7 = scmp.ne.s32.totalorder %s287_s18, %s6980_s25 }
  0x19   : > { %p6989_p11 = scmp.lt.s32.totalorder %s6980_s25, %s6980_s25 }
  0x1a   : > { %p7425_p6 = pneg %p7419_p5 }
  0x1b   : > { %p6990_p12 = por %p6989_p11, %p6988_p10 }
  0x1c   : > { %p6983_p8 = pnand %p6981_p7, %p7425_p6 }
  0x1e   : > { %p6984_p9 = pneg %p6983_p8 }
  0x20   : > { %p6991_p13 = pnand %p6990_p12, %p6984_p9 }
  0x22   : > { %6994 = shalt.err (!%p6991_p13)
}
  0x23   : > { %s8231_s2 = sld [smem:[#allocation27_spill]]  ;;  %s7006_s28 = scalar_lea.vmem %s297_s20, 8192 }
  0x24   : > { %p7007_p0 = scmp.ne.s32.totalorder %s297_s20, %s7006_s28  ;;  %p7014_p1 = scmp.lt.s32.totalorder %s297_s20, %s297_s20 }
  0x25   : > { %p7015_p7 = scmp.lt.s32.totalorder %s7006_s28, %s7006_s28 }
  0x26   : > { %p7009_p2 = pnand %p7007_p0, %p7425_p6 }
  0x27   : > { %p7016_p8 = por %p7015_p7, %p7014_p1 }
  0x28   : > { %p7010_p4 = pneg %p7009_p2 }
  0x29   : > { %5974 = dma.hbm_to_vmem [thread:$0]  (!%p7419_p5), %s8231_s2, 64, %s287_s18, [#allocation7]  }
  0x2a   : > { %p7017_p3 = pnand %p7016_p8, %p7010_p4 }
  0x2c   : > { %7020 = shalt.err (!%p7017_p3)
}
  0x2d   : > { %s7310_s29 = smov 128   ;;  %s7311_s17 = smov 8  }
  0x2e   : > { %s8232_s3 = sld [smem:[#allocation28_spill]]  ;;  %s7032_s18 = scalar_lea.vmem %s321_s23, 2048 }
  0x2f   : > { %p7033_p9 = scmp.ne.s32.totalorder %s321_s23, %s7032_s18  ;;  %p7040_p12 = scmp.lt.s32.totalorder %s321_s23, %s321_s23 }
  0x30   : > { %p7041_p13 = scmp.lt.s32.totalorder %s7032_s18, %s7032_s18 }
  0x31   : > { %p7035_p10 = pnand %p7033_p9, %p7425_p6 }
  0x32   : > { %p7042_p1 = por %p7041_p13, %p7040_p12 }
  0x33   : > { %p7036_p11 = pneg %p7035_p10 }
  0x34   : > { %5977 = dma.hbm_to_vmem [thread:$0]  (!%p7419_p5), %s8232_s3, 8192, %s297_s20, [#allocation10], %s7310_s29, %s7310_s29, %s7311_s17  }
  0x35   : > { %p7043_p0 = pnand %p7042_p1, %p7036_p11 }
  0x37   : > { %7046 = shalt.err (!%p7043_p0)
}
  0x38   : > { %s7312_s25 = smov 64   ;;  %s7313_s26 = smov 4  }
  0x39   : > { %s8233_s5 = sld [smem:[#allocation30_spill]]  ;;  %s7314_s20 = smov [#allocation15]  }
  0x3a   : > { %s344_s29 = sshll.u32 %s7314_s20, 4  ;;  %s7315_s17 = smov [#allocation11]   ;;  %s345_s29 = int_to_ptr.vmem [resolvable:$true] %s344_s29 }
  0x3b   : > { %s310_s19 = sshll.u32 %s7315_s17, 4  ;;  %s7058_s22 = scalar_lea.vmem %s345_s29, 1024  ;;  %s311_s19 = int_to_ptr.vmem [resolvable:$true] %s310_s19 }
  0x3c   : > { %p7059_p3 = scmp.ne.s32.totalorder %s345_s29, %s7058_s22  ;;  %p7066_p7 = scmp.lt.s32.totalorder %s345_s29, %s345_s29 }
  0x3d   : > { %p7067_p8 = scmp.lt.s32.totalorder %s7058_s22, %s7058_s22 }
  0x3e   : > { %p7061_p2 = pnand %p7059_p3, %p7425_p6 }
  0x3f   : > { %5983 = dma.hbm_to_vmem [thread:$0]  (!%p7419_p5), %s8233_s5, 2048, %s321_s23, [#allocation13], %s7312_s25, %s7312_s25, %s7313_s26  }
  0x40   : > { %p7062_p4 = pneg %p7061_p2  ;;  %p7068_p9 = por %p7067_p8, %p7066_p7 }
  0x42   : > { %p7069_p10 = pnand %p7068_p9, %p7062_p4 }
  0x44   : > { %7072 = shalt.err (!%p7069_p10)
}
  0x45   : > { %5989 = dma.hbm_to_vmem [thread:$0]  (!%p7419_p5), %s8218_s7, 1024, %s345_s29, [#allocation16], %s7312_s25, %s7312_s25, %s7313_s26  }
  0x46   : > { %s7084_s23 = scalar_lea.vmem %s311_s19, 32  ;;  %p7092_p1 = scmp.lt.s32.totalorder %s311_s19, %s311_s19 }
  0x47   : > { %p7085_p11 = scmp.ne.s32.totalorder %s311_s19, %s7084_s23  ;;  %p7093_p0 = scmp.lt.s32.totalorder %s7084_s23, %s7084_s23 }
  0x49   : > { %p7087_p12 = pnand %p7085_p11, %p7425_p6  ;;  %p7094_p3 = por %p7093_p0, %p7092_p1 }
  0x4b   : > { %p7088_p13 = pneg %p7087_p12 }
  0x4d   : > { %p7095_p2 = pnand %p7094_p3, %p7088_p13 }
  0x4f   : > { %7098 = shalt.err (!%p7095_p2)
}
  0x50   : > { %s8234_s4 = sld [smem:[#allocation29_spill]]  ;;  %s7316_s17 = smov [#allocation14]  }
  0x51   : > { %s334_s25 = sshll.u32 %s7316_s17, 4  ;;  %s7317_s26 = smov [#allocation17]   ;;  %s335_s25 = int_to_ptr.vmem [resolvable:$true] %s334_s25 }
  0x52   : > { %s358_s29 = sshll.u32 %s7317_s26, 4  ;;  %s7110_s22 = scalar_lea.vmem %s335_s25, 16  ;;  %s359_s29 = int_to_ptr.vmem [resolvable:$true] %s358_s29 }
  0x53   : > { %p7111_p4 = scmp.ne.s32.totalorder %s335_s25, %s7110_s22  ;;  %s7117_s18 = scalar_lea.vmem %s335_s25, 32 }
  0x54   : > { %p7118_p9 = scmp.lt.s32.totalorder %s335_s25, %s335_s25  ;;  %p7119_p10 = scmp.lt.s32.totalorder %s7117_s18, %s7110_s22 }
  0x55   : > { %p7113_p7 = pnand %p7111_p4, %p7425_p6 }
  0x56   : > { %5980 = dma.hbm_to_vmem [thread:$0]  (!%p7419_p5), %s8234_s4, 32, %s311_s19, [#allocation10]  }
  0x57   : > { %p7114_p8 = pneg %p7113_p7  ;;  %p7120_p11 = por %p7119_p10, %p7118_p9 }
  0x59   : > { %p7121_p12 = pnand %p7120_p11, %p7114_p8 }
  0x5b   : > { %7124 = shalt.err (!%p7121_p12)
}
  0x5c   : > { %5986 = dma.hbm_to_vmem [thread:$0]  (!%p7419_p5), %s8217_s6, 16, %s335_s25, [#allocation13]  }
  0x5d   : > { %s7136_s23 = scalar_lea.vmem %s359_s29, 16  ;;  %s7143_s28 = scalar_lea.vmem %s359_s29, 32 }
  0x5e   : > { %p7137_p13 = scmp.ne.s32.totalorder %s359_s29, %s7136_s23  ;;  %p7144_p3 = scmp.lt.s32.totalorder %s359_s29, %s359_s29 }
  0x5f   : > { %p7145_p2 = scmp.lt.s32.totalorder %s7143_s28, %s7136_s23 }
  0x60   : > { %p7139_p1 = pnand %p7137_p13, %p7425_p6 }
  0x61   : > { %p7146_p4 = por %p7145_p2, %p7144_p3 }
  0x62   : > { %p7140_p0 = pneg %p7139_p1 }
  0x64   : > { %p7147_p7 = pnand %p7146_p4, %p7140_p0 }
  0x66   : > { %7150 = shalt.err (!%p7147_p7)
}
  0x67   : > { %5992 = dma.hbm_to_vmem [thread:$0]  (!%p7419_p5), %s8219_s8, 16, %s359_s29, [#allocation16]  }
  0x68   : > { %s38_s24 = sadd.s32 1, %s7301_s13  ;;  %s50_s21 = sadd.s32 1, %s7293_s11 }
  0x69   : > { %p39_p6 = scmp.ge.s32.totalorder %s38_s24, 2  ;;  %p57_p8 = scmp.ne.s32.totalorder %s7293_s11, %s7289_s10 }
  0x6a   : > { %p58_p9 = scmp.eq.s32.totalorder %s7305_s14, 0  ;;  %p63_p11 = scmp.ne.s32.totalorder %s7289_s10, %s7285_s30 }
  0x6b   : > { %s8255_s24 = smov (%p39_p6, %s38_s24), 0  ;;  %p6007_p12 = scmp.lt.s32.totalorder %s7305_s14, 2 }
  0x6c   : > { %p7485_p10 = por %p58_p9, %p57_p8  ;;  %s46_s26 = ssub.s32 %s7301_s13, %s8255_s24 }
  0x6d   : > { %p48_p13 = scmp.eq.s32.totalorder %s46_s26, 0  ;;  %p8236_p1 = scmp.eq.s32.totalorder %s7406_s15, 0 }
  0x6e   : > { %s369_s22 = sand.u32 1, %s7293_s11   ;;  %s5881_s18 = sshll.u32 %s7301_s13, 11 }
  0x6f   : > { %p7496_p0 = por %p8236_p1, %p63_p11  ;;  %s5256_s19 = sshll.u32 %s369_s22, 7 }
  0x70   : > { %s7503_s27 = scalar_select %p48_p13, %s7293_s11, %s50_s21  }
  0x71   : > { %s8238_s0 = sld [smem:[#allocation26_spill]]  ;;  %s373_s17 = scalar_lea.vmem [#allocation3], %s5256_s19 }
  0x72   : > { %s383_s2 = sshll.u32 %s373_s17, 4  ;;  %p7510_p5 = pnand %p6007_p12, %p7485_p10  ;;  %s384_s2 = int_to_ptr.vmem [resolvable:$true] %s383_s2 }
  0x73   : > { %s5259_s26 = sshll.u32 %s369_s22, 12  ;;  %s370_s3 = scalar_lea.sflag [#allocation4], %s369_s22 }
  0x74   : > { %p7153_p3 = pneg %p7510_p5  ;;  %s7164_s21 = scalar_lea.vmem %s384_s2, 2048 }
  0x75   : > { %p7165_p2 = scmp.ne.s32.totalorder %s384_s2, %s7164_s21 }
  0x77   : > { %s381_s20 = scalar_lea.hbm %s8238_s0, %s5881_s18  ;;  %p7167_p4 = pnand %p7165_p2, %p7153_p3 }
  0x78   : > { %s7318_s18 = smov [#allocation3]  }
  0x79   : > { %p7168_p7 = pneg %p7167_p4  ;;  %s7169_s19 = sshll.u32 %s7318_s18, 4  ;;  %s7170_s19 = int_to_ptr.vmem [resolvable:$false] %s7169_s19 }
  0x7a   : > { %s7171_s25 = scalar_lea.vmem %s7170_s19, 4096  ;;  %p7172_p6 = scmp.lt.s32.totalorder %s384_s2, %s7170_s19 }
  0x7b   : > { %p7173_p8 = scmp.lt.s32.totalorder %s7171_s25, %s7164_s21 }
  0x7d   : > { %p7174_p9 = por %p7173_p8, %p7172_p6 }
  0x7f   : > { %p7175_p10 = pnand %p7174_p9, %p7168_p7 }
  0x81   : > { %7178 = shalt.err (!%p7175_p10)
}
  0x82   : > { %5996 = dma.hbm_to_vmem [thread:$0]  (!%p7510_p5), %s381_s20, 2048, %s384_s2, %s370_s3  }
  0x83   : > { %s5883_s22 = sshll.u32 %s7301_s13, 16  ;;  %s394_s23 = scalar_lea.vmem [#allocation6], %s5259_s26 }
  0x84   : > { %s402_s28 = sshll.u32 %s394_s23, 4  ;;  %s390_s17 = sand.u32 1, %s7305_s14   ;;  %s403_s28 = int_to_ptr.vmem [resolvable:$true] %s402_s28 }
  0x85   : > { %s401_s4 = scalar_lea.hbm %s8212_s1, %s5883_s22  ;;  %s391_s19 = scalar_lea.sflag [#allocation7], %s390_s17 }
  0x86   : > { %s7192_s21 = scalar_lea.vmem %s403_s28, 65536  ;;  %s7319_s25 = smov [#allocation6]  }
  0x87   : > { %p7193_p11 = scmp.ne.s32.totalorder %s403_s28, %s7192_s21  ;;  %s7197_s5 = sshll.u32 %s7319_s25, 4  ;;  %s7198_s5 = int_to_ptr.vmem [resolvable:$false] %s7197_s5 }
  0x88   : > { %s7199_s2 = scalar_lea.vmem %s7198_s5, 131072  ;;  %p7200_p1 = scmp.lt.s32.totalorder %s403_s28, %s7198_s5 }
  0x89   : > { %p7195_p12 = pnand %p7193_p11, %p7153_p3  ;;  %p7201_p2 = scmp.lt.s32.totalorder %s7199_s2, %s7192_s21 }
  0x8b   : > { %p7196_p13 = pneg %p7195_p12  ;;  %p7202_p4 = por %p7201_p2, %p7200_p1 }
  0x8d   : > { %p7203_p7 = pnand %p7202_p4, %p7196_p13 }
  0x8f   : > { %7206 = shalt.err (!%p7203_p7)
}
  0x90   : > { %s7320_s3 = smov 256   ;;  %s7321_s0 = smov 16  }
  0x91   : > { %5999 = dma.hbm_to_vmem [thread:$0]  (!%p7510_p5), %s401_s4, 65536, %s403_s28, %s391_s19, %s7320_s3, %s7320_s3, %s7321_s0  }
  0x92   : > { %p8240_p6 = scmp.ne.s32.totalorder %s8228_s16, 0 }
  0x93   : > { %s416_s20 = sand.u32 (!%p8240_p6), 1, %s7289_s10  }
  0x94   : > { %414 = sbr.rel (%p8240_p6) target bundleno = 1588 (0x634), region = 56  ;;  %s5264_s26 = sshll.u32 (!%p8240_p6), %s416_s20, 7 }
  0x95   : > { %s417_s22 = scalar_lea.sflag (!%p8240_p6), [#allocation4], %s416_s20  ;;  %s7534_s23 = scalar_lea.vmem (!%p8240_p6), [#allocation3], %s5264_s26 }
  0x99   : > { %7256 = dma.done.wait (%p7496_p0), %s417_s22, 2048  }
  0x9a   : > { %7258 = vsyncadd (%p7496_p0), %s417_s22, 4294965248  ;;  %s425_s5 = sand.u32 1, %s7406_s15   ;;  %s5265_s30 = sshll.u32 %s416_s20, 12 }
  0x9b   : > { %s426_s4 = scalar_lea.sflag [#allocation7], %s425_s5  ;;  %s7541_s28 = scalar_lea.vmem [#allocation6], %s5265_s30 }
  0x9c   : > { %7260 = dma.done.wait (%p7496_p0), %s426_s4, 65536  }
  0x9d   : > { %7262 = vsyncadd (%p7496_p0), %s426_s4, 4294901760  ;;  %p8241_p5 = scmp.eq.s32.totalorder %s7406_s15, 0 }
  0x9f   : > { %7264 = dma.done.wait (%p8241_p5), [#allocation7], 64   ;;  %p8242_p3 = pmov %p8241_p5 }
  0xa1   : > { %7266 = vsyncadd (%p8242_p3), [#allocation7], 4294967232  ;;  %p8243_p8 = pmov %p8242_p3 }
  0xa2   : > { %p8244_p9 = pmov %p8242_p3 }
  0xa3   : > { %7268 = dma.done.wait (%p8243_p8), [#allocation10], 8224  }
  0xa4   : > { %7270 = vsyncadd (%p8244_p9), [#allocation10], 4294959072  ;;  %p8245_p10 = pmov %p8242_p3 }
  0xa5   : > { %p8246_p11 = pmov %p8242_p3 }
  0xa6   : > { %7272 = dma.done.wait (%p8245_p10), [#allocation13], 2064  }
  0xa7   : > { %7274 = vsyncadd (%p8246_p11), [#allocation13], 4294965232  ;;  %p8247_p0 = pmov %p8242_p3 }
  0xa9   : > { %7276 = dma.done.wait (%p8247_p0), [#allocation16], 1040   ;;  %p8248_p12 = pmov %p8247_p0 }
  0xaa   : > { %p5273_p13 = scmp.ne.s32.totalorder %s7297_s12, 0 }
  0xab   : > { %7278 = vsyncadd (%p8248_p12), [#allocation16], 4294966256 }
  0xac   : > { %498 = sbr.rel (%p5273_p13) target bundleno = 187 (0xbb), region = 96 }
  0xb1   : > { %v501_v0 = vlaneseq  ;;  %v499_v2 = vld [vmem:[#allocation8] sm:$0xf] }
  0xb3   : > { %v502_v1 = vshrl.u32 %v501_v0, 7 }
  0xb5   : > { %v503_v3 = vsub.s32 0, %v502_v1  ;;  %v507_v4 = vsub.s32 1, %v502_v1  ;;  %v511_v5 = vsub.s32 2, %v502_v1  ;;  %v515_v6 = vsub.s32 3, %v502_v1 }
  0xb7   : > { %v504_v7 = vrot.slane %v499_v2, %v503_v3  ;;  %v508_v8 = vrot.slane %v499_v2, %v507_v4  ;;  %v512_v9 = vrot.slane %v499_v2, %v511_v5  ;;  %v516_v10 = vrot.slane %v499_v2, %v515_v6 }
  0xb9   : > { %521 = vst [vmem:[#allocation2 + $0x10] sm:$0xff] %v504_v7  ;;  %522 = vst [vmem:[#allocation2] sm:$0xff] %v508_v8 }
  0xba   : > { %523 = vst [vmem:[#allocation2 + $0x18] sm:$0xff] %v512_v9  ;;  %524 = vst [vmem:[#allocation2 + $0x8] sm:$0xff] %v516_v10 }
  0xbb PF: > { %v6081_v11 = vld [vmem:[%s7541_s28 + $0xe4] ss:$16 sps:$4 sm:$0xff]   ;;  %v6085_v13 = vld [vmem:[%s7541_s28 + $0xe0] ss:$16 sps:$4 sm:$0xff]   ;;  %v530_v57 = vld [vmem:[%s7534_s23 + $0x8] sm:$0xff]  ;;  %p5786_p1 = scmp.ne.s32.totalorder %s7297_s12, 1 }
  0xbc   : > { %v6083_v12 = vld [vmem:[%s7541_s28 + $0x2e4] ss:$16 sps:$4 sm:$0xff]   ;;  %3633 = vmatprep.subr.bf16.mxu0 %v6081_v11  ;;  %v6086_v14 = vld [vmem:[%s7541_s28 + $0x2e0] ss:$16 sps:$4 sm:$0xff]   ;;  %v7613_v60 = vpack.c.bf16 %v530_v57, %v530_v57  ;;  %v532_v61 = vld [vmem:[%s7534_s23 + $0x18] sm:$0xff] }
  0xbd   : > { %3674 = vmatprep.subr.bf16.mxu1 %v6083_v12  ;;  %v6087_v15 = vld [vmem:[%s7541_s28 + $0xc4] ss:$16 sps:$4 sm:$0xff]   ;;  %3634 = vmatpush1.bf16.msra.mxu0 %v6085_v13  ;;  %v6091_v17 = vld [vmem:[%s7541_s28 + $0xc0] ss:$16 sps:$4 sm:$0xff]   ;;  %v7617_v63 = vpack.c.bf16 %v532_v61, %v532_v61 }
  0xbe   : > { %3675 = vmatpush1.bf16.msra.mxu1 %v6086_v14  ;;  %v6089_v16 = vld [vmem:[%s7541_s28 + $0x2c4] ss:$16 sps:$4 sm:$0xff]   ;;  %3635 = vmatprep.subr.bf16.mxu0 %v6087_v15  ;;  %v6092_v18 = vld [vmem:[%s7541_s28 + $0x2c0] ss:$16 sps:$4 sm:$0xff]  }
  0xbf   : > { %3676 = vmatprep.subr.bf16.mxu1 %v6089_v16  ;;  %v6093_v19 = vld [vmem:[%s7541_s28 + $0xa4] ss:$16 sps:$4 sm:$0xff]   ;;  %v6097_v21 = vld [vmem:[%s7541_s28 + $0xa0] ss:$16 sps:$4 sm:$0xff]   ;;  %3665 = vmatprep.mubr.bf16.mxu0 %v7613_v60 }
  0xc0   : > { %v6095_v20 = vld [vmem:[%s7541_s28 + $0x2a4] ss:$16 sps:$4 sm:$0xff]   ;;  %v6098_v22 = vld [vmem:[%s7541_s28 + $0x2a0] ss:$16 sps:$4 sm:$0xff]   ;;  %3706 = vmatprep.mubr.bf16.mxu1 %v7617_v63 }
  0xc1   : > { %3636 = vmatpush1.bf16.msra.mxu0 %v6091_v17  ;;  %v6099_v23 = vld [vmem:[%s7541_s28 + $0x84] ss:$16 sps:$4 sm:$0xff]   ;;  %v6103_v25 = vld [vmem:[%s7541_s28 + $0x80] ss:$16 sps:$4 sm:$0xff]  }
  0xc2   : > { %3677 = vmatpush1.bf16.msra.mxu1 %v6092_v18  ;;  %3637 = vmatprep.subr.bf16.mxu0 %v6093_v19  ;;  %v6101_v24 = vld [vmem:[%s7541_s28 + $0x284] ss:$16 sps:$4 sm:$0xff]   ;;  %v6104_v26 = vld [vmem:[%s7541_s28 + $0x280] ss:$16 sps:$4 sm:$0xff]  }
  0xc3   : > { %3678 = vmatprep.subr.bf16.mxu1 %v6095_v20  ;;  %v6105_v27 = vld [vmem:[%s7541_s28 + $0x64] ss:$16 sps:$4 sm:$0xff]   ;;  %v6109_v29 = vld [vmem:[%s7541_s28 + $0x60] ss:$16 sps:$4 sm:$0xff]  }
  0xc4   : > { %v6107_v28 = vld [vmem:[%s7541_s28 + $0x264] ss:$16 sps:$4 sm:$0xff]   ;;  %v6110_v30 = vld [vmem:[%s7541_s28 + $0x260] ss:$16 sps:$4 sm:$0xff]  }
  0xc5   : > { %3638 = vmatpush1.bf16.msra.mxu0 %v6097_v21  ;;  %v6111_v31 = vld [vmem:[%s7541_s28 + $0x44] ss:$16 sps:$4 sm:$0xff]   ;;  %v6115_v33 = vld [vmem:[%s7541_s28 + $0x40] ss:$16 sps:$4 sm:$0xff]  }
  0xc6   : > { %3679 = vmatpush1.bf16.msra.mxu1 %v6098_v22  ;;  %3639 = vmatprep.subr.bf16.mxu0 %v6099_v23  ;;  %v6113_v32 = vld [vmem:[%s7541_s28 + $0x244] ss:$16 sps:$4 sm:$0xff]   ;;  %v6116_v34 = vld [vmem:[%s7541_s28 + $0x240] ss:$16 sps:$4 sm:$0xff]  }
  0xc7   : > { %3680 = vmatprep.subr.bf16.mxu1 %v6101_v24  ;;  %v6117_v35 = vld [vmem:[%s7541_s28 + $0x24] ss:$16 sps:$4 sm:$0xff]   ;;  %v6121_v37 = vld [vmem:[%s7541_s28 + $0x20] ss:$16 sps:$4 sm:$0xff]  }
  0xc8   : > { %v6119_v36 = vld [vmem:[%s7541_s28 + $0x224] ss:$16 sps:$4 sm:$0xff]   ;;  %v6122_v38 = vld [vmem:[%s7541_s28 + $0x220] ss:$16 sps:$4 sm:$0xff]  }
  0xc9   : > { %3640 = vmatpush1.bf16.msra.mxu0 %v6103_v25  ;;  %v6123_v39 = vld [vmem:[%s7541_s28 + $0x4] ss:$16 sps:$4 sm:$0xff]   ;;  %v6127_v41 = vld [vmem:[%s7541_s28] ss:$16 sps:$4 sm:$0xff]  }
  0xca   : > { %3681 = vmatpush1.bf16.msra.mxu1 %v6104_v26  ;;  %3641 = vmatprep.subr.bf16.mxu0 %v6105_v27  ;;  %v6125_v40 = vld [vmem:[%s7541_s28 + $0x204] ss:$16 sps:$4 sm:$0xff]   ;;  %v6128_v42 = vld [vmem:[%s7541_s28 + $0x200] ss:$16 sps:$4 sm:$0xff]  }
  0xcb   : > { %3682 = vmatprep.subr.bf16.mxu1 %v6107_v28  ;;  %v6129_v43 = vld [vmem:[%s7541_s28 + $0x1e4] ss:$16 sps:$4 sm:$0xff]   ;;  %v6133_v45 = vld [vmem:[%s7541_s28 + $0x1e0] ss:$16 sps:$4 sm:$0xff]  }
  0xcc   : > { %v6131_v44 = vld [vmem:[%s7541_s28 + $0x3e4] ss:$16 sps:$4 sm:$0xff]   ;;  %v6134_v46 = vld [vmem:[%s7541_s28 + $0x3e0] ss:$16 sps:$4 sm:$0xff]  }
  0xcd   : > { %3642 = vmatpush1.bf16.msra.mxu0 %v6109_v29  ;;  %v6135_v47 = vld [vmem:[%s7541_s28 + $0x1c4] ss:$16 sps:$4 sm:$0xff]   ;;  %v6139_v49 = vld [vmem:[%s7541_s28 + $0x1c0] ss:$16 sps:$4 sm:$0xff]  }
  0xce   : > { %3683 = vmatpush1.bf16.msra.mxu1 %v6110_v30  ;;  %3643 = vmatprep.subr.bf16.mxu0 %v6111_v31  ;;  %v6137_v48 = vld [vmem:[%s7541_s28 + $0x3c4] ss:$16 sps:$4 sm:$0xff]   ;;  %v6140_v50 = vld [vmem:[%s7541_s28 + $0x3c0] ss:$16 sps:$4 sm:$0xff]  }
  0xcf   : > { %3684 = vmatprep.subr.bf16.mxu1 %v6113_v32  ;;  %v6141_v51 = vld [vmem:[%s7541_s28 + $0x1a4] ss:$16 sps:$4 sm:$0xff]   ;;  %v6145_v53 = vld [vmem:[%s7541_s28 + $0x1a0] ss:$16 sps:$4 sm:$0xff]  }
  0xd0   : > { %v6143_v52 = vld [vmem:[%s7541_s28 + $0x3a4] ss:$16 sps:$4 sm:$0xff]   ;;  %v6146_v54 = vld [vmem:[%s7541_s28 + $0x3a0] ss:$16 sps:$4 sm:$0xff]  }
  0xd1   : > { %3644 = vmatpush1.bf16.msra.mxu0 %v6115_v33  ;;  %v6147_v55 = vld [vmem:[%s7541_s28 + $0x184] ss:$16 sps:$4 sm:$0xff]   ;;  %v6151_v58 = vld [vmem:[%s7541_s28 + $0x180] ss:$16 sps:$4 sm:$0xff]  }
  0xd2   : > { %3685 = vmatpush1.bf16.msra.mxu1 %v6116_v34  ;;  %3645 = vmatprep.subr.bf16.mxu0 %v6117_v35  ;;  %v6149_v56 = vld [vmem:[%s7541_s28 + $0x384] ss:$16 sps:$4 sm:$0xff]   ;;  %v6152_v59 = vld [vmem:[%s7541_s28 + $0x380] ss:$16 sps:$4 sm:$0xff]  }
  0xd3   : > { %3686 = vmatprep.subr.bf16.mxu1 %v6119_v36  ;;  %v6153_v62 = vld [vmem:[%s7541_s28 + $0x164] ss:$16 sps:$4 sm:$0xff]   ;;  %v6157_v1 = vld [vmem:[%s7541_s28 + $0x160] ss:$16 sps:$4 sm:$0xff]  }
  0xd4   : > { %v6155_v0 = vld [vmem:[%s7541_s28 + $0x364] ss:$16 sps:$4 sm:$0xff]   ;;  %v6158_v2 = vld [vmem:[%s7541_s28 + $0x360] ss:$16 sps:$4 sm:$0xff]  }
  0xd5   : > { %3646 = vmatpush1.bf16.msra.mxu0 %v6121_v37  ;;  %v6159_v3 = vld [vmem:[%s7541_s28 + $0x144] ss:$16 sps:$4 sm:$0xff]   ;;  %v6163_v5 = vld [vmem:[%s7541_s28 + $0x140] ss:$16 sps:$4 sm:$0xff]  }
  0xd6   : > { %3687 = vmatpush1.bf16.msra.mxu1 %v6122_v38  ;;  %3647 = vmatprep.subr.bf16.mxu0 %v6123_v39  ;;  %v6161_v4 = vld [vmem:[%s7541_s28 + $0x344] ss:$16 sps:$4 sm:$0xff]   ;;  %v6164_v6 = vld [vmem:[%s7541_s28 + $0x340] ss:$16 sps:$4 sm:$0xff]  }
  0xd7   : > { %3688 = vmatprep.subr.bf16.mxu1 %v6125_v40  ;;  %v6165_v7 = vld [vmem:[%s7541_s28 + $0x124] ss:$16 sps:$4 sm:$0xff]   ;;  %v6169_v9 = vld [vmem:[%s7541_s28 + $0x120] ss:$16 sps:$4 sm:$0xff]  }
  0xd8   : > { %v6167_v8 = vld [vmem:[%s7541_s28 + $0x324] ss:$16 sps:$4 sm:$0xff]   ;;  %v6170_v10 = vld [vmem:[%s7541_s28 + $0x320] ss:$16 sps:$4 sm:$0xff]  }
  0xd9   : > { %3648 = vmatpush1.bf16.msra.mxu0 %v6127_v41  ;;  %v6171_v11 = vld [vmem:[%s7541_s28 + $0x104] ss:$16 sps:$4 sm:$0xff]   ;;  %v6175_v13 = vld [vmem:[%s7541_s28 + $0x100] ss:$16 sps:$4 sm:$0xff]  }
  0xda   : > { %3689 = vmatpush1.bf16.msra.mxu1 %v6128_v42  ;;  %3649 = vmatprep.subr.bf16.mxu0 %v6129_v43  ;;  %v6173_v12 = vld [vmem:[%s7541_s28 + $0x304] ss:$16 sps:$4 sm:$0xff]   ;;  %v6176_v14 = vld [vmem:[%s7541_s28 + $0x300] ss:$16 sps:$4 sm:$0xff]  }
  0xdb   : > { %3690 = vmatprep.subr.bf16.mxu1 %v6131_v44  ;;  %v529_v15 = vld [vmem:[%s7534_s23] sm:$0xff]  ;;  %v531_v16 = vld [vmem:[%s7534_s23 + $0x10] sm:$0xff] }
  0xdc   : > { %v6179_v17 = vld [vmem:[%s7541_s28 + $0x4e4] ss:$16 sps:$4 sm:$0xff]   ;;  %v7640_v19 = vpack.c.bf16 %v529_v15, %v529_v15  ;;  %v7642_v20 = vpack.c.bf16 %v531_v16, %v531_v16  ;;  %v6177_v21 = vld [vmem:[%s7541_s28 + $0x4e0] ss:$16 sps:$4 sm:$0xff]  }
  0xdd   : > { %3650 = vmatpush2.bf16.msra.mxu0 %v6133_v45  ;;  %v6182_v18 = vld [vmem:[%s7541_s28 + $0x6e4] ss:$16 sps:$4 sm:$0xff]   ;;  %v6180_v22 = vld [vmem:[%s7541_s28 + $0x6e0] ss:$16 sps:$4 sm:$0xff]   ;;  %v534_v45 = vld [vmem:[%s7534_s23 + $0x28] sm:$0xff] }
  0xde   : > { %3691 = vmatpush2.bf16.msra.mxu1 %v6134_v46  ;;  %3651 = vmatprep.subr.bf16.mxu0 %v6135_v47  ;;  %v6185_v23 = vld [vmem:[%s7541_s28 + $0x4c4] ss:$16 sps:$4 sm:$0xff]   ;;  %v6183_v25 = vld [vmem:[%s7541_s28 + $0x4c0] ss:$16 sps:$4 sm:$0xff]  }
  0xdf   : > { %3692 = vmatprep.subr.bf16.mxu1 %v6137_v48  ;;  %v6188_v24 = vld [vmem:[%s7541_s28 + $0x6c4] ss:$16 sps:$4 sm:$0xff]   ;;  %v6186_v26 = vld [vmem:[%s7541_s28 + $0x6c0] ss:$16 sps:$4 sm:$0xff]   ;;  %v7673_v48 = vpack.c.bf16 %v534_v45, %v534_v45 }
  0xe0   : > { %v6191_v27 = vld [vmem:[%s7541_s28 + $0x4a4] ss:$16 sps:$4 sm:$0xff]   ;;  %v6189_v29 = vld [vmem:[%s7541_s28 + $0x4a0] ss:$16 sps:$4 sm:$0xff]  }
  0xe1   : > { %3652 = vmatpush2.bf16.msra.mxu0 %v6139_v49  ;;  %v6194_v28 = vld [vmem:[%s7541_s28 + $0x6a4] ss:$16 sps:$4 sm:$0xff]   ;;  %v6192_v30 = vld [vmem:[%s7541_s28 + $0x6a0] ss:$16 sps:$4 sm:$0xff]   ;;  %v536_v49 = vld [vmem:[%s7534_s23 + $0x38] sm:$0xff] }
  0xe2   : > { %3693 = vmatpush2.bf16.msra.mxu1 %v6140_v50  ;;  %3653 = vmatprep.subr.bf16.mxu0 %v6141_v51  ;;  %v6197_v31 = vld [vmem:[%s7541_s28 + $0x484] ss:$16 sps:$4 sm:$0xff]   ;;  %v6195_v33 = vld [vmem:[%s7541_s28 + $0x480] ss:$16 sps:$4 sm:$0xff]   ;;  %v7677_v51 = vpack.c.bf16 %v536_v49, %v536_v49 }
  0xe3   : > { %3694 = vmatprep.subr.bf16.mxu1 %v6143_v52  ;;  %v6200_v32 = vld [vmem:[%s7541_s28 + $0x684] ss:$16 sps:$4 sm:$0xff]   ;;  %v6198_v34 = vld [vmem:[%s7541_s28 + $0x680] ss:$16 sps:$4 sm:$0xff]  }
  0xe4   : > { %v6203_v35 = vld [vmem:[%s7541_s28 + $0x464] ss:$16 sps:$4 sm:$0xff]   ;;  %v6201_v37 = vld [vmem:[%s7541_s28 + $0x460] ss:$16 sps:$4 sm:$0xff]  }
  0xe5   : > { %3654 = vmatpush2.bf16.msra.mxu0 %v6145_v53  ;;  %v6206_v36 = vld [vmem:[%s7541_s28 + $0x664] ss:$16 sps:$4 sm:$0xff]   ;;  %v6204_v38 = vld [vmem:[%s7541_s28 + $0x660] ss:$16 sps:$4 sm:$0xff]  }
  0xe6   : > { %3695 = vmatpush2.bf16.msra.mxu1 %v6146_v54  ;;  %3655 = vmatprep.subr.bf16.mxu0 %v6147_v55  ;;  %v6209_v39 = vld [vmem:[%s7541_s28 + $0x444] ss:$16 sps:$4 sm:$0xff]   ;;  %v6207_v41 = vld [vmem:[%s7541_s28 + $0x440] ss:$16 sps:$4 sm:$0xff]  }
  0xe7   : > { %3696 = vmatprep.subr.bf16.mxu1 %v6149_v56  ;;  %v6212_v40 = vld [vmem:[%s7541_s28 + $0x644] ss:$16 sps:$4 sm:$0xff]   ;;  %v6210_v42 = vld [vmem:[%s7541_s28 + $0x640] ss:$16 sps:$4 sm:$0xff]  }
  0xe8   : > { %v6215_v43 = vld [vmem:[%s7541_s28 + $0x424] ss:$16 sps:$4 sm:$0xff]   ;;  %v6213_v46 = vld [vmem:[%s7541_s28 + $0x420] ss:$16 sps:$4 sm:$0xff]  }
  0xe9   : > { %3656 = vmatpush2.bf16.msra.mxu0 %v6151_v58  ;;  %v6218_v44 = vld [vmem:[%s7541_s28 + $0x624] ss:$16 sps:$4 sm:$0xff]   ;;  %v6216_v47 = vld [vmem:[%s7541_s28 + $0x620] ss:$16 sps:$4 sm:$0xff]  }
  0xea   : > { %3697 = vmatpush2.bf16.msra.mxu1 %v6152_v59  ;;  %3657 = vmatprep.subr.bf16.mxu0 %v6153_v62  ;;  %v6221_v50 = vld [vmem:[%s7541_s28 + $0x404] ss:$16 sps:$4 sm:$0xff]   ;;  %v6219_v53 = vld [vmem:[%s7541_s28 + $0x400] ss:$16 sps:$4 sm:$0xff]  }
  0xeb   : > { %3698 = vmatprep.subr.bf16.mxu1 %v6155_v0  ;;  %v6224_v52 = vld [vmem:[%s7541_s28 + $0x604] ss:$16 sps:$4 sm:$0xff]   ;;  %v6222_v54 = vld [vmem:[%s7541_s28 + $0x600] ss:$16 sps:$4 sm:$0xff]  }
  0xec   : > { %v6227_v55 = vld [vmem:[%s7541_s28 + $0x5e4] ss:$16 sps:$4 sm:$0xff]   ;;  %v6225_v57 = vld [vmem:[%s7541_s28 + $0x5e0] ss:$16 sps:$4 sm:$0xff]  }
  0xed   : > { %3658 = vmatpush2.bf16.msra.mxu0 %v6157_v1  ;;  %v6230_v56 = vld [vmem:[%s7541_s28 + $0x7e4] ss:$16 sps:$4 sm:$0xff]   ;;  %v6228_v58 = vld [vmem:[%s7541_s28 + $0x7e0] ss:$16 sps:$4 sm:$0xff]  }
  0xee   : > { %3699 = vmatpush2.bf16.msra.mxu1 %v6158_v2  ;;  %3659 = vmatprep.subr.bf16.mxu0 %v6159_v3  ;;  %v6233_v59 = vld [vmem:[%s7541_s28 + $0x5c4] ss:$16 sps:$4 sm:$0xff]   ;;  %v6231_v62 = vld [vmem:[%s7541_s28 + $0x5c0] ss:$16 sps:$4 sm:$0xff]  }
  0xef   : > { %3700 = vmatprep.subr.bf16.mxu1 %v6161_v4  ;;  %v6236_v61 = vld [vmem:[%s7541_s28 + $0x7c4] ss:$16 sps:$4 sm:$0xff]   ;;  %v6234_v0 = vld [vmem:[%s7541_s28 + $0x7c0] ss:$16 sps:$4 sm:$0xff]  }
  0xf0   : > { %v6239_v1 = vld [vmem:[%s7541_s28 + $0x5a4] ss:$16 sps:$4 sm:$0xff]   ;;  %v6237_v3 = vld [vmem:[%s7541_s28 + $0x5a0] ss:$16 sps:$4 sm:$0xff]  }
  0xf1   : > { %3660 = vmatpush2.bf16.msra.mxu0 %v6163_v5  ;;  %v6242_v2 = vld [vmem:[%s7541_s28 + $0x7a4] ss:$16 sps:$4 sm:$0xff]   ;;  %v6240_v4 = vld [vmem:[%s7541_s28 + $0x7a0] ss:$16 sps:$4 sm:$0xff]  }
  0xf2   : > { %3701 = vmatpush2.bf16.msra.mxu1 %v6164_v6  ;;  %3661 = vmatprep.subr.bf16.mxu0 %v6165_v7  ;;  %v6245_v5 = vld [vmem:[%s7541_s28 + $0x584] ss:$16 sps:$4 sm:$0xff]   ;;  %v6243_v7 = vld [vmem:[%s7541_s28 + $0x580] ss:$16 sps:$4 sm:$0xff]  }
  0xf3   : > { %3702 = vmatprep.subr.bf16.mxu1 %v6167_v8  ;;  %v6248_v6 = vld [vmem:[%s7541_s28 + $0x784] ss:$16 sps:$4 sm:$0xff]   ;;  %v6246_v8 = vld [vmem:[%s7541_s28 + $0x780] ss:$16 sps:$4 sm:$0xff]  }
  0xf4   : > { %v6255_v15 = vld [vmem:[%s7541_s28 + $0x540] ss:$16 sps:$4 sm:$0xff]   ;;  %v6296_v49 = vld [vmem:[%s7541_s28 + $0xa84] ss:$16 sps:$4 sm:$0xff]  }
  0xf5   : > { %3662 = vmatpush2.bf16.msra.mxu0 %v6169_v9  ;;  %v6251_v9 = vld [vmem:[%s7541_s28 + $0x564] ss:$16 sps:$4 sm:$0xff]   ;;  %v6258_v16 = vld [vmem:[%s7541_s28 + $0x740] ss:$16 sps:$4 sm:$0xff]  }
  0xf6   : > { %3703 = vmatpush2.bf16.msra.mxu1 %v6170_v10  ;;  %3663 = vmatprep.subr.bf16.mxu0 %v6171_v11  ;;  %v6254_v10 = vld [vmem:[%s7541_s28 + $0x764] ss:$16 sps:$4 sm:$0xff]   ;;  %v6249_v11 = vld [vmem:[%s7541_s28 + $0x560] ss:$16 sps:$4 sm:$0xff]  }
  0xf7   : > { %3704 = vmatprep.subr.bf16.mxu1 %v6173_v12  ;;  %v6252_v12 = vld [vmem:[%s7541_s28 + $0x760] ss:$16 sps:$4 sm:$0xff]  }
  0xf8   : > { %v6285_v45 = vld [vmem:[%s7541_s28 + $0x8a0] ss:$16 sps:$4 sm:$0xff]  }
  0xf9   : > { %3664 = vmatpush2.bf16.msra.mxu0 %v6175_v13  ;;  %v6257_v13 = vld [vmem:[%s7541_s28 + $0x544] ss:$16 sps:$4 sm:$0xff]  }
  0xfa   : > { %3705 = vmatpush2.bf16.msra.mxu1 %v6176_v14  ;;  %3715 = vmatprep.subr.bf16.mxu0 %v6179_v17  ;;  %v6260_v14 = vld [vmem:[%s7541_s28 + $0x744] ss:$16 sps:$4 sm:$0xff]  }
  0xfb   : > { %3756 = vmatprep.subr.bf16.mxu1 %v6182_v18  ;;  %v6263_v17 = vld [vmem:[%s7541_s28 + $0x524] ss:$16 sps:$4 sm:$0xff]  }
  0xfc   : > { %3666 = vmatmul.mubr.bf16.vlgmr.msra.gmra.mxu0 %v7640_v19  ;;  %v6266_v18 = vld [vmem:[%s7541_s28 + $0x724] ss:$16 sps:$4 sm:$0xff]  }
  0xfd   : > { %3707 = vmatmul.mubr.bf16.vlgmr.msra.gmra.mxu1 %v7642_v20  ;;  %3716 = vmatpush1.bf16.msra.mxu0 %v6177_v21  ;;  %v6261_v21 = vld [vmem:[%s7541_s28 + $0x520] ss:$16 sps:$4 sm:$0xff]  }
  0xfe   : > { %3757 = vmatpush1.bf16.msra.mxu1 %v6180_v22  ;;  %3717 = vmatprep.subr.bf16.mxu0 %v6185_v23  ;;  %v6264_v22 = vld [vmem:[%s7541_s28 + $0x720] ss:$16 sps:$4 sm:$0xff]   ;;  %v6269_v23 = vld [vmem:[%s7541_s28 + $0x504] ss:$16 sps:$4 sm:$0xff]  }
  0xff   : > { %3758 = vmatprep.subr.bf16.mxu1 %v6188_v24  ;;  %3747 = vmatprep.mubr.bf16.mxu0 %v7673_v48  ;;  %v6272_v24 = vld [vmem:[%s7541_s28 + $0x704] ss:$16 sps:$4 sm:$0xff]  }
 0x100   : > { %3788 = vmatprep.mubr.bf16.mxu1 %v7677_v51 }
 0x101   : > { %3718 = vmatpush1.bf16.msra.mxu0 %v6183_v25  ;;  %v6267_v25 = vld [vmem:[%s7541_s28 + $0x500] ss:$16 sps:$4 sm:$0xff]  }
 0x102   : > { %3759 = vmatpush1.bf16.msra.mxu1 %v6186_v26  ;;  %3719 = vmatprep.subr.bf16.mxu0 %v6191_v27  ;;  %v6270_v26 = vld [vmem:[%s7541_s28 + $0x700] ss:$16 sps:$4 sm:$0xff]  }
 0x103   : > { %3760 = vmatprep.subr.bf16.mxu1 %v6194_v28  ;;  %v533_v27 = vld [vmem:[%s7534_s23 + $0x20] sm:$0xff]  ;;  %v535_v28 = vld [vmem:[%s7534_s23 + $0x30] sm:$0xff] }
 0x105   : > { %3720 = vmatpush1.bf16.msra.mxu0 %v6189_v29  ;;  %v6275_v29 = vld [vmem:[%s7541_s28 + $0x8e4] ss:$16 sps:$4 sm:$0xff]  }
 0x106   : > { %3761 = vmatpush1.bf16.msra.mxu1 %v6192_v30  ;;  %3721 = vmatprep.subr.bf16.mxu0 %v6197_v31  ;;  %v6278_v30 = vld [vmem:[%s7541_s28 + $0xae4] ss:$16 sps:$4 sm:$0xff]   ;;  %v7720_v31 = vpack.c.bf16 %v533_v27, %v533_v27  ;;  %v6345_v27 = vld [vmem:[%s7541_s28 + $0x960] ss:$16 sps:$4 sm:$0xff]  }
 0x107   : > { %3762 = vmatprep.subr.bf16.mxu1 %v6200_v32  ;;  %v7722_v32 = vpack.c.bf16 %v535_v28, %v535_v28  ;;  %v6348_v28 = vld [vmem:[%s7541_s28 + $0xb60] ss:$16 sps:$4 sm:$0xff]  }
 0x109   : > { %3722 = vmatpush1.bf16.msra.mxu0 %v6195_v33  ;;  %v6273_v33 = vld [vmem:[%s7541_s28 + $0x8e0] ss:$16 sps:$4 sm:$0xff]  }
 0x10a   : > { %3763 = vmatpush1.bf16.msra.mxu1 %v6198_v34  ;;  %3723 = vmatprep.subr.bf16.mxu0 %v6203_v35  ;;  %v6276_v34 = vld [vmem:[%s7541_s28 + $0xae0] ss:$16 sps:$4 sm:$0xff]   ;;  %v6281_v35 = vld [vmem:[%s7541_s28 + $0x8c4] ss:$16 sps:$4 sm:$0xff]  }
 0x10b   : > { %3764 = vmatprep.subr.bf16.mxu1 %v6206_v36  ;;  %v6284_v36 = vld [vmem:[%s7541_s28 + $0xac4] ss:$16 sps:$4 sm:$0xff]  }
 0x10d   : > { %3724 = vmatpush1.bf16.msra.mxu0 %v6201_v37  ;;  %v538_v37 = vld [vmem:[%s7534_s23 + $0x48] sm:$0xff] }
 0x10e   : > { %3765 = vmatpush1.bf16.msra.mxu1 %v6204_v38  ;;  %3725 = vmatprep.subr.bf16.mxu0 %v6209_v39  ;;  %v6279_v38 = vld [vmem:[%s7541_s28 + $0x8c0] ss:$16 sps:$4 sm:$0xff]  }
 0x10f   : > { %3766 = vmatprep.subr.bf16.mxu1 %v6212_v40  ;;  %v6282_v39 = vld [vmem:[%s7541_s28 + $0xac0] ss:$16 sps:$4 sm:$0xff]   ;;  %v7733_v40 = vpack.c.bf16 %v538_v37, %v538_v37 }
 0x110   : > { %v6357_v37 = vld [vmem:[%s7541_s28 + $0x920] ss:$16 sps:$4 sm:$0xff]  }
 0x111   : > { %3726 = vmatpush1.bf16.msra.mxu0 %v6207_v41  ;;  %v540_v41 = vld [vmem:[%s7534_s23 + $0x58] sm:$0xff] }
 0x112   : > { %3767 = vmatpush1.bf16.msra.mxu1 %v6210_v42  ;;  %3727 = vmatprep.subr.bf16.mxu0 %v6215_v43  ;;  %v6287_v42 = vld [vmem:[%s7541_s28 + $0x8a4] ss:$16 sps:$4 sm:$0xff]   ;;  %v7737_v43 = vpack.c.bf16 %v540_v41, %v540_v41 }
 0x113   : > { %3768 = vmatprep.subr.bf16.mxu1 %v6218_v44  ;;  %v6290_v44 = vld [vmem:[%s7541_s28 + $0xaa4] ss:$16 sps:$4 sm:$0xff]  }
 0x114   : > { %v6368_v41 = vld [vmem:[%s7541_s28 + $0xb04] ss:$16 sps:$4 sm:$0xff]  }
 0x115   : > { %3728 = vmatpush1.bf16.msra.mxu0 %v6213_v46  ;;  %v6288_v46 = vld [vmem:[%s7541_s28 + $0xaa0] ss:$16 sps:$4 sm:$0xff]  }
 0x116   : > { %3769 = vmatpush1.bf16.msra.mxu1 %v6216_v47  ;;  %3729 = vmatprep.subr.bf16.mxu0 %v6221_v50  ;;  %v6293_v47 = vld [vmem:[%s7541_s28 + $0x884] ss:$16 sps:$4 sm:$0xff]   ;;  %v6291_v50 = vld [vmem:[%s7541_s28 + $0x880] ss:$16 sps:$4 sm:$0xff]  }
 0x117   : > { %3770 = vmatprep.subr.bf16.mxu1 %v6224_v52  ;;  %v6294_v52 = vld [vmem:[%s7541_s28 + $0xa80] ss:$16 sps:$4 sm:$0xff]  }
 0x119   : > { %3730 = vmatpush1.bf16.msra.mxu0 %v6219_v53  ;;  %v6299_v53 = vld [vmem:[%s7541_s28 + $0x864] ss:$16 sps:$4 sm:$0xff]  }
 0x11a   : > { %3771 = vmatpush1.bf16.msra.mxu1 %v6222_v54  ;;  %3731 = vmatprep.subr.bf16.mxu0 %v6227_v55  ;;  %v6302_v54 = vld [vmem:[%s7541_s28 + $0xa64] ss:$16 sps:$4 sm:$0xff]   ;;  %v6297_v55 = vld [vmem:[%s7541_s28 + $0x860] ss:$16 sps:$4 sm:$0xff]  }
 0x11b   : > { %3772 = vmatprep.subr.bf16.mxu1 %v6230_v56  ;;  %v6300_v56 = vld [vmem:[%s7541_s28 + $0xa60] ss:$16 sps:$4 sm:$0xff]  }
 0x11d   : > { %3732 = vmatpush2.bf16.msra.mxu0 %v6225_v57  ;;  %v6305_v57 = vld [vmem:[%s7541_s28 + $0x844] ss:$16 sps:$4 sm:$0xff]  }
 0x11e   : > { %3773 = vmatpush2.bf16.msra.mxu1 %v6228_v58  ;;  %3733 = vmatprep.subr.bf16.mxu0 %v6233_v59  ;;  %v6308_v58 = vld [vmem:[%s7541_s28 + $0xa44] ss:$16 sps:$4 sm:$0xff]   ;;  %v6303_v59 = vld [vmem:[%s7541_s28 + $0x840] ss:$16 sps:$4 sm:$0xff]  }
 0x11f   : > { %3774 = vmatprep.subr.bf16.mxu1 %v6236_v61  ;;  %v6306_v61 = vld [vmem:[%s7541_s28 + $0xa40] ss:$16 sps:$4 sm:$0xff]  }
 0x121   : > { %3734 = vmatpush2.bf16.msra.mxu0 %v6231_v62  ;;  %v6311_v62 = vld [vmem:[%s7541_s28 + $0x824] ss:$16 sps:$4 sm:$0xff]  }
 0x122   : > { %3775 = vmatpush2.bf16.msra.mxu1 %v6234_v0  ;;  %3735 = vmatprep.subr.bf16.mxu0 %v6239_v1  ;;  %v6314_v0 = vld [vmem:[%s7541_s28 + $0xa24] ss:$16 sps:$4 sm:$0xff]   ;;  %v6309_v1 = vld [vmem:[%s7541_s28 + $0x820] ss:$16 sps:$4 sm:$0xff]  }
 0x123   : > { %3776 = vmatprep.subr.bf16.mxu1 %v6242_v2  ;;  %v6312_v2 = vld [vmem:[%s7541_s28 + $0xa20] ss:$16 sps:$4 sm:$0xff]  }
 0x125   : > { %3736 = vmatpush2.bf16.msra.mxu0 %v6237_v3  ;;  %v6317_v3 = vld [vmem:[%s7541_s28 + $0x804] ss:$16 sps:$4 sm:$0xff]  }
 0x126   : > { %3777 = vmatpush2.bf16.msra.mxu1 %v6240_v4  ;;  %3737 = vmatprep.subr.bf16.mxu0 %v6245_v5  ;;  %v6320_v4 = vld [vmem:[%s7541_s28 + $0xa04] ss:$16 sps:$4 sm:$0xff]   ;;  %v6315_v5 = vld [vmem:[%s7541_s28 + $0x800] ss:$16 sps:$4 sm:$0xff]  }
 0x127   : > { %3778 = vmatprep.subr.bf16.mxu1 %v6248_v6  ;;  %v6318_v6 = vld [vmem:[%s7541_s28 + $0xa00] ss:$16 sps:$4 sm:$0xff]  }
 0x129   : > { %3738 = vmatpush2.bf16.msra.mxu0 %v6243_v7  ;;  %v6323_v7 = vld [vmem:[%s7541_s28 + $0x9e4] ss:$16 sps:$4 sm:$0xff]  }
 0x12a   : > { %3779 = vmatpush2.bf16.msra.mxu1 %v6246_v8  ;;  %3739 = vmatprep.subr.bf16.mxu0 %v6251_v9  ;;  %v6326_v8 = vld [vmem:[%s7541_s28 + $0xbe4] ss:$16 sps:$4 sm:$0xff]   ;;  %v6321_v9 = vld [vmem:[%s7541_s28 + $0x9e0] ss:$16 sps:$4 sm:$0xff]  }
 0x12b   : > { %3780 = vmatprep.subr.bf16.mxu1 %v6254_v10  ;;  %v6324_v10 = vld [vmem:[%s7541_s28 + $0xbe0] ss:$16 sps:$4 sm:$0xff]  }
 0x12d   : > { %3740 = vmatpush2.bf16.msra.mxu0 %v6249_v11  ;;  %v6329_v11 = vld [vmem:[%s7541_s28 + $0x9c4] ss:$16 sps:$4 sm:$0xff]  }
 0x12e   : > { %3781 = vmatpush2.bf16.msra.mxu1 %v6252_v12  ;;  %3741 = vmatprep.subr.bf16.mxu0 %v6257_v13  ;;  %v6332_v12 = vld [vmem:[%s7541_s28 + $0xbc4] ss:$16 sps:$4 sm:$0xff]   ;;  %v6327_v13 = vld [vmem:[%s7541_s28 + $0x9c0] ss:$16 sps:$4 sm:$0xff]  }
 0x12f   : > { %3782 = vmatprep.subr.bf16.mxu1 %v6260_v14  ;;  %v6330_v14 = vld [vmem:[%s7541_s28 + $0xbc0] ss:$16 sps:$4 sm:$0xff]  }
 0x131   : > { %3742 = vmatpush2.bf16.msra.mxu0 %v6255_v15  ;;  %v6335_v15 = vld [vmem:[%s7541_s28 + $0x9a4] ss:$16 sps:$4 sm:$0xff]  }
 0x132   : > { %3783 = vmatpush2.bf16.msra.mxu1 %v6258_v16  ;;  %3743 = vmatprep.subr.bf16.mxu0 %v6263_v17  ;;  %v6338_v16 = vld [vmem:[%s7541_s28 + $0xba4] ss:$16 sps:$4 sm:$0xff]   ;;  %v6333_v17 = vld [vmem:[%s7541_s28 + $0x9a0] ss:$16 sps:$4 sm:$0xff]  }
 0x133   : > { %3784 = vmatprep.subr.bf16.mxu1 %v6266_v18  ;;  %v6336_v18 = vld [vmem:[%s7541_s28 + $0xba0] ss:$16 sps:$4 sm:$0xff]  }
 0x135   : > { %3744 = vmatpush2.bf16.msra.mxu0 %v6261_v21  ;;  %v6341_v21 = vld [vmem:[%s7541_s28 + $0x984] ss:$16 sps:$4 sm:$0xff]  }
 0x136   : > { %3785 = vmatpush2.bf16.msra.mxu1 %v6264_v22  ;;  %3745 = vmatprep.subr.bf16.mxu0 %v6269_v23  ;;  %v6344_v22 = vld [vmem:[%s7541_s28 + $0xb84] ss:$16 sps:$4 sm:$0xff]   ;;  %v6339_v23 = vld [vmem:[%s7541_s28 + $0x980] ss:$16 sps:$4 sm:$0xff]  }
 0x137   : > { %3786 = vmatprep.subr.bf16.mxu1 %v6272_v24  ;;  %v6342_v24 = vld [vmem:[%s7541_s28 + $0xb80] ss:$16 sps:$4 sm:$0xff]  }
 0x139   : > { %3746 = vmatpush2.bf16.msra.mxu0 %v6267_v25  ;;  %v6347_v25 = vld [vmem:[%s7541_s28 + $0x964] ss:$16 sps:$4 sm:$0xff]  }
 0x13a   : > { %3787 = vmatpush2.bf16.msra.mxu1 %v6270_v26  ;;  %3797 = vmatprep.subr.bf16.mxu0 %v6275_v29  ;;  %v6350_v26 = vld [vmem:[%s7541_s28 + $0xb64] ss:$16 sps:$4 sm:$0xff]  }
 0x13b   : > { %3838 = vmatprep.subr.bf16.mxu1 %v6278_v30  ;;  %v6353_v29 = vld [vmem:[%s7541_s28 + $0x944] ss:$16 sps:$4 sm:$0xff]  }
 0x13c   : > { %3748 = vmatmul.mubr.bf16.vlgmr.msra.gmra.mxu0 %v7720_v31  ;;  %v6356_v30 = vld [vmem:[%s7541_s28 + $0xb44] ss:$16 sps:$4 sm:$0xff]  }
 0x13d   : > { %3789 = vmatmul.mubr.bf16.vlgmr.msra.gmra.mxu1 %v7722_v32  ;;  %3798 = vmatpush1.bf16.msra.mxu0 %v6273_v33  ;;  %v6351_v33 = vld [vmem:[%s7541_s28 + $0x940] ss:$16 sps:$4 sm:$0xff]  }
 0x13e   : > { %3839 = vmatpush1.bf16.msra.mxu1 %v6276_v34  ;;  %3799 = vmatprep.subr.bf16.mxu0 %v6281_v35  ;;  %v6354_v34 = vld [vmem:[%s7541_s28 + $0xb40] ss:$16 sps:$4 sm:$0xff]   ;;  %v6359_v35 = vld [vmem:[%s7541_s28 + $0x924] ss:$16 sps:$4 sm:$0xff]  }
 0x13f   : > { %3840 = vmatprep.subr.bf16.mxu1 %v6284_v36  ;;  %3829 = vmatprep.mubr.bf16.mxu0 %v7733_v40  ;;  %v6362_v36 = vld [vmem:[%s7541_s28 + $0xb24] ss:$16 sps:$4 sm:$0xff]  }
 0x140   : > { %3870 = vmatprep.mubr.bf16.mxu1 %v7737_v43 }
 0x141   : > { %3800 = vmatpush1.bf16.msra.mxu0 %v6279_v38  ;;  %v6360_v38 = vld [vmem:[%s7541_s28 + $0xb20] ss:$16 sps:$4 sm:$0xff]  }
 0x142   : > { %3841 = vmatpush1.bf16.msra.mxu1 %v6282_v39  ;;  %3801 = vmatprep.subr.bf16.mxu0 %v6287_v42  ;;  %v6365_v39 = vld [vmem:[%s7541_s28 + $0x904] ss:$16 sps:$4 sm:$0xff]   ;;  %v6363_v42 = vld [vmem:[%s7541_s28 + $0x900] ss:$16 sps:$4 sm:$0xff]  }
 0x143   : > { %3842 = vmatprep.subr.bf16.mxu1 %v6290_v44  ;;  %v6366_v44 = vld [vmem:[%s7541_s28 + $0xb00] ss:$16 sps:$4 sm:$0xff]  }
 0x145   : > { %3802 = vmatpush1.bf16.msra.mxu0 %v6285_v45  ;;  %v537_v45 = vld [vmem:[%s7534_s23 + $0x40] sm:$0xff] }
 0x146   : > { %3843 = vmatpush1.bf16.msra.mxu1 %v6288_v46  ;;  %3803 = vmatprep.subr.bf16.mxu0 %v6293_v47  ;;  %v539_v46 = vld [vmem:[%s7534_s23 + $0x50] sm:$0xff] }
 0x147   : > { %3844 = vmatprep.subr.bf16.mxu1 %v6296_v49  ;;  %v6371_v47 = vld [vmem:[%s7541_s28 + $0xce4] ss:$16 sps:$4 sm:$0xff]  }
 0x148   : > { %v6374_v49 = vld [vmem:[%s7541_s28 + $0xee4] ss:$16 sps:$4 sm:$0xff]  }
 0x149   : > { %3804 = vmatpush1.bf16.msra.mxu0 %v6291_v50  ;;  %v6369_v50 = vld [vmem:[%s7541_s28 + $0xce0] ss:$16 sps:$4 sm:$0xff]  }
 0x14a   : > { %3845 = vmatpush1.bf16.msra.mxu1 %v6294_v52  ;;  %3805 = vmatprep.subr.bf16.mxu0 %v6299_v53  ;;  %v6372_v52 = vld [vmem:[%s7541_s28 + $0xee0] ss:$16 sps:$4 sm:$0xff]   ;;  %v7802_v53 = vpack.c.bf16 %v537_v45, %v537_v45 }
 0x14b   : > { %3846 = vmatprep.subr.bf16.mxu1 %v6302_v54  ;;  %v7804_v54 = vpack.c.bf16 %v539_v46, %v539_v46  ;;  %v6435_v45 = vld [vmem:[%s7541_s28 + $0xd80] ss:$16 sps:$4 sm:$0xff]  }
 0x14c   : > { %v6438_v46 = vld [vmem:[%s7541_s28 + $0xf80] ss:$16 sps:$4 sm:$0xff]  }
 0x14d   : > { %3806 = vmatpush1.bf16.msra.mxu0 %v6297_v55  ;;  %v542_v55 = vld [vmem:[%s7534_s23 + $0x68] sm:$0xff] }
 0x14e   : > { %3847 = vmatpush1.bf16.msra.mxu1 %v6300_v56  ;;  %3807 = vmatprep.subr.bf16.mxu0 %v6305_v57  ;;  %v544_v56 = vld [vmem:[%s7534_s23 + $0x78] sm:$0xff]  ;;  %v6377_v57 = vld [vmem:[%s7541_s28 + $0xcc4] ss:$16 sps:$4 sm:$0xff]  }
 0x14f   : > { %3848 = vmatprep.subr.bf16.mxu1 %v6308_v58  ;;  %v6380_v58 = vld [vmem:[%s7541_s28 + $0xec4] ss:$16 sps:$4 sm:$0xff]  }
 0x151   : > { %3808 = vmatpush1.bf16.msra.mxu0 %v6303_v59  ;;  %v7810_v59 = vpack.c.bf16 %v542_v55, %v542_v55  ;;  %v6449_v55 = vld [vmem:[%s7541_s28 + $0xd44] ss:$16 sps:$4 sm:$0xff]  }
 0x152   : > { %3849 = vmatpush1.bf16.msra.mxu1 %v6306_v61  ;;  %3809 = vmatprep.subr.bf16.mxu0 %v6311_v62  ;;  %v7812_v61 = vpack.c.bf16 %v544_v56, %v544_v56  ;;  %v6375_v62 = vld [vmem:[%s7541_s28 + $0xcc0] ss:$16 sps:$4 sm:$0xff]   ;;  %v6452_v56 = vld [vmem:[%s7541_s28 + $0xf44] ss:$16 sps:$4 sm:$0xff]  }
 0x153   : > { %3850 = vmatprep.subr.bf16.mxu1 %v6314_v0  ;;  %v6378_v0 = vld [vmem:[%s7541_s28 + $0xec0] ss:$16 sps:$4 sm:$0xff]  }
 0x155   : > { %3810 = vmatpush1.bf16.msra.mxu0 %v6309_v1  ;;  %v6383_v1 = vld [vmem:[%s7541_s28 + $0xca4] ss:$16 sps:$4 sm:$0xff]  }
 0x156   : > { %3851 = vmatpush1.bf16.msra.mxu1 %v6312_v2  ;;  %3811 = vmatprep.subr.bf16.mxu0 %v6317_v3  ;;  %v6386_v2 = vld [vmem:[%s7541_s28 + $0xea4] ss:$16 sps:$4 sm:$0xff]   ;;  %v6381_v3 = vld [vmem:[%s7541_s28 + $0xca0] ss:$16 sps:$4 sm:$0xff]  }
 0x157   : > { %3852 = vmatprep.subr.bf16.mxu1 %v6320_v4  ;;  %v6384_v4 = vld [vmem:[%s7541_s28 + $0xea0] ss:$16 sps:$4 sm:$0xff]  }
 0x159   : > { %3812 = vmatpush1.bf16.msra.mxu0 %v6315_v5  ;;  %v6389_v5 = vld [vmem:[%s7541_s28 + $0xc84] ss:$16 sps:$4 sm:$0xff]  }
 0x15a   : > { %3853 = vmatpush1.bf16.msra.mxu1 %v6318_v6  ;;  %3813 = vmatprep.subr.bf16.mxu0 %v6323_v7  ;;  %v6392_v6 = vld [vmem:[%s7541_s28 + $0xe84] ss:$16 sps:$4 sm:$0xff]   ;;  %v6387_v7 = vld [vmem:[%s7541_s28 + $0xc80] ss:$16 sps:$4 sm:$0xff]  }
 0x15b   : > { %3854 = vmatprep.subr.bf16.mxu1 %v6326_v8  ;;  %v6390_v8 = vld [vmem:[%s7541_s28 + $0xe80] ss:$16 sps:$4 sm:$0xff]  }
 0x15d   : > { %3814 = vmatpush2.bf16.msra.mxu0 %v6321_v9  ;;  %v6395_v9 = vld [vmem:[%s7541_s28 + $0xc64] ss:$16 sps:$4 sm:$0xff]  }
 0x15e   : > { %3855 = vmatpush2.bf16.msra.mxu1 %v6324_v10  ;;  %3815 = vmatprep.subr.bf16.mxu0 %v6329_v11  ;;  %v6398_v10 = vld [vmem:[%s7541_s28 + $0xe64] ss:$16 sps:$4 sm:$0xff]   ;;  %v6393_v11 = vld [vmem:[%s7541_s28 + $0xc60] ss:$16 sps:$4 sm:$0xff]  }
 0x15f   : > { %3856 = vmatprep.subr.bf16.mxu1 %v6332_v12  ;;  %v6396_v12 = vld [vmem:[%s7541_s28 + $0xe60] ss:$16 sps:$4 sm:$0xff]  }
 0x161   : > { %3816 = vmatpush2.bf16.msra.mxu0 %v6327_v13  ;;  %v6401_v13 = vld [vmem:[%s7541_s28 + $0xc44] ss:$16 sps:$4 sm:$0xff]  }
 0x162   : > { %3857 = vmatpush2.bf16.msra.mxu1 %v6330_v14  ;;  %3817 = vmatprep.subr.bf16.mxu0 %v6335_v15  ;;  %v6404_v14 = vld [vmem:[%s7541_s28 + $0xe44] ss:$16 sps:$4 sm:$0xff]   ;;  %v6399_v15 = vld [vmem:[%s7541_s28 + $0xc40] ss:$16 sps:$4 sm:$0xff]  }
 0x163   : > { %3858 = vmatprep.subr.bf16.mxu1 %v6338_v16  ;;  %v6402_v16 = vld [vmem:[%s7541_s28 + $0xe40] ss:$16 sps:$4 sm:$0xff]  }
 0x165   : > { %3818 = vmatpush2.bf16.msra.mxu0 %v6333_v17  ;;  %v6407_v17 = vld [vmem:[%s7541_s28 + $0xc24] ss:$16 sps:$4 sm:$0xff]  }
 0x166   : > { %3859 = vmatpush2.bf16.msra.mxu1 %v6336_v18  ;;  %3819 = vmatprep.subr.bf16.mxu0 %v6341_v21  ;;  %v6410_v18 = vld [vmem:[%s7541_s28 + $0xe24] ss:$16 sps:$4 sm:$0xff]   ;;  %v6405_v21 = vld [vmem:[%s7541_s28 + $0xc20] ss:$16 sps:$4 sm:$0xff]  }
 0x167   : > { %3860 = vmatprep.subr.bf16.mxu1 %v6344_v22  ;;  %v6408_v22 = vld [vmem:[%s7541_s28 + $0xe20] ss:$16 sps:$4 sm:$0xff]  }
 0x169   : > { %3820 = vmatpush2.bf16.msra.mxu0 %v6339_v23  ;;  %v6413_v23 = vld [vmem:[%s7541_s28 + $0xc04] ss:$16 sps:$4 sm:$0xff]  }
 0x16a   : > { %3861 = vmatpush2.bf16.msra.mxu1 %v6342_v24  ;;  %3821 = vmatprep.subr.bf16.mxu0 %v6347_v25  ;;  %v6416_v24 = vld [vmem:[%s7541_s28 + $0xe04] ss:$16 sps:$4 sm:$0xff]   ;;  %v6411_v25 = vld [vmem:[%s7541_s28 + $0xc00] ss:$16 sps:$4 sm:$0xff]  }
 0x16b   : > { %3862 = vmatprep.subr.bf16.mxu1 %v6350_v26  ;;  %v6414_v26 = vld [vmem:[%s7541_s28 + $0xe00] ss:$16 sps:$4 sm:$0xff]  }
 0x16d   : > { %3822 = vmatpush2.bf16.msra.mxu0 %v6345_v27  ;;  %v6419_v27 = vld [vmem:[%s7541_s28 + $0xde4] ss:$16 sps:$4 sm:$0xff]  }
 0x16e   : > { %3863 = vmatpush2.bf16.msra.mxu1 %v6348_v28  ;;  %3823 = vmatprep.subr.bf16.mxu0 %v6353_v29  ;;  %v6422_v28 = vld [vmem:[%s7541_s28 + $0xfe4] ss:$16 sps:$4 sm:$0xff]   ;;  %v6417_v29 = vld [vmem:[%s7541_s28 + $0xde0] ss:$16 sps:$4 sm:$0xff]  }
 0x16f   : > { %3864 = vmatprep.subr.bf16.mxu1 %v6356_v30  ;;  %v6420_v30 = vld [vmem:[%s7541_s28 + $0xfe0] ss:$16 sps:$4 sm:$0xff]  }
 0x171   : > { %3824 = vmatpush2.bf16.msra.mxu0 %v6351_v33  ;;  %v6425_v33 = vld [vmem:[%s7541_s28 + $0xdc4] ss:$16 sps:$4 sm:$0xff]  }
 0x172   : > { %3865 = vmatpush2.bf16.msra.mxu1 %v6354_v34  ;;  %3825 = vmatprep.subr.bf16.mxu0 %v6359_v35  ;;  %v6428_v34 = vld [vmem:[%s7541_s28 + $0xfc4] ss:$16 sps:$4 sm:$0xff]   ;;  %v6423_v35 = vld [vmem:[%s7541_s28 + $0xdc0] ss:$16 sps:$4 sm:$0xff]  }
 0x173   : > { %3866 = vmatprep.subr.bf16.mxu1 %v6362_v36  ;;  %v6426_v36 = vld [vmem:[%s7541_s28 + $0xfc0] ss:$16 sps:$4 sm:$0xff]  }
 0x175   : > { %3826 = vmatpush2.bf16.msra.mxu0 %v6357_v37  ;;  %v6431_v37 = vld [vmem:[%s7541_s28 + $0xda4] ss:$16 sps:$4 sm:$0xff]  }
 0x176   : > { %3867 = vmatpush2.bf16.msra.mxu1 %v6360_v38  ;;  %3827 = vmatprep.subr.bf16.mxu0 %v6365_v39  ;;  %v6434_v38 = vld [vmem:[%s7541_s28 + $0xfa4] ss:$16 sps:$4 sm:$0xff]   ;;  %v6429_v39 = vld [vmem:[%s7541_s28 + $0xda0] ss:$16 sps:$4 sm:$0xff]  }
 0x177   : > { %3868 = vmatprep.subr.bf16.mxu1 %v6368_v41  ;;  %v6432_v41 = vld [vmem:[%s7541_s28 + $0xfa0] ss:$16 sps:$4 sm:$0xff]  }
 0x179   : > { %3828 = vmatpush2.bf16.msra.mxu0 %v6363_v42  ;;  %v6437_v42 = vld [vmem:[%s7541_s28 + $0xd84] ss:$16 sps:$4 sm:$0xff]  }
 0x17a   : > { %3869 = vmatpush2.bf16.msra.mxu1 %v6366_v44  ;;  %3879 = vmatprep.subr.bf16.mxu0 %v6371_v47  ;;  %v6440_v44 = vld [vmem:[%s7541_s28 + $0xf84] ss:$16 sps:$4 sm:$0xff]  }
 0x17b   : > { %3920 = vmatprep.subr.bf16.mxu1 %v6374_v49  ;;  %v6443_v47 = vld [vmem:[%s7541_s28 + $0xd64] ss:$16 sps:$4 sm:$0xff]  }
 0x17c   : > { %3830 = vmatmul.mubr.bf16.vlgmr.msra.gmra.mxu0 %v7802_v53  ;;  %v6446_v49 = vld [vmem:[%s7541_s28 + $0xf64] ss:$16 sps:$4 sm:$0xff]  }
 0x17d   : > { %3871 = vmatmul.mubr.bf16.vlgmr.msra.gmra.mxu1 %v7804_v54  ;;  %3880 = vmatpush1.bf16.msra.mxu0 %v6369_v50  ;;  %v6441_v50 = vld [vmem:[%s7541_s28 + $0xd60] ss:$16 sps:$4 sm:$0xff]  }
 0x17e   : > { %3921 = vmatpush1.bf16.msra.mxu1 %v6372_v52  ;;  %3881 = vmatprep.subr.bf16.mxu0 %v6377_v57  ;;  %v6444_v52 = vld [vmem:[%s7541_s28 + $0xf60] ss:$16 sps:$4 sm:$0xff]  }
 0x17f   : > { %3922 = vmatprep.subr.bf16.mxu1 %v6380_v58  ;;  %3911 = vmatprep.mubr.bf16.mxu0 %v7810_v59  ;;  %v6447_v57 = vld [vmem:[%s7541_s28 + $0xd40] ss:$16 sps:$4 sm:$0xff]  }
 0x180   : > { %3952 = vmatprep.mubr.bf16.mxu1 %v7812_v61  ;;  %v6450_v58 = vld [vmem:[%s7541_s28 + $0xf40] ss:$16 sps:$4 sm:$0xff]  }
 0x181   : > { %3882 = vmatpush1.bf16.msra.mxu0 %v6375_v62  ;;  %v6455_v62 = vld [vmem:[%s7541_s28 + $0xd24] ss:$16 sps:$4 sm:$0xff]  }
 0x182   : > { %3923 = vmatpush1.bf16.msra.mxu1 %v6378_v0  ;;  %3883 = vmatprep.subr.bf16.mxu0 %v6383_v1  ;;  %v6458_v0 = vld [vmem:[%s7541_s28 + $0xf24] ss:$16 sps:$4 sm:$0xff]   ;;  %v6453_v1 = vld [vmem:[%s7541_s28 + $0xd20] ss:$16 sps:$4 sm:$0xff]  }
 0x183   : > { %3924 = vmatprep.subr.bf16.mxu1 %v6386_v2  ;;  %v6456_v2 = vld [vmem:[%s7541_s28 + $0xf20] ss:$16 sps:$4 sm:$0xff]  }
 0x185   : > { %3884 = vmatpush1.bf16.msra.mxu0 %v6381_v3  ;;  %v6461_v3 = vld [vmem:[%s7541_s28 + $0xd04] ss:$16 sps:$4 sm:$0xff]  }
 0x186   : > { %3925 = vmatpush1.bf16.msra.mxu1 %v6384_v4  ;;  %3885 = vmatprep.subr.bf16.mxu0 %v6389_v5  ;;  %v6464_v4 = vld [vmem:[%s7541_s28 + $0xf04] ss:$16 sps:$4 sm:$0xff]   ;;  %v6459_v5 = vld [vmem:[%s7541_s28 + $0xd00] ss:$16 sps:$4 sm:$0xff]  }
 0x187   : > { %3926 = vmatprep.subr.bf16.mxu1 %v6392_v6  ;;  %v6462_v6 = vld [vmem:[%s7541_s28 + $0xf00] ss:$16 sps:$4 sm:$0xff]  }
 0x189   : > { %3886 = vmatpush1.bf16.msra.mxu0 %v6387_v7  ;;  %v541_v7 = vld [vmem:[%s7534_s23 + $0x60] sm:$0xff] }
 0x18a   : > { %3927 = vmatpush1.bf16.msra.mxu1 %v6390_v8  ;;  %3887 = vmatprep.subr.bf16.mxu0 %v6395_v9  ;;  %v543_v8 = vld [vmem:[%s7534_s23 + $0x70] sm:$0xff]  ;;  %v6467_v9 = vld [vmem:[%s7541_s28 + $0xec] ss:$16 sps:$4 sm:$0xff]  }
 0x18b   : > { %3928 = vmatprep.subr.bf16.mxu1 %v6398_v10  ;;  %v6470_v10 = vld [vmem:[%s7541_s28 + $0x2ec] ss:$16 sps:$4 sm:$0xff]  }
 0x18d   : > { %3888 = vmatpush1.bf16.msra.mxu0 %v6393_v11  ;;  %v7880_v11 = vpack.c.bf16 %v541_v7, %v541_v7  ;;  %v6519_v7 = vld [vmem:[%s7541_s28 + $0x1c8] ss:$16 sps:$4 sm:$0xff]  }
 0x18e   : > { %3929 = vmatpush1.bf16.msra.mxu1 %v6396_v12  ;;  %3889 = vmatprep.subr.bf16.mxu0 %v6401_v13  ;;  %v7882_v12 = vpack.c.bf16 %v543_v8, %v543_v8  ;;  %v6465_v13 = vld [vmem:[%s7541_s28 + $0xe8] ss:$16 sps:$4 sm:$0xff]  }
 0x18f   : > { %3930 = vmatprep.subr.bf16.mxu1 %v6404_v14  ;;  %v6468_v14 = vld [vmem:[%s7541_s28 + $0x2e8] ss:$16 sps:$4 sm:$0xff]  }
 0x190   : > { %v6522_v8 = vld [vmem:[%s7541_s28 + $0x3c8] ss:$16 sps:$4 sm:$0xff]  }
 0x191   : > { %3890 = vmatpush1.bf16.msra.mxu0 %v6399_v15  ;;  %v6473_v15 = vld [vmem:[%s7541_s28 + $0xcc] ss:$16 sps:$4 sm:$0xff]  }
 0x192   : > { %3931 = vmatpush1.bf16.msra.mxu1 %v6402_v16  ;;  %3891 = vmatprep.subr.bf16.mxu0 %v6407_v17  ;;  %v6476_v16 = vld [vmem:[%s7541_s28 + $0x2cc] ss:$16 sps:$4 sm:$0xff]  }
 0x193   : > { %3932 = vmatprep.subr.bf16.mxu1 %v6410_v18 }
 0x195   : > { %3892 = vmatpush1.bf16.msra.mxu0 %v6405_v21  ;;  %v6471_v21 = vld [vmem:[%s7541_s28 + $0xc8] ss:$16 sps:$4 sm:$0xff]  }
 0x196   : > { %3933 = vmatpush1.bf16.msra.mxu1 %v6408_v22  ;;  %3893 = vmatprep.subr.bf16.mxu0 %v6413_v23  ;;  %v6474_v22 = vld [vmem:[%s7541_s28 + $0x2c8] ss:$16 sps:$4 sm:$0xff]  }
 0x197   : > { %3934 = vmatprep.subr.bf16.mxu1 %v6416_v24  ;;  %v6479_v24 = vld [vmem:[%s7541_s28 + $0xac] ss:$16 sps:$4 sm:$0xff]  }
 0x199   : > { %3894 = vmatpush1.bf16.msra.mxu0 %v6411_v25 }
 0x19a   : > { %3935 = vmatpush1.bf16.msra.mxu1 %v6414_v26  ;;  %3895 = vmatprep.subr.bf16.mxu0 %v6419_v27  ;;  %v6482_v27 = vld [vmem:[%s7541_s28 + $0x2ac] ss:$16 sps:$4 sm:$0xff]  }
 0x19b   : > { %3936 = vmatprep.subr.bf16.mxu1 %v6422_v28 }
 0x19d   : > { %3896 = vmatpush2.bf16.msra.mxu0 %v6417_v29 }
 0x19e   : > { %3937 = vmatpush2.bf16.msra.mxu1 %v6420_v30  ;;  %3897 = vmatprep.subr.bf16.mxu0 %v6425_v33  ;;  %v6477_v33 = vld [vmem:[%s7541_s28 + $0xa8] ss:$16 sps:$4 sm:$0xff]  }
 0x19f   : > { %3938 = vmatprep.subr.bf16.mxu1 %v6428_v34  ;;  %v6480_v34 = vld [vmem:[%s7541_s28 + $0x2a8] ss:$16 sps:$4 sm:$0xff]  }
 0x1a1   : > { %3898 = vmatpush2.bf16.msra.mxu0 %v6423_v35  ;;  %v6485_v35 = vld [vmem:[%s7541_s28 + $0x8c] ss:$16 sps:$4 sm:$0xff]  }
 0x1a2   : > { %3939 = vmatpush2.bf16.msra.mxu1 %v6426_v36  ;;  %3899 = vmatprep.subr.bf16.mxu0 %v6431_v37 }
 0x1a3   : > { %3940 = vmatprep.subr.bf16.mxu1 %v6434_v38  ;;  %v6488_v38 = vld [vmem:[%s7541_s28 + $0x28c] ss:$16 sps:$4 sm:$0xff]  }
 0x1a5   : > { %3900 = vmatpush2.bf16.msra.mxu0 %v6429_v39  ;;  %v6491_v39 = vld [vmem:[%s7541_s28 + $0x6c] ss:$16 sps:$4 sm:$0xff]  }
 0x1a6   : > { %3941 = vmatpush2.bf16.msra.mxu1 %v6432_v41  ;;  %3901 = vmatprep.subr.bf16.mxu0 %v6437_v42  ;;  %v6494_v41 = vld [vmem:[%s7541_s28 + $0x26c] ss:$16 sps:$4 sm:$0xff]   ;;  %v6489_v42 = vld [vmem:[%s7541_s28 + $0x68] ss:$16 sps:$4 sm:$0xff]  }
 0x1a7   : > { %3942 = vmatprep.subr.bf16.mxu1 %v6440_v44  ;;  %v6492_v44 = vld [vmem:[%s7541_s28 + $0x268] ss:$16 sps:$4 sm:$0xff]  }
 0x1a9   : > { %3902 = vmatpush2.bf16.msra.mxu0 %v6435_v45  ;;  %v6497_v45 = vld [vmem:[%s7541_s28 + $0x4c] ss:$16 sps:$4 sm:$0xff]  }
 0x1aa   : > { %3943 = vmatpush2.bf16.msra.mxu1 %v6438_v46  ;;  %3903 = vmatprep.subr.bf16.mxu0 %v6443_v47  ;;  %v6500_v46 = vld [vmem:[%s7541_s28 + $0x24c] ss:$16 sps:$4 sm:$0xff]   ;;  %v6495_v47 = vld [vmem:[%s7541_s28 + $0x48] ss:$16 sps:$4 sm:$0xff]  }
 0x1ab   : > { %3944 = vmatprep.subr.bf16.mxu1 %v6446_v49  ;;  %v6498_v49 = vld [vmem:[%s7541_s28 + $0x248] ss:$16 sps:$4 sm:$0xff]  }
 0x1ad   : > { %3904 = vmatpush2.bf16.msra.mxu0 %v6441_v50  ;;  %v6503_v50 = vld [vmem:[%s7541_s28 + $0x2c] ss:$16 sps:$4 sm:$0xff]  }
 0x1ae   : > { %3945 = vmatpush2.bf16.msra.mxu1 %v6444_v52  ;;  %3905 = vmatprep.subr.bf16.mxu0 %v6449_v55  ;;  %v6506_v52 = vld [vmem:[%s7541_s28 + $0x22c] ss:$16 sps:$4 sm:$0xff]   ;;  %v6501_v55 = vld [vmem:[%s7541_s28 + $0x28] ss:$16 sps:$4 sm:$0xff]  }
 0x1af   : > { %3946 = vmatprep.subr.bf16.mxu1 %v6452_v56  ;;  %v6504_v56 = vld [vmem:[%s7541_s28 + $0x228] ss:$16 sps:$4 sm:$0xff]  }
 0x1b1   : > { %3906 = vmatpush2.bf16.msra.mxu0 %v6447_v57  ;;  %v6509_v57 = vld [vmem:[%s7541_s28 + $0xc] ss:$16 sps:$4 sm:$0xff]  }
 0x1b2   : > { %3947 = vmatpush2.bf16.msra.mxu1 %v6450_v58  ;;  %3907 = vmatprep.subr.bf16.mxu0 %v6455_v62  ;;  %v6512_v58 = vld [vmem:[%s7541_s28 + $0x20c] ss:$16 sps:$4 sm:$0xff]   ;;  %v6507_v62 = vld [vmem:[%s7541_s28 + $0x8] ss:$16 sps:$4 sm:$0xff]  }
 0x1b3   : > { %3948 = vmatprep.subr.bf16.mxu1 %v6458_v0  ;;  %v6510_v0 = vld [vmem:[%s7541_s28 + $0x208] ss:$16 sps:$4 sm:$0xff]  }
 0x1b5   : > { %3908 = vmatpush2.bf16.msra.mxu0 %v6453_v1  ;;  %v6515_v1 = vld [vmem:[%s7541_s28 + $0x1ec] ss:$16 sps:$4 sm:$0xff]  }
 0x1b6   : > { %3949 = vmatpush2.bf16.msra.mxu1 %v6456_v2  ;;  %3909 = vmatprep.subr.bf16.mxu0 %v6461_v3  ;;  %v6518_v2 = vld [vmem:[%s7541_s28 + $0x3ec] ss:$16 sps:$4 sm:$0xff]   ;;  %v6513_v3 = vld [vmem:[%s7541_s28 + $0x1e8] ss:$16 sps:$4 sm:$0xff]  }
 0x1b7   : > { %3950 = vmatprep.subr.bf16.mxu1 %v6464_v4  ;;  %v6516_v4 = vld [vmem:[%s7541_s28 + $0x3e8] ss:$16 sps:$4 sm:$0xff]  }
 0x1b9   : > { %3910 = vmatpush2.bf16.msra.mxu0 %v6459_v5  ;;  %v6521_v5 = vld [vmem:[%s7541_s28 + $0x1cc] ss:$16 sps:$4 sm:$0xff]  }
 0x1ba   : > { %3951 = vmatpush2.bf16.msra.mxu1 %v6462_v6  ;;  %3961 = vmatprep.subr.bf16.mxu0 %v6467_v9  ;;  %v6524_v6 = vld [vmem:[%s7541_s28 + $0x3cc] ss:$16 sps:$4 sm:$0xff]  }
 0x1bb   : > { %4002 = vmatprep.subr.bf16.mxu1 %v6470_v10  ;;  %v6527_v9 = vld [vmem:[%s7541_s28 + $0x1ac] ss:$16 sps:$4 sm:$0xff]  }
 0x1bc   : > { %v3667_v17 = vpop.f32.mrf.mxu0  ;;  %3912 = vmatmul.mubr.bf16.vlgmr.msra.gmra.mxu0 %v7880_v11  ;;  %v6530_v10 = vld [vmem:[%s7541_s28 + $0x3ac] ss:$16 sps:$4 sm:$0xff]  }
 0x1bd   : > { %v3708_v18 = vpop.f32.mrf.mxu1  ;;  %3953 = vmatmul.mubr.bf16.vlgmr.msra.gmra.mxu1 %v7882_v12  ;;  %3962 = vmatpush1.bf16.msra.mxu0 %v6465_v13  ;;  %v6525_v13 = vld [vmem:[%s7541_s28 + $0x1a8] ss:$16 sps:$4 sm:$0xff]  }
 0x1be   : > { %v7892_v23 = vadd.f32 %v3708_v18, %v3667_v17  ;;  %4003 = vmatpush1.bf16.msra.mxu1 %v6468_v14  ;;  %v3669_v25 = vpop.f32.mrf.mxu0  ;;  %3963 = vmatprep.subr.bf16.mxu0 %v6473_v15  ;;  %v6528_v14 = vld [vmem:[%s7541_s28 + $0x3a8] ss:$16 sps:$4 sm:$0xff]   ;;  %v6533_v15 = vld [vmem:[%s7541_s28 + $0x18c] ss:$16 sps:$4 sm:$0xff]  }
 0x1bf   : > { %v3710_v26 = vpop.f32.mrf.mxu1  ;;  %4004 = vmatprep.subr.bf16.mxu1 %v6476_v16  ;;  %3993 = vmatprep.mubr.bf16.mxu0 %v7613_v60  ;;  %v6483_v60 = vld [vmem:[%s7541_s28 + $0x88] ss:$16 sps:$4 sm:$0xff]   ;;  %v6536_v16 = vld [vmem:[%s7541_s28 + $0x38c] ss:$16 sps:$4 sm:$0xff]  }
 0x1c0   : > { %v7896_v28 = vadd.f32 %v3710_v26, %v3669_v25  ;;  %4034 = vmatprep.mubr.bf16.mxu1 %v7617_v63  ;;  %v3671_v29 = vpop.f32.mrf.mxu0  ;;  %v6486_v63 = vld [vmem:[%s7541_s28 + $0x288] ss:$16 sps:$4 sm:$0xff]   ;;  %v6545_v26 = vld [vmem:[%s7541_s28 + $0x14c] ss:$16 sps:$4 sm:$0xff]  }
 0x1c1   : > { %v3712_v30 = vpop.f32.mrf.mxu1  ;;  %3964 = vmatpush1.bf16.msra.mxu0 %v6471_v21  ;;  %v6531_v17 = vld [vmem:[%s7541_s28 + $0x188] ss:$16 sps:$4 sm:$0xff]   ;;  %v6539_v21 = vld [vmem:[%s7541_s28 + $0x16c] ss:$16 sps:$4 sm:$0xff]  }
 0x1c2   : > { %4005 = vmatpush1.bf16.msra.mxu1 %v6474_v22  ;;  %v3672_v36 = vpop.f32.mrf.mxu0  ;;  %3965 = vmatprep.subr.bf16.mxu0 %v6479_v24  ;;  %v6534_v18 = vld [vmem:[%s7541_s28 + $0x388] ss:$16 sps:$4 sm:$0xff]   ;;  %v6542_v22 = vld [vmem:[%s7541_s28 + $0x36c] ss:$16 sps:$4 sm:$0xff]  }
 0x1c3   : > { %v3713_v37 = vpop.f32.mrf.mxu1  ;;  %4006 = vmatprep.subr.bf16.mxu1 %v6482_v27  ;;  %v6537_v24 = vld [vmem:[%s7541_s28 + $0x168] ss:$16 sps:$4 sm:$0xff]   ;;  %v6548_v27 = vld [vmem:[%s7541_s28 + $0x34c] ss:$16 sps:$4 sm:$0xff]  }
 0x1c4   : > { %v6540_v25 = vld [vmem:[%s7541_s28 + $0x368] ss:$16 sps:$4 sm:$0xff]   ;;  %v6557_v37 = vld [vmem:[%s7541_s28 + $0x10c] ss:$16 sps:$4 sm:$0xff]  }
 0x1c5   : > { %3966 = vmatpush1.bf16.msra.mxu0 %v6477_v33  ;;  %v6543_v29 = vld [vmem:[%s7541_s28 + $0x148] ss:$16 sps:$4 sm:$0xff]   ;;  %v6551_v33 = vld [vmem:[%s7541_s28 + $0x12c] ss:$16 sps:$4 sm:$0xff]  }
 0x1c6   : > { %4007 = vmatpush1.bf16.msra.mxu1 %v6480_v34  ;;  %3967 = vmatprep.subr.bf16.mxu0 %v6485_v35  ;;  %v6546_v30 = vld [vmem:[%s7541_s28 + $0x348] ss:$16 sps:$4 sm:$0xff]   ;;  %v6554_v34 = vld [vmem:[%s7541_s28 + $0x32c] ss:$16 sps:$4 sm:$0xff]  }
 0x1c7   : > { %4008 = vmatprep.subr.bf16.mxu1 %v6488_v38  ;;  %v6549_v35 = vld [vmem:[%s7541_s28 + $0x128] ss:$16 sps:$4 sm:$0xff]   ;;  %v6560_v38 = vld [vmem:[%s7541_s28 + $0x30c] ss:$16 sps:$4 sm:$0xff]  }
 0x1c8   : > { %v6552_v36 = vld [vmem:[%s7541_s28 + $0x328] ss:$16 sps:$4 sm:$0xff]  }
 0x1c9   : > { %3968 = vmatpush1.bf16.msra.mxu0 %v6483_v60  ;;  %v6555_v60 = vld [vmem:[%s7541_s28 + $0x108] ss:$16 sps:$4 sm:$0xff]  }
 0x1ca   : > { %4009 = vmatpush1.bf16.msra.mxu1 %v6486_v63  ;;  %3969 = vmatprep.subr.bf16.mxu0 %v6491_v39  ;;  %v6558_v63 = vld [vmem:[%s7541_s28 + $0x308] ss:$16 sps:$4 sm:$0xff]   ;;  %v6563_v39 = vld [vmem:[%s7541_s28 + $0x4ec] ss:$16 sps:$4 sm:$0xff]  }
 0x1cb   : > { %4010 = vmatprep.subr.bf16.mxu1 %v6494_v41  ;;  %v6566_v41 = vld [vmem:[%s7541_s28 + $0x6ec] ss:$16 sps:$4 sm:$0xff]  }
 0x1cd   : > { %3970 = vmatpush1.bf16.msra.mxu0 %v6489_v42  ;;  %v6561_v42 = vld [vmem:[%s7541_s28 + $0x4e8] ss:$16 sps:$4 sm:$0xff]  }
 0x1ce   : > { %4011 = vmatpush1.bf16.msra.mxu1 %v6492_v44  ;;  %3971 = vmatprep.subr.bf16.mxu0 %v6497_v45  ;;  %v6564_v44 = vld [vmem:[%s7541_s28 + $0x6e8] ss:$16 sps:$4 sm:$0xff]   ;;  %v6569_v45 = vld [vmem:[%s7541_s28 + $0x4cc] ss:$16 sps:$4 sm:$0xff]  }
 0x1cf   : > { %4012 = vmatprep.subr.bf16.mxu1 %v6500_v46  ;;  %v6572_v46 = vld [vmem:[%s7541_s28 + $0x6cc] ss:$16 sps:$4 sm:$0xff]  }
 0x1d1   : > { %3972 = vmatpush1.bf16.msra.mxu0 %v6495_v47  ;;  %v6567_v47 = vld [vmem:[%s7541_s28 + $0x4c8] ss:$16 sps:$4 sm:$0xff]  }
 0x1d2   : > { %4013 = vmatpush1.bf16.msra.mxu1 %v6498_v49  ;;  %3973 = vmatprep.subr.bf16.mxu0 %v6503_v50 }
 0x1d3   : > { %4014 = vmatprep.subr.bf16.mxu1 %v6506_v52 }
 0x1d5   : > { %3974 = vmatpush1.bf16.msra.mxu0 %v6501_v55  ;;  %v6570_v55 = vld [vmem:[%s7541_s28 + $0x6c8] ss:$16 sps:$4 sm:$0xff]  }
 0x1d6   : > { %4015 = vmatpush1.bf16.msra.mxu1 %v6504_v56  ;;  %3975 = vmatprep.subr.bf16.mxu0 %v6509_v57 }
 0x1d7   : > { %4016 = vmatprep.subr.bf16.mxu1 %v6512_v58  ;;  %v6575_v58 = vld [vmem:[%s7541_s28 + $0x4ac] ss:$16 sps:$4 sm:$0xff]  }
 0x1d9   : > { %3976 = vmatpush1.bf16.msra.mxu0 %v6507_v62  ;;  %v6578_v62 = vld [vmem:[%s7541_s28 + $0x6ac] ss:$16 sps:$4 sm:$0xff]  }
 0x1da   : > { %4017 = vmatpush1.bf16.msra.mxu1 %v6510_v0  ;;  %3977 = vmatprep.subr.bf16.mxu0 %v6515_v1 }
 0x1db   : > { %4018 = vmatprep.subr.bf16.mxu1 %v6518_v2  ;;  %v6573_v2 = vld [vmem:[%s7541_s28 + $0x4a8] ss:$16 sps:$4 sm:$0xff]  }
 0x1dd   : > { %3978 = vmatpush2.bf16.msra.mxu0 %v6513_v3  ;;  %v6576_v3 = vld [vmem:[%s7541_s28 + $0x6a8] ss:$16 sps:$4 sm:$0xff]  }
 0x1de   : > { %4019 = vmatpush2.bf16.msra.mxu1 %v6516_v4  ;;  %3979 = vmatprep.subr.bf16.mxu0 %v6521_v5 }
 0x1df   : > { %4020 = vmatprep.subr.bf16.mxu1 %v6524_v6  ;;  %v6582_v6 = vld [vmem:[%s7541_s28 + $0x688] ss:$16 sps:$4 sm:$0xff]  }
 0x1e1   : > { %3980 = vmatpush2.bf16.msra.mxu0 %v6519_v7  ;;  %v6587_v7 = vld [vmem:[%s7541_s28 + $0x46c] ss:$16 sps:$4 sm:$0xff]  }
 0x1e2   : > { %4021 = vmatpush2.bf16.msra.mxu1 %v6522_v8  ;;  %3981 = vmatprep.subr.bf16.mxu0 %v6527_v9  ;;  %v6590_v8 = vld [vmem:[%s7541_s28 + $0x66c] ss:$16 sps:$4 sm:$0xff]   ;;  %v6585_v9 = vld [vmem:[%s7541_s28 + $0x468] ss:$16 sps:$4 sm:$0xff]  }
 0x1e3   : > { %4022 = vmatprep.subr.bf16.mxu1 %v6530_v10  ;;  %v6588_v10 = vld [vmem:[%s7541_s28 + $0x668] ss:$16 sps:$4 sm:$0xff]  }
 0x1e5   : > { %3982 = vmatpush2.bf16.msra.mxu0 %v6525_v13  ;;  %v6593_v13 = vld [vmem:[%s7541_s28 + $0x44c] ss:$16 sps:$4 sm:$0xff]  }
 0x1e6   : > { %4023 = vmatpush2.bf16.msra.mxu1 %v6528_v14  ;;  %3983 = vmatprep.subr.bf16.mxu0 %v6533_v15  ;;  %v6596_v14 = vld [vmem:[%s7541_s28 + $0x64c] ss:$16 sps:$4 sm:$0xff]   ;;  %v6591_v15 = vld [vmem:[%s7541_s28 + $0x448] ss:$16 sps:$4 sm:$0xff]  }
 0x1e7   : > { %4024 = vmatprep.subr.bf16.mxu1 %v6536_v16  ;;  %v6594_v16 = vld [vmem:[%s7541_s28 + $0x648] ss:$16 sps:$4 sm:$0xff]  }
 0x1e9   : > { %3984 = vmatpush2.bf16.msra.mxu0 %v6531_v17  ;;  %v6599_v17 = vld [vmem:[%s7541_s28 + $0x42c] ss:$16 sps:$4 sm:$0xff]  }
 0x1ea   : > { %4025 = vmatpush2.bf16.msra.mxu1 %v6534_v18  ;;  %3985 = vmatprep.subr.bf16.mxu0 %v6539_v21  ;;  %v6602_v18 = vld [vmem:[%s7541_s28 + $0x62c] ss:$16 sps:$4 sm:$0xff]   ;;  %v6597_v21 = vld [vmem:[%s7541_s28 + $0x428] ss:$16 sps:$4 sm:$0xff]  }
 0x1eb   : > { %4026 = vmatprep.subr.bf16.mxu1 %v6542_v22  ;;  %v6600_v22 = vld [vmem:[%s7541_s28 + $0x628] ss:$16 sps:$4 sm:$0xff]  }
 0x1ed   : > { %3986 = vmatpush2.bf16.msra.mxu0 %v6537_v24  ;;  %v6605_v24 = vld [vmem:[%s7541_s28 + $0x40c] ss:$16 sps:$4 sm:$0xff]  }
 0x1ee   : > { %4027 = vmatpush2.bf16.msra.mxu1 %v6540_v25  ;;  %3987 = vmatprep.subr.bf16.mxu0 %v6545_v26  ;;  %v6608_v25 = vld [vmem:[%s7541_s28 + $0x60c] ss:$16 sps:$4 sm:$0xff]   ;;  %v6603_v26 = vld [vmem:[%s7541_s28 + $0x408] ss:$16 sps:$4 sm:$0xff]  }
 0x1ef   : > { %4028 = vmatprep.subr.bf16.mxu1 %v6548_v27  ;;  %v6606_v27 = vld [vmem:[%s7541_s28 + $0x608] ss:$16 sps:$4 sm:$0xff]  }
 0x1f1   : > { %3988 = vmatpush2.bf16.msra.mxu0 %v6543_v29  ;;  %v6611_v29 = vld [vmem:[%s7541_s28 + $0x5ec] ss:$16 sps:$4 sm:$0xff]  }
 0x1f2   : > { %4029 = vmatpush2.bf16.msra.mxu1 %v6546_v30  ;;  %3989 = vmatprep.subr.bf16.mxu0 %v6551_v33  ;;  %v6614_v30 = vld [vmem:[%s7541_s28 + $0x7ec] ss:$16 sps:$4 sm:$0xff]   ;;  %v6609_v33 = vld [vmem:[%s7541_s28 + $0x5e8] ss:$16 sps:$4 sm:$0xff]  }
 0x1f3   : > { %4030 = vmatprep.subr.bf16.mxu1 %v6554_v34  ;;  %v6612_v34 = vld [vmem:[%s7541_s28 + $0x7e8] ss:$16 sps:$4 sm:$0xff]  }
 0x1f5   : > { %3990 = vmatpush2.bf16.msra.mxu0 %v6549_v35  ;;  %v6617_v35 = vld [vmem:[%s7541_s28 + $0x5cc] ss:$16 sps:$4 sm:$0xff]  }
 0x1f6   : > { %4031 = vmatpush2.bf16.msra.mxu1 %v6552_v36  ;;  %3991 = vmatprep.subr.bf16.mxu0 %v6557_v37  ;;  %v6620_v36 = vld [vmem:[%s7541_s28 + $0x7cc] ss:$16 sps:$4 sm:$0xff]   ;;  %v6615_v37 = vld [vmem:[%s7541_s28 + $0x5c8] ss:$16 sps:$4 sm:$0xff]  }
 0x1f7   : > { %4032 = vmatprep.subr.bf16.mxu1 %v6560_v38  ;;  %v6618_v38 = vld [vmem:[%s7541_s28 + $0x7c8] ss:$16 sps:$4 sm:$0xff]  }
 0x1f9   : > { %3992 = vmatpush2.bf16.msra.mxu0 %v6555_v60  ;;  %v6623_v60 = vld [vmem:[%s7541_s28 + $0x5ac] ss:$16 sps:$4 sm:$0xff]  }
 0x1fa   : > { %4033 = vmatpush2.bf16.msra.mxu1 %v6558_v63  ;;  %4043 = vmatprep.subr.bf16.mxu0 %v6563_v39  ;;  %v6626_v63 = vld [vmem:[%s7541_s28 + $0x7ac] ss:$16 sps:$4 sm:$0xff]   ;;  %v6621_v39 = vld [vmem:[%s7541_s28 + $0x5a8] ss:$16 sps:$4 sm:$0xff]  }
 0x1fb   : > { %4084 = vmatprep.subr.bf16.mxu1 %v6566_v41  ;;  %v6624_v41 = vld [vmem:[%s7541_s28 + $0x7a8] ss:$16 sps:$4 sm:$0xff]  }
 0x1fc   : > { %v3749_v49 = vpop.f32.mrf.mxu0  ;;  %3994 = vmatmul.mubr.bf16.vlgmr.msra.gmra.mxu0 %v7640_v19 }
 0x1fd   : > { %v3790_v50 = vpop.f32.mrf.mxu1  ;;  %4035 = vmatmul.mubr.bf16.vlgmr.msra.gmra.mxu1 %v7642_v20  ;;  %v3750_v52 = vadd.f32 %v3749_v49, %v7892_v23  ;;  %4044 = vmatpush1.bf16.msra.mxu0 %v6561_v42  ;;  %v6629_v42 = vld [vmem:[%s7541_s28 + $0x58c] ss:$16 sps:$4 sm:$0xff]  }
 0x1fe   : > { %4085 = vmatpush1.bf16.msra.mxu1 %v6564_v44  ;;  %v3751_v56 = vpop.f32.mrf.mxu0  ;;  %4045 = vmatprep.subr.bf16.mxu0 %v6569_v45  ;;  %v6632_v44 = vld [vmem:[%s7541_s28 + $0x78c] ss:$16 sps:$4 sm:$0xff]   ;;  %v6627_v45 = vld [vmem:[%s7541_s28 + $0x588] ss:$16 sps:$4 sm:$0xff]  }
 0x1ff   : > { %v3792_v57 = vpop.f32.mrf.mxu1  ;;  %4086 = vmatprep.subr.bf16.mxu1 %v6572_v46  ;;  %v7967_v0 = vadd.f32 %v3790_v50, %v3750_v52  ;;  %v3752_v19 = vadd.f32 %v3751_v56, %v7896_v28  ;;  %4075 = vmatprep.mubr.bf16.mxu0 %v7673_v48  ;;  %v6581_v48 = vld [vmem:[%s7541_s28 + $0x48c] ss:$16 sps:$4 sm:$0xff]   ;;  %v6579_v28 = vld [vmem:[%s7541_s28 + $0x488] ss:$16 sps:$4 sm:$0xff]  }
 0x200   : > { %4116 = vmatprep.mubr.bf16.mxu1 %v7677_v51  ;;  %v3753_v20 = vpop.f32.mrf.mxu0  ;;  %v6584_v51 = vld [vmem:[%s7541_s28 + $0x68c] ss:$16 sps:$4 sm:$0xff]   ;;  %v6630_v46 = vld [vmem:[%s7541_s28 + $0x788] ss:$16 sps:$4 sm:$0xff]  }
 0x201   : > { %v3794_v23 = vpop.f32.mrf.mxu1  ;;  %v7972_v1 = vadd.f32 %v3792_v57, %v3752_v19  ;;  %4046 = vmatpush1.bf16.msra.mxu0 %v6567_v47  ;;  %v6635_v47 = vld [vmem:[%s7541_s28 + $0x56c] ss:$16 sps:$4 sm:$0xff]   ;;  %v6633_v50 = vld [vmem:[%s7541_s28 + $0x568] ss:$16 sps:$4 sm:$0xff]  }
 0x202   : > { %4087 = vmatpush1.bf16.msra.mxu1 %v6570_v55  ;;  %v3754_v4 = vpop.f32.mrf.mxu0  ;;  %4047 = vmatprep.subr.bf16.mxu0 %v6575_v58  ;;  %v6638_v49 = vld [vmem:[%s7541_s28 + $0x76c] ss:$16 sps:$4 sm:$0xff]   ;;  %v6636_v52 = vld [vmem:[%s7541_s28 + $0x768] ss:$16 sps:$4 sm:$0xff]  }
 0x203   : > { %v3795_v5 = vpop.f32.mrf.mxu1  ;;  %4088 = vmatprep.subr.bf16.mxu1 %v6578_v62  ;;  %v6641_v55 = vld [vmem:[%s7541_s28 + $0x54c] ss:$16 sps:$4 sm:$0xff]   ;;  %v6639_v57 = vld [vmem:[%s7541_s28 + $0x548] ss:$16 sps:$4 sm:$0xff]  }
 0x204   : > { %v6644_v56 = vld [vmem:[%s7541_s28 + $0x74c] ss:$16 sps:$4 sm:$0xff]   ;;  %v6642_v58 = vld [vmem:[%s7541_s28 + $0x748] ss:$16 sps:$4 sm:$0xff]  }
 0x205   : > { %4048 = vmatpush1.bf16.msra.mxu0 %v6573_v2  ;;  %v6647_v62 = vld [vmem:[%s7541_s28 + $0x52c] ss:$16 sps:$4 sm:$0xff]   ;;  %v6645_v20 = vld [vmem:[%s7541_s28 + $0x528] ss:$16 sps:$4 sm:$0xff]  }
 0x206   : > { %4089 = vmatpush1.bf16.msra.mxu1 %v6576_v3  ;;  %4049 = vmatprep.subr.bf16.mxu0 %v6581_v48  ;;  %v6650_v19 = vld [vmem:[%s7541_s28 + $0x72c] ss:$16 sps:$4 sm:$0xff]   ;;  %v6648_v23 = vld [vmem:[%s7541_s28 + $0x728] ss:$16 sps:$4 sm:$0xff]  }
 0x207   : > { %4090 = vmatprep.subr.bf16.mxu1 %v6584_v51  ;;  %v6653_v2 = vld [vmem:[%s7541_s28 + $0x50c] ss:$16 sps:$4 sm:$0xff]   ;;  %v6651_v4 = vld [vmem:[%s7541_s28 + $0x508] ss:$16 sps:$4 sm:$0xff]  }
 0x208   : > { %v6656_v3 = vld [vmem:[%s7541_s28 + $0x70c] ss:$16 sps:$4 sm:$0xff]   ;;  %v6654_v5 = vld [vmem:[%s7541_s28 + $0x708] ss:$16 sps:$4 sm:$0xff]  }
 0x209   : > { %4050 = vmatpush1.bf16.msra.mxu0 %v6579_v28  ;;  %v6659_v48 = vld [vmem:[%s7541_s28 + $0x8ec] ss:$16 sps:$4 sm:$0xff]   ;;  %v6657_v28 = vld [vmem:[%s7541_s28 + $0x8e8] ss:$16 sps:$4 sm:$0xff]  }
 0x20a   : > { %4091 = vmatpush1.bf16.msra.mxu1 %v6582_v6  ;;  %4051 = vmatprep.subr.bf16.mxu0 %v6587_v7  ;;  %v6662_v51 = vld [vmem:[%s7541_s28 + $0xaec] ss:$16 sps:$4 sm:$0xff]   ;;  %v6660_v6 = vld [vmem:[%s7541_s28 + $0xae8] ss:$16 sps:$4 sm:$0xff]  }
 0x20b   : > { %4092 = vmatprep.subr.bf16.mxu1 %v6590_v8  ;;  %v6665_v7 = vld [vmem:[%s7541_s28 + $0x8cc] ss:$16 sps:$4 sm:$0xff]  }
 0x20c   : > { %v6668_v8 = vld [vmem:[%s7541_s28 + $0xacc] ss:$16 sps:$4 sm:$0xff]  }
 0x20d   : > { %4052 = vmatpush1.bf16.msra.mxu0 %v6585_v9 }
 0x20e   : > { %4093 = vmatpush1.bf16.msra.mxu1 %v6588_v10  ;;  %4053 = vmatprep.subr.bf16.mxu0 %v6593_v13  ;;  %v6663_v13 = vld [vmem:[%s7541_s28 + $0x8c8] ss:$16 sps:$4 sm:$0xff]  }
 0x20f   : > { %4094 = vmatprep.subr.bf16.mxu1 %v6596_v14  ;;  %v6666_v14 = vld [vmem:[%s7541_s28 + $0xac8] ss:$16 sps:$4 sm:$0xff]  }
 0x211   : > { %4054 = vmatpush1.bf16.msra.mxu0 %v6591_v15 }
 0x212   : > { %4095 = vmatpush1.bf16.msra.mxu1 %v6594_v16  ;;  %4055 = vmatprep.subr.bf16.mxu0 %v6599_v17  ;;  %v6671_v17 = vld [vmem:[%s7541_s28 + $0x8ac] ss:$16 sps:$4 sm:$0xff]  }
 0x213   : > { %4096 = vmatprep.subr.bf16.mxu1 %v6602_v18  ;;  %v6674_v18 = vld [vmem:[%s7541_s28 + $0xaac] ss:$16 sps:$4 sm:$0xff]  }
 0x215   : > { %4056 = vmatpush1.bf16.msra.mxu0 %v6597_v21  ;;  %v6669_v21 = vld [vmem:[%s7541_s28 + $0x8a8] ss:$16 sps:$4 sm:$0xff]  }
 0x216   : > { %4097 = vmatpush1.bf16.msra.mxu1 %v6600_v22  ;;  %4057 = vmatprep.subr.bf16.mxu0 %v6605_v24  ;;  %v6672_v22 = vld [vmem:[%s7541_s28 + $0xaa8] ss:$16 sps:$4 sm:$0xff]  }
 0x217   : > { %4098 = vmatprep.subr.bf16.mxu1 %v6608_v25 }
 0x219   : > { %4058 = vmatpush1.bf16.msra.mxu0 %v6603_v26  ;;  %v6677_v26 = vld [vmem:[%s7541_s28 + $0x88c] ss:$16 sps:$4 sm:$0xff]  }
 0x21a   : > { %4099 = vmatpush1.bf16.msra.mxu1 %v6606_v27  ;;  %4059 = vmatprep.subr.bf16.mxu0 %v6611_v29  ;;  %v6678_v27 = vld [vmem:[%s7541_s28 + $0xa88] ss:$16 sps:$4 sm:$0xff]   ;;  %v6683_v29 = vld [vmem:[%s7541_s28 + $0x86c] ss:$16 sps:$4 sm:$0xff]  }
 0x21b   : > { %4100 = vmatprep.subr.bf16.mxu1 %v6614_v30  ;;  %v6686_v30 = vld [vmem:[%s7541_s28 + $0xa6c] ss:$16 sps:$4 sm:$0xff]  }
 0x21d   : > { %4060 = vmatpush2.bf16.msra.mxu0 %v6609_v33  ;;  %v6681_v33 = vld [vmem:[%s7541_s28 + $0x868] ss:$16 sps:$4 sm:$0xff]  }
 0x21e   : > { %4101 = vmatpush2.bf16.msra.mxu1 %v6612_v34  ;;  %4061 = vmatprep.subr.bf16.mxu0 %v6617_v35  ;;  %v6684_v34 = vld [vmem:[%s7541_s28 + $0xa68] ss:$16 sps:$4 sm:$0xff]   ;;  %v6689_v35 = vld [vmem:[%s7541_s28 + $0x84c] ss:$16 sps:$4 sm:$0xff]  }
 0x21f   : > { %4102 = vmatprep.subr.bf16.mxu1 %v6620_v36  ;;  %v6692_v36 = vld [vmem:[%s7541_s28 + $0xa4c] ss:$16 sps:$4 sm:$0xff]  }
 0x221   : > { %4062 = vmatpush2.bf16.msra.mxu0 %v6615_v37  ;;  %v6687_v37 = vld [vmem:[%s7541_s28 + $0x848] ss:$16 sps:$4 sm:$0xff]  }
 0x222   : > { %4103 = vmatpush2.bf16.msra.mxu1 %v6618_v38  ;;  %4063 = vmatprep.subr.bf16.mxu0 %v6623_v60  ;;  %v6690_v38 = vld [vmem:[%s7541_s28 + $0xa48] ss:$16 sps:$4 sm:$0xff]   ;;  %v6695_v60 = vld [vmem:[%s7541_s28 + $0x82c] ss:$16 sps:$4 sm:$0xff]  }
 0x223   : > { %4104 = vmatprep.subr.bf16.mxu1 %v6626_v63  ;;  %v6698_v63 = vld [vmem:[%s7541_s28 + $0xa2c] ss:$16 sps:$4 sm:$0xff]  }
 0x225   : > { %4064 = vmatpush2.bf16.msra.mxu0 %v6621_v39  ;;  %v6693_v39 = vld [vmem:[%s7541_s28 + $0x828] ss:$16 sps:$4 sm:$0xff]  }
 0x226   : > { %4105 = vmatpush2.bf16.msra.mxu1 %v6624_v41  ;;  %4065 = vmatprep.subr.bf16.mxu0 %v6629_v42  ;;  %v6696_v41 = vld [vmem:[%s7541_s28 + $0xa28] ss:$16 sps:$4 sm:$0xff]   ;;  %v6701_v42 = vld [vmem:[%s7541_s28 + $0x80c] ss:$16 sps:$4 sm:$0xff]  }
 0x227   : > { %4106 = vmatprep.subr.bf16.mxu1 %v6632_v44  ;;  %v6704_v44 = vld [vmem:[%s7541_s28 + $0xa0c] ss:$16 sps:$4 sm:$0xff]  }
 0x229   : > { %4066 = vmatpush2.bf16.msra.mxu0 %v6627_v45  ;;  %v6699_v45 = vld [vmem:[%s7541_s28 + $0x808] ss:$16 sps:$4 sm:$0xff]  }
 0x22a   : > { %4107 = vmatpush2.bf16.msra.mxu1 %v6630_v46  ;;  %4067 = vmatprep.subr.bf16.mxu0 %v6635_v47  ;;  %v6702_v46 = vld [vmem:[%s7541_s28 + $0xa08] ss:$16 sps:$4 sm:$0xff]   ;;  %v6707_v47 = vld [vmem:[%s7541_s28 + $0x9ec] ss:$16 sps:$4 sm:$0xff]  }
 0x22b   : > { %4108 = vmatprep.subr.bf16.mxu1 %v6638_v49  ;;  %v6710_v49 = vld [vmem:[%s7541_s28 + $0xbec] ss:$16 sps:$4 sm:$0xff]  }
 0x22d   : > { %4068 = vmatpush2.bf16.msra.mxu0 %v6633_v50  ;;  %v6705_v50 = vld [vmem:[%s7541_s28 + $0x9e8] ss:$16 sps:$4 sm:$0xff]  }
 0x22e   : > { %4109 = vmatpush2.bf16.msra.mxu1 %v6636_v52  ;;  %4069 = vmatprep.subr.bf16.mxu0 %v6641_v55  ;;  %v6708_v52 = vld [vmem:[%s7541_s28 + $0xbe8] ss:$16 sps:$4 sm:$0xff]   ;;  %v6713_v55 = vld [vmem:[%s7541_s28 + $0x9cc] ss:$16 sps:$4 sm:$0xff]  }
 0x22f   : > { %4110 = vmatprep.subr.bf16.mxu1 %v6644_v56  ;;  %v6716_v56 = vld [vmem:[%s7541_s28 + $0xbcc] ss:$16 sps:$4 sm:$0xff]  }
 0x231   : > { %4070 = vmatpush2.bf16.msra.mxu0 %v6639_v57  ;;  %v6711_v57 = vld [vmem:[%s7541_s28 + $0x9c8] ss:$16 sps:$4 sm:$0xff]  }
 0x232   : > { %4111 = vmatpush2.bf16.msra.mxu1 %v6642_v58  ;;  %4071 = vmatprep.subr.bf16.mxu0 %v6647_v62  ;;  %v6714_v58 = vld [vmem:[%s7541_s28 + $0xbc8] ss:$16 sps:$4 sm:$0xff]   ;;  %v6719_v62 = vld [vmem:[%s7541_s28 + $0x9ac] ss:$16 sps:$4 sm:$0xff]  }
 0x233   : > { %4112 = vmatprep.subr.bf16.mxu1 %v6650_v19  ;;  %v6722_v19 = vld [vmem:[%s7541_s28 + $0xbac] ss:$16 sps:$4 sm:$0xff]  }
 0x235   : > { %4072 = vmatpush2.bf16.msra.mxu0 %v6645_v20  ;;  %v6717_v20 = vld [vmem:[%s7541_s28 + $0x9a8] ss:$16 sps:$4 sm:$0xff]  }
 0x236   : > { %4113 = vmatpush2.bf16.msra.mxu1 %v6648_v23  ;;  %4073 = vmatprep.subr.bf16.mxu0 %v6653_v2  ;;  %v6720_v23 = vld [vmem:[%s7541_s28 + $0xba8] ss:$16 sps:$4 sm:$0xff]   ;;  %v6725_v2 = vld [vmem:[%s7541_s28 + $0x98c] ss:$16 sps:$4 sm:$0xff]  }
 0x237   : > { %4114 = vmatprep.subr.bf16.mxu1 %v6656_v3  ;;  %v6728_v3 = vld [vmem:[%s7541_s28 + $0xb8c] ss:$16 sps:$4 sm:$0xff]  }
 0x239   : > { %4074 = vmatpush2.bf16.msra.mxu0 %v6651_v4  ;;  %v6723_v4 = vld [vmem:[%s7541_s28 + $0x988] ss:$16 sps:$4 sm:$0xff]  }
 0x23a   : > { %4115 = vmatpush2.bf16.msra.mxu1 %v6654_v5  ;;  %4125 = vmatprep.subr.bf16.mxu0 %v6659_v48  ;;  %v6726_v5 = vld [vmem:[%s7541_s28 + $0xb88] ss:$16 sps:$4 sm:$0xff]   ;;  %v6731_v48 = vld [vmem:[%s7541_s28 + $0x96c] ss:$16 sps:$4 sm:$0xff]  }
 0x23b   : > { %4166 = vmatprep.subr.bf16.mxu1 %v6662_v51  ;;  %v6734_v51 = vld [vmem:[%s7541_s28 + $0xb6c] ss:$16 sps:$4 sm:$0xff]  }
 0x23c   : > { %v8034_v9 = vpop.f32.mrf.mxu0  ;;  %4076 = vmatmul.mubr.bf16.vlgmr.msra.gmra.mxu0 %v7720_v31 }
 0x23d   : > { %v8036_v10 = vpop.f32.mrf.mxu1  ;;  %4117 = vmatmul.mubr.bf16.vlgmr.msra.gmra.mxu1 %v7722_v32  ;;  %4126 = vmatpush1.bf16.msra.mxu0 %v6657_v28  ;;  %v6729_v28 = vld [vmem:[%s7541_s28 + $0x968] ss:$16 sps:$4 sm:$0xff]  }
 0x23e   : > { %4167 = vmatpush1.bf16.msra.mxu1 %v6660_v6  ;;  %v8042_v15 = vpop.f32.mrf.mxu0  ;;  %4127 = vmatprep.subr.bf16.mxu0 %v6665_v7  ;;  %v6732_v6 = vld [vmem:[%s7541_s28 + $0xb68] ss:$16 sps:$4 sm:$0xff]   ;;  %v6737_v7 = vld [vmem:[%s7541_s28 + $0x94c] ss:$16 sps:$4 sm:$0xff]  }
 0x23f   : > { %v8044_v16 = vpop.f32.mrf.mxu1  ;;  %4168 = vmatprep.subr.bf16.mxu1 %v6668_v8  ;;  %4157 = vmatprep.mubr.bf16.mxu0 %v7733_v40  ;;  %v6680_v40 = vld [vmem:[%s7541_s28 + $0xa8c] ss:$16 sps:$4 sm:$0xff]  }
 0x240   : > { %4198 = vmatprep.mubr.bf16.mxu1 %v7737_v43  ;;  %v3835_v31 = vpop.f32.mrf.mxu0  ;;  %v6675_v43 = vld [vmem:[%s7541_s28 + $0x888] ss:$16 sps:$4 sm:$0xff]   ;;  %v6740_v8 = vld [vmem:[%s7541_s28 + $0xb4c] ss:$16 sps:$4 sm:$0xff]  }
 0x241   : > { %v3876_v32 = vpop.f32.mrf.mxu1  ;;  %4128 = vmatpush1.bf16.msra.mxu0 %v6663_v13  ;;  %v6735_v13 = vld [vmem:[%s7541_s28 + $0x948] ss:$16 sps:$4 sm:$0xff]  }
 0x242   : > { %4169 = vmatpush1.bf16.msra.mxu1 %v6666_v14  ;;  %v3836_v24 = vpop.f32.mrf.mxu0  ;;  %4129 = vmatprep.subr.bf16.mxu0 %v6671_v17  ;;  %v6738_v14 = vld [vmem:[%s7541_s28 + $0xb48] ss:$16 sps:$4 sm:$0xff]   ;;  %v6743_v17 = vld [vmem:[%s7541_s28 + $0x92c] ss:$16 sps:$4 sm:$0xff]  }
 0x243   : > { %v3877_v25 = vpop.f32.mrf.mxu1  ;;  %4170 = vmatprep.subr.bf16.mxu1 %v6674_v18  ;;  %v6746_v18 = vld [vmem:[%s7541_s28 + $0xb2c] ss:$16 sps:$4 sm:$0xff]   ;;  %v6741_v31 = vld [vmem:[%s7541_s28 + $0x928] ss:$16 sps:$4 sm:$0xff]  }
 0x244   : > { %v6744_v32 = vld [vmem:[%s7541_s28 + $0xb28] ss:$16 sps:$4 sm:$0xff]  }
 0x245   : > { %4130 = vmatpush1.bf16.msra.mxu0 %v6669_v21  ;;  %v6749_v21 = vld [vmem:[%s7541_s28 + $0x90c] ss:$16 sps:$4 sm:$0xff]   ;;  %v6747_v24 = vld [vmem:[%s7541_s28 + $0x908] ss:$16 sps:$4 sm:$0xff]  }
 0x246   : > { %4171 = vmatpush1.bf16.msra.mxu1 %v6672_v22  ;;  %4131 = vmatprep.subr.bf16.mxu0 %v6677_v26  ;;  %v6752_v22 = vld [vmem:[%s7541_s28 + $0xb0c] ss:$16 sps:$4 sm:$0xff]   ;;  %v6750_v25 = vld [vmem:[%s7541_s28 + $0xb08] ss:$16 sps:$4 sm:$0xff]  }
 0x247   : > { %4172 = vmatprep.subr.bf16.mxu1 %v6680_v40  ;;  %v6755_v26 = vld [vmem:[%s7541_s28 + $0xcec] ss:$16 sps:$4 sm:$0xff]  }
 0x248   : > { %v6758_v40 = vld [vmem:[%s7541_s28 + $0xeec] ss:$16 sps:$4 sm:$0xff]  }
 0x249   : > { %4132 = vmatpush1.bf16.msra.mxu0 %v6675_v43  ;;  %v3832_v43 = vadd.f32 %v8034_v9, %v7967_v0  ;;  %v6759_v9 = vld [vmem:[%s7541_s28 + $0xcc8] ss:$16 sps:$4 sm:$0xff]  }
 0x24a   : > { %4173 = vmatpush1.bf16.msra.mxu1 %v6678_v27  ;;  %4133 = vmatprep.subr.bf16.mxu0 %v6683_v29  ;;  %v3834_v27 = vadd.f32 %v8042_v15, %v7972_v1  ;;  %v6753_v29 = vld [vmem:[%s7541_s28 + $0xce8] ss:$16 sps:$4 sm:$0xff]  }
 0x24b   : > { %4174 = vmatprep.subr.bf16.mxu1 %v6686_v30  ;;  %v6756_v30 = vld [vmem:[%s7541_s28 + $0xee8] ss:$16 sps:$4 sm:$0xff]  }
 0x24c   : > { %v3875_v0 = vadd.f32 %v8044_v16, %v3834_v27  ;;  %v6762_v15 = vld [vmem:[%s7541_s28 + $0xec8] ss:$16 sps:$4 sm:$0xff]   ;;  %v6824_v27 = vld [vmem:[%s7541_s28 + $0xf8c] ss:$16 sps:$4 sm:$0xff]  }
 0x24d   : > { %4134 = vmatpush1.bf16.msra.mxu0 %v6681_v33  ;;  %v6761_v33 = vld [vmem:[%s7541_s28 + $0xccc] ss:$16 sps:$4 sm:$0xff]  }
 0x24e   : > { %4175 = vmatpush1.bf16.msra.mxu1 %v6684_v34  ;;  %4135 = vmatprep.subr.bf16.mxu0 %v6689_v35  ;;  %v6764_v34 = vld [vmem:[%s7541_s28 + $0xecc] ss:$16 sps:$4 sm:$0xff]   ;;  %v3873_v35 = vadd.f32 %v8036_v10, %v3832_v43 }
 0x24f   : > { %4176 = vmatprep.subr.bf16.mxu1 %v6692_v36  ;;  %v6767_v10 = vld [vmem:[%s7541_s28 + $0xcac] ss:$16 sps:$4 sm:$0xff]  }
 0x250   : > { %v6821_v43 = vld [vmem:[%s7541_s28 + $0xd8c] ss:$16 sps:$4 sm:$0xff]  }
 0x251   : > { %4136 = vmatpush1.bf16.msra.mxu0 %v6687_v37 }
 0x252   : > { %4177 = vmatpush1.bf16.msra.mxu1 %v6690_v38  ;;  %4137 = vmatprep.subr.bf16.mxu0 %v6695_v60  ;;  %v525_v38 = vld [vmem:[#allocation2 + $0x10] sm:$0xff] }
 0x253   : > { %4178 = vmatprep.subr.bf16.mxu1 %v6698_v63 }
 0x255   : > { %4138 = vmatpush1.bf16.msra.mxu0 %v6693_v39  ;;  %v6770_v39 = vld [vmem:[%s7541_s28 + $0xeac] ss:$16 sps:$4 sm:$0xff]  }
 0x256   : > { %4179 = vmatpush1.bf16.msra.mxu1 %v6696_v41  ;;  %4139 = vmatprep.subr.bf16.mxu0 %v6701_v42 }
 0x257   : > { %4180 = vmatprep.subr.bf16.mxu1 %v6704_v44 }
 0x259   : > { %4140 = vmatpush1.bf16.msra.mxu0 %v6699_v45 }
 0x25a   : > { %4181 = vmatpush1.bf16.msra.mxu1 %v6702_v46  ;;  %4141 = vmatprep.subr.bf16.mxu0 %v6707_v47  ;;  %v6765_v46 = vld [vmem:[%s7541_s28 + $0xca8] ss:$16 sps:$4 sm:$0xff]  }
 0x25b   : > { %4182 = vmatprep.subr.bf16.mxu1 %v6710_v49  ;;  %v6768_v47 = vld [vmem:[%s7541_s28 + $0xea8] ss:$16 sps:$4 sm:$0xff]  }
 0x25d   : > { %4142 = vmatpush2.bf16.msra.mxu0 %v6705_v50 }
 0x25e   : > { %4183 = vmatpush2.bf16.msra.mxu1 %v6708_v52  ;;  %4143 = vmatprep.subr.bf16.mxu0 %v6713_v55  ;;  %v6771_v55 = vld [vmem:[%s7541_s28 + $0xc88] ss:$16 sps:$4 sm:$0xff]  }
 0x25f   : > { %4184 = vmatprep.subr.bf16.mxu1 %v6716_v56  ;;  %v6774_v56 = vld [vmem:[%s7541_s28 + $0xe88] ss:$16 sps:$4 sm:$0xff]  }
 0x261   : > { %4144 = vmatpush2.bf16.msra.mxu0 %v6711_v57  ;;  %v6779_v57 = vld [vmem:[%s7541_s28 + $0xc6c] ss:$16 sps:$4 sm:$0xff]  }
 0x262   : > { %4185 = vmatpush2.bf16.msra.mxu1 %v6714_v58  ;;  %4145 = vmatprep.subr.bf16.mxu0 %v6719_v62  ;;  %v6782_v58 = vld [vmem:[%s7541_s28 + $0xe6c] ss:$16 sps:$4 sm:$0xff]   ;;  %v6777_v62 = vld [vmem:[%s7541_s28 + $0xc68] ss:$16 sps:$4 sm:$0xff]  }
 0x263   : > { %4186 = vmatprep.subr.bf16.mxu1 %v6722_v19  ;;  %v6780_v19 = vld [vmem:[%s7541_s28 + $0xe68] ss:$16 sps:$4 sm:$0xff]  }
 0x265   : > { %4146 = vmatpush2.bf16.msra.mxu0 %v6717_v20  ;;  %v6785_v20 = vld [vmem:[%s7541_s28 + $0xc4c] ss:$16 sps:$4 sm:$0xff]  }
 0x266   : > { %4187 = vmatpush2.bf16.msra.mxu1 %v6720_v23  ;;  %4147 = vmatprep.subr.bf16.mxu0 %v6725_v2  ;;  %v6788_v23 = vld [vmem:[%s7541_s28 + $0xe4c] ss:$16 sps:$4 sm:$0xff]   ;;  %v6783_v2 = vld [vmem:[%s7541_s28 + $0xc48] ss:$16 sps:$4 sm:$0xff]  }
 0x267   : > { %4188 = vmatprep.subr.bf16.mxu1 %v6728_v3  ;;  %v6786_v3 = vld [vmem:[%s7541_s28 + $0xe48] ss:$16 sps:$4 sm:$0xff]  }
 0x269   : > { %4148 = vmatpush2.bf16.msra.mxu0 %v6723_v4  ;;  %v6791_v4 = vld [vmem:[%s7541_s28 + $0xc2c] ss:$16 sps:$4 sm:$0xff]  }
 0x26a   : > { %4189 = vmatpush2.bf16.msra.mxu1 %v6726_v5  ;;  %4149 = vmatprep.subr.bf16.mxu0 %v6731_v48  ;;  %v6794_v5 = vld [vmem:[%s7541_s28 + $0xe2c] ss:$16 sps:$4 sm:$0xff]   ;;  %v6789_v48 = vld [vmem:[%s7541_s28 + $0xc28] ss:$16 sps:$4 sm:$0xff]  }
 0x26b   : > { %4190 = vmatprep.subr.bf16.mxu1 %v6734_v51  ;;  %v6792_v51 = vld [vmem:[%s7541_s28 + $0xe28] ss:$16 sps:$4 sm:$0xff]  }
 0x26d   : > { %4150 = vmatpush2.bf16.msra.mxu0 %v6729_v28  ;;  %v6797_v28 = vld [vmem:[%s7541_s28 + $0xc0c] ss:$16 sps:$4 sm:$0xff]  }
 0x26e   : > { %4191 = vmatpush2.bf16.msra.mxu1 %v6732_v6  ;;  %4151 = vmatprep.subr.bf16.mxu0 %v6737_v7  ;;  %v6800_v6 = vld [vmem:[%s7541_s28 + $0xe0c] ss:$16 sps:$4 sm:$0xff]   ;;  %v6795_v7 = vld [vmem:[%s7541_s28 + $0xc08] ss:$16 sps:$4 sm:$0xff]  }
 0x26f   : > { %4192 = vmatprep.subr.bf16.mxu1 %v6740_v8  ;;  %v6798_v8 = vld [vmem:[%s7541_s28 + $0xe08] ss:$16 sps:$4 sm:$0xff]  }
 0x271   : > { %4152 = vmatpush2.bf16.msra.mxu0 %v6735_v13  ;;  %v6803_v13 = vld [vmem:[%s7541_s28 + $0xdec] ss:$16 sps:$4 sm:$0xff]  }
 0x272   : > { %4193 = vmatpush2.bf16.msra.mxu1 %v6738_v14  ;;  %4153 = vmatprep.subr.bf16.mxu0 %v6743_v17  ;;  %v6806_v14 = vld [vmem:[%s7541_s28 + $0xfec] ss:$16 sps:$4 sm:$0xff]   ;;  %v6801_v17 = vld [vmem:[%s7541_s28 + $0xde8] ss:$16 sps:$4 sm:$0xff]  }
 0x273   : > { %4194 = vmatprep.subr.bf16.mxu1 %v6746_v18  ;;  %v6804_v18 = vld [vmem:[%s7541_s28 + $0xfe8] ss:$16 sps:$4 sm:$0xff]  }
 0x275   : > { %4154 = vmatpush2.bf16.msra.mxu0 %v6741_v31  ;;  %v6809_v31 = vld [vmem:[%s7541_s28 + $0xdcc] ss:$16 sps:$4 sm:$0xff]  }
 0x276   : > { %4195 = vmatpush2.bf16.msra.mxu1 %v6744_v32  ;;  %4155 = vmatprep.subr.bf16.mxu0 %v6749_v21  ;;  %v6812_v32 = vld [vmem:[%s7541_s28 + $0xfcc] ss:$16 sps:$4 sm:$0xff]   ;;  %v6807_v21 = vld [vmem:[%s7541_s28 + $0xdc8] ss:$16 sps:$4 sm:$0xff]  }
 0x277   : > { %4196 = vmatprep.subr.bf16.mxu1 %v6752_v22  ;;  %v6810_v22 = vld [vmem:[%s7541_s28 + $0xfc8] ss:$16 sps:$4 sm:$0xff]  }
 0x279   : > { %4156 = vmatpush2.bf16.msra.mxu0 %v6747_v24  ;;  %v6815_v24 = vld [vmem:[%s7541_s28 + $0xdac] ss:$16 sps:$4 sm:$0xff]  }
 0x27a   : > { %4197 = vmatpush2.bf16.msra.mxu1 %v6750_v25  ;;  %4207 = vmatprep.subr.bf16.mxu0 %v6755_v26  ;;  %v6818_v25 = vld [vmem:[%s7541_s28 + $0xfac] ss:$16 sps:$4 sm:$0xff]   ;;  %v6813_v26 = vld [vmem:[%s7541_s28 + $0xda8] ss:$16 sps:$4 sm:$0xff]  }
 0x27b   : > { %4248 = vmatprep.subr.bf16.mxu1 %v6758_v40  ;;  %v6816_v40 = vld [vmem:[%s7541_s28 + $0xfa8] ss:$16 sps:$4 sm:$0xff]  }
 0x27c   : > { %v3913_v36 = vpop.f32.mrf.mxu0  ;;  %4158 = vmatmul.mubr.bf16.vlgmr.msra.gmra.mxu0 %v7802_v53 }
 0x27d   : > { %v3954_v37 = vpop.f32.mrf.mxu1  ;;  %4199 = vmatmul.mubr.bf16.vlgmr.msra.gmra.mxu1 %v7804_v54  ;;  %v3914_v1 = vadd.f32 %v3913_v36, %v3873_v35  ;;  %4208 = vmatpush1.bf16.msra.mxu0 %v6753_v29  ;;  %v526_v54 = vld [vmem:[#allocation2] sm:$0xff]  ;;  %v6819_v29 = vld [vmem:[%s7541_s28 + $0xd88] ss:$16 sps:$4 sm:$0xff]  }
 0x27e   : > { %4249 = vmatpush1.bf16.msra.mxu1 %v6756_v30  ;;  %v3915_v60 = vpop.f32.mrf.mxu0  ;;  %4209 = vmatprep.subr.bf16.mxu0 %v6761_v33  ;;  %v6822_v30 = vld [vmem:[%s7541_s28 + $0xf88] ss:$16 sps:$4 sm:$0xff]   ;;  %v6827_v33 = vld [vmem:[%s7541_s28 + $0xd6c] ss:$16 sps:$4 sm:$0xff]  }
 0x27f   : > { %v3956_v63 = vpop.f32.mrf.mxu1  ;;  %4250 = vmatprep.subr.bf16.mxu1 %v6764_v34  ;;  %v3955_v41 = vadd.f32 %v3954_v37, %v3914_v1  ;;  %v3916_v53 = vadd.f32 %v3915_v60, %v3875_v0  ;;  %4239 = vmatprep.mubr.bf16.mxu0 %v7810_v59  ;;  %v6773_v59 = vld [vmem:[%s7541_s28 + $0xc8c] ss:$16 sps:$4 sm:$0xff]   ;;  %v6825_v35 = vld [vmem:[%s7541_s28 + $0xd68] ss:$16 sps:$4 sm:$0xff]  }
 0x280   : > { %4280 = vmatprep.mubr.bf16.mxu1 %v7812_v61  ;;  %v3917_v16 = vpop.f32.mrf.mxu0  ;;  %v6776_v61 = vld [vmem:[%s7541_s28 + $0xe8c] ss:$16 sps:$4 sm:$0xff]   ;;  %v6828_v36 = vld [vmem:[%s7541_s28 + $0xf68] ss:$16 sps:$4 sm:$0xff]  }
 0x281   : > { %v3958_v42 = vpop.f32.mrf.mxu1  ;;  %v4289_v44 = vadd.f32 %v3955_v41, %v525_v38  ;;  %v3957_v45 = vadd.f32 %v3956_v63, %v3916_v53  ;;  %4210 = vmatpush1.bf16.msra.mxu0 %v6759_v9  ;;  %v6830_v34 = vld [vmem:[%s7541_s28 + $0xf6c] ss:$16 sps:$4 sm:$0xff]   ;;  %v6831_v1 = vld [vmem:[%s7541_s28 + $0xd48] ss:$16 sps:$4 sm:$0xff]  }
 0x282   : > { %4251 = vmatpush1.bf16.msra.mxu1 %v6762_v15  ;;  %v3918_v49 = vpop.f32.mrf.mxu0  ;;  %4211 = vmatprep.subr.bf16.mxu0 %v6767_v10  ;;  %v6833_v37 = vld [vmem:[%s7541_s28 + $0xd4c] ss:$16 sps:$4 sm:$0xff]   ;;  %v6834_v9 = vld [vmem:[%s7541_s28 + $0xf48] ss:$16 sps:$4 sm:$0xff]  }
 0x283   : > { %v3959_v50 = vpop.f32.mrf.mxu1  ;;  %4252 = vmatprep.subr.bf16.mxu1 %v6770_v39  ;;  %4293 = vst [vmem:[#allocation2 + $0x10] sm:$0xff] %v4289_v44  ;;  %v4290_v52 = vadd.f32 %v3957_v45, %v526_v54  ;;  %v6836_v0 = vld [vmem:[%s7541_s28 + $0xf4c] ss:$16 sps:$4 sm:$0xff]   ;;  %v6837_v60 = vld [vmem:[%s7541_s28 + $0xd28] ss:$16 sps:$4 sm:$0xff]  }
 0x284   : > { %v6839_v15 = vld [vmem:[%s7541_s28 + $0xd2c] ss:$16 sps:$4 sm:$0xff]   ;;  %v6840_v63 = vld [vmem:[%s7541_s28 + $0xf28] ss:$16 sps:$4 sm:$0xff]  }
 0x285   : > { %4294 = vst [vmem:[#allocation2] sm:$0xff] %v4290_v52  ;;  %4212 = vmatpush1.bf16.msra.mxu0 %v6765_v46  ;;  %v6842_v38 = vld [vmem:[%s7541_s28 + $0xf2c] ss:$16 sps:$4 sm:$0xff]   ;;  %v6843_v41 = vld [vmem:[%s7541_s28 + $0xd08] ss:$16 sps:$4 sm:$0xff]  }
 0x286   : > { %4253 = vmatpush1.bf16.msra.mxu1 %v6768_v47  ;;  %4213 = vmatprep.subr.bf16.mxu0 %v6773_v59  ;;  %v6845_v10 = vld [vmem:[%s7541_s28 + $0xd0c] ss:$16 sps:$4 sm:$0xff]   ;;  %v6846_v53 = vld [vmem:[%s7541_s28 + $0xf08] ss:$16 sps:$4 sm:$0xff]  }
 0x287   : > { %4254 = vmatprep.subr.bf16.mxu1 %v6776_v61  ;;  %v6848_v39 = vld [vmem:[%s7541_s28 + $0xf0c] ss:$16 sps:$4 sm:$0xff]  }
 0x289   : > { %4214 = vmatpush1.bf16.msra.mxu0 %v6771_v55 }
 0x28a   : > { %4255 = vmatpush1.bf16.msra.mxu1 %v6774_v56  ;;  %4215 = vmatprep.subr.bf16.mxu0 %v6779_v57 }
 0x28b   : > { %4256 = vmatprep.subr.bf16.mxu1 %v6782_v58 }
 0x28d   : > { %4216 = vmatpush1.bf16.msra.mxu0 %v6777_v62 }
 0x28e   : > { %4257 = vmatpush1.bf16.msra.mxu1 %v6780_v19  ;;  %4217 = vmatprep.subr.bf16.mxu0 %v6785_v20 }
 0x28f   : > { %4258 = vmatprep.subr.bf16.mxu1 %v6788_v23 }
 0x291   : > { %4218 = vmatpush1.bf16.msra.mxu0 %v6783_v2 }
 0x292   : > { %4259 = vmatpush1.bf16.msra.mxu1 %v6786_v3  ;;  %4219 = vmatprep.subr.bf16.mxu0 %v6791_v4 }
 0x293   : > { %4260 = vmatprep.subr.bf16.mxu1 %v6794_v5 }
 0x295   : > { %4220 = vmatpush1.bf16.msra.mxu0 %v6789_v48 }
 0x296   : > { %4261 = vmatpush1.bf16.msra.mxu1 %v6792_v51  ;;  %4221 = vmatprep.subr.bf16.mxu0 %v6797_v28 }
 0x297   : > { %4262 = vmatprep.subr.bf16.mxu1 %v6800_v6 }
 0x299   : > { %4222 = vmatpush1.bf16.msra.mxu0 %v6795_v7 }
 0x29a   : > { %4263 = vmatpush1.bf16.msra.mxu1 %v6798_v8  ;;  %4223 = vmatprep.subr.bf16.mxu0 %v6803_v13 }
 0x29b   : > { %4264 = vmatprep.subr.bf16.mxu1 %v6806_v14 }
 0x29d   : > { %4224 = vmatpush2.bf16.msra.mxu0 %v6801_v17 }
 0x29e   : > { %4265 = vmatpush2.bf16.msra.mxu1 %v6804_v18  ;;  %4225 = vmatprep.subr.bf16.mxu0 %v6809_v31 }
 0x29f   : > { %4266 = vmatprep.subr.bf16.mxu1 %v6812_v32  ;;  %v527_v32 = vld [vmem:[#allocation2 + $0x18] sm:$0xff] }
 0x2a1   : > { %4226 = vmatpush2.bf16.msra.mxu0 %v6807_v21 }
 0x2a2   : > { %4267 = vmatpush2.bf16.msra.mxu1 %v6810_v22  ;;  %4227 = vmatprep.subr.bf16.mxu0 %v6815_v24 }
 0x2a3   : > { %4268 = vmatprep.subr.bf16.mxu1 %v6818_v25 }
 0x2a5   : > { %4228 = vmatpush2.bf16.msra.mxu0 %v6813_v26  ;;  %v528_v26 = vld [vmem:[#allocation2 + $0x8] sm:$0xff] }
 0x2a6   : > { %4269 = vmatpush2.bf16.msra.mxu1 %v6816_v40  ;;  %4229 = vmatprep.subr.bf16.mxu0 %v6821_v43 }
 0x2a7   : > { %4270 = vmatprep.subr.bf16.mxu1 %v6824_v27 }
 0x2a9   : > { %4230 = vmatpush2.bf16.msra.mxu0 %v6819_v29 }
 0x2aa   : > { %4271 = vmatpush2.bf16.msra.mxu1 %v6822_v30  ;;  %4231 = vmatprep.subr.bf16.mxu0 %v6827_v33 }
 0x2ab   : > { %4272 = vmatprep.subr.bf16.mxu1 %v6830_v34 }
 0x2ad   : > { %4232 = vmatpush2.bf16.msra.mxu0 %v6825_v35 }
 0x2ae   : > { %4273 = vmatpush2.bf16.msra.mxu1 %v6828_v36  ;;  %4233 = vmatprep.subr.bf16.mxu0 %v6833_v37 }
 0x2af   : > { %4274 = vmatprep.subr.bf16.mxu1 %v6836_v0 }
 0x2b1   : > { %4234 = vmatpush2.bf16.msra.mxu0 %v6831_v1 }
 0x2b2   : > { %4275 = vmatpush2.bf16.msra.mxu1 %v6834_v9  ;;  %4235 = vmatprep.subr.bf16.mxu0 %v6839_v15 }
 0x2b3   : > { %4276 = vmatprep.subr.bf16.mxu1 %v6842_v38 }
 0x2b5   : > { %4236 = vmatpush2.bf16.msra.mxu0 %v6837_v60 }
 0x2b6   : > { %4277 = vmatpush2.bf16.msra.mxu1 %v6840_v63  ;;  %4237 = vmatprep.subr.bf16.mxu0 %v6845_v10 }
 0x2b7   : > { %4278 = vmatprep.subr.bf16.mxu1 %v6848_v39 }
 0x2b9   : > { %4238 = vmatpush2.bf16.msra.mxu0 %v6843_v41 }
 0x2ba   : > { %4279 = vmatpush2.bf16.msra.mxu1 %v6846_v53 }
 0x2bc   : > { %v3995_v54 = vpop.f32.mrf.mxu0  ;;  %4240 = vmatmul.mubr.bf16.vlgmr.msra.gmra.mxu0 %v7880_v11 }
 0x2bd   : > { %v4036_v16 = vpop.f32.mrf.mxu1  ;;  %4281 = vmatmul.mubr.bf16.vlgmr.msra.gmra.mxu1 %v7882_v12 }
 0x2be   : > { %v4037_v42 = vadd.f32 %v4036_v16, %v3995_v54  ;;  %v3997_v44 = vpop.f32.mrf.mxu0 }
 0x2bf   : > { %v4038_v45 = vpop.f32.mrf.mxu1 }
 0x2c0   : > { %v4039_v46 = vadd.f32 %v4038_v45, %v3997_v44  ;;  %v3999_v47 = vpop.f32.mrf.mxu0 }
 0x2c1   : > { %v4040_v49 = vpop.f32.mrf.mxu1 }
 0x2c2   : > { %v4000_v50 = vpop.f32.mrf.mxu0 }
 0x2c3   : > { %v4041_v59 = vpop.f32.mrf.mxu1 }
 0x2fc   : > { %v4077_v61 = vpop.f32.mrf.mxu0 }
 0x2fd   : > { %v4118_v52 = vpop.f32.mrf.mxu1  ;;  %v4078_v55 = vadd.f32 %v4077_v61, %v4037_v42 }
 0x2fe   : > { %v4079_v56 = vpop.f32.mrf.mxu0 }
 0x2ff   : > { %v4120_v57 = vpop.f32.mrf.mxu1  ;;  %v4119_v58 = vadd.f32 %v4118_v52, %v4078_v55  ;;  %v4080_v62 = vadd.f32 %v4079_v56, %v4039_v46 }
 0x300   : > { %v4081_v19 = vpop.f32.mrf.mxu0 }
 0x301   : > { %v4122_v20 = vpop.f32.mrf.mxu1  ;;  %v4121_v11 = vadd.f32 %v4120_v57, %v4080_v62 }
 0x302   : > { %v4082_v23 = vpop.f32.mrf.mxu0 }
 0x303   : > { %v4123_v12 = vpop.f32.mrf.mxu1 }
 0x33c   : > { %v4159_v2 = vpop.f32.mrf.mxu0 }
 0x33d   : > { %v4200_v3 = vpop.f32.mrf.mxu1  ;;  %v4160_v7 = vadd.f32 %v4159_v2, %v4119_v58 }
 0x33e   : > { %v4161_v4 = vpop.f32.mrf.mxu0 }
 0x33f   : > { %v4202_v5 = vpop.f32.mrf.mxu1  ;;  %v4162_v8 = vadd.f32 %v4161_v4, %v4121_v11  ;;  %v4201_v13 = vadd.f32 %v4200_v3, %v4160_v7 }
 0x340   : > { %v4163_v48 = vpop.f32.mrf.mxu0 }
 0x341   : > { %v4204_v51 = vpop.f32.mrf.mxu1  ;;  %v4203_v18 = vadd.f32 %v4202_v5, %v4162_v8 }
 0x342   : > { %v4164_v28 = vpop.f32.mrf.mxu0 }
 0x343   : > { %v4205_v6 = vpop.f32.mrf.mxu1 }
 0x37c   : > { %v4241_v14 = vpop.f32.mrf.mxu0 }
 0x37d   : > { %v4282_v17 = vpop.f32.mrf.mxu1  ;;  %v4242_v31 = vadd.f32 %v4241_v14, %v4201_v13 }
 0x37e   : > { %v4243_v21 = vpop.f32.mrf.mxu0 }
 0x37f   : > { %v4284_v22 = vpop.f32.mrf.mxu1  ;;  %v4283_v24 = vadd.f32 %v4282_v17, %v4242_v31  ;;  %v4244_v25 = vadd.f32 %v4243_v21, %v4203_v18 }
 0x380   : > { %v4245_v40 = vpop.f32.mrf.mxu0 }
 0x381   : > { %v4286_v43 = vpop.f32.mrf.mxu1  ;;  %v4291_v27 = vadd.f32 %v4283_v24, %v527_v32  ;;  %v4285_v29 = vadd.f32 %v4284_v22, %v4244_v25  ;;  %4300 = sbr.rel (%p5786_p1) target bundleno = 1573 (0x625), region = 100 }
 0x382   : > { %v4246_v30 = vpop.f32.mrf.mxu0 }
 0x383   : > { %v4287_v33 = vpop.f32.mrf.mxu1  ;;  %4295 = vst [vmem:[#allocation2 + $0x18] sm:$0xff] %v4291_v27  ;;  %v4292_v34 = vadd.f32 %v4285_v29, %v528_v26 }
 0x385   : > { %4296 = vst [vmem:[#allocation2 + $0x8] sm:$0xff] %v4292_v34 }
 0x386   : > { %v6849_v35 = vld [vmem:[#allocation9 + $0x74] ss:$8 sps:$4 sm:$0xff]   ;;  %v6853_v37 = vld [vmem:[#allocation9 + $0x70] ss:$8 sps:$4 sm:$0xff]   ;;  %v6855_v1 = vld [vmem:[#allocation9 + $0x64] ss:$8 sps:$4 sm:$0xff]  }
 0x387   : > { %v6851_v36 = vld [vmem:[#allocation9 + $0x174] ss:$8 sps:$4 sm:$0xff]   ;;  %4709 = vmatprep.subr.bf16.mxu0 %v6849_v35  ;;  %v6854_v0 = vld [vmem:[#allocation9 + $0x170] ss:$8 sps:$4 sm:$0xff]   ;;  %v6857_v9 = vld [vmem:[#allocation9 + $0x164] ss:$8 sps:$4 sm:$0xff]  }
 0x388   : > { %4750 = vmatprep.subr.bf16.mxu1 %v6851_v36  ;;  %4710 = vmatpush1.bf16.msra.mxu0 %v6853_v37  ;;  %v6859_v15 = vld [vmem:[#allocation9 + $0x60] ss:$8 sps:$4 sm:$0xff]   ;;  %v6861_v60 = vld [vmem:[#allocation9 + $0x54] ss:$8 sps:$4 sm:$0xff]   ;;  %v6865_v10 = vld [vmem:[#allocation9 + $0x50] ss:$8 sps:$4 sm:$0xff]  }
 0x389   : > { %4751 = vmatpush1.bf16.msra.mxu1 %v6854_v0  ;;  %4711 = vmatprep.subr.bf16.mxu0 %v6855_v1  ;;  %v6860_v38 = vld [vmem:[#allocation9 + $0x160] ss:$8 sps:$4 sm:$0xff]   ;;  %v6863_v63 = vld [vmem:[#allocation9 + $0x154] ss:$8 sps:$4 sm:$0xff]   ;;  %v6866_v39 = vld [vmem:[#allocation9 + $0x150] ss:$8 sps:$4 sm:$0xff]  }
 0x38a   : > { %4752 = vmatprep.subr.bf16.mxu1 %v6857_v9  ;;  %v6867_v41 = vld [vmem:[#allocation9 + $0x44] ss:$8 sps:$4 sm:$0xff]   ;;  %v6871_v54 = vld [vmem:[#allocation9 + $0x40] ss:$8 sps:$4 sm:$0xff]   ;;  %v6873_v42 = vld [vmem:[#allocation9 + $0x34] ss:$8 sps:$4 sm:$0xff]  }
 0x38b   : > { %v6869_v53 = vld [vmem:[#allocation9 + $0x144] ss:$8 sps:$4 sm:$0xff]   ;;  %v6872_v16 = vld [vmem:[#allocation9 + $0x140] ss:$8 sps:$4 sm:$0xff]   ;;  %v6875_v44 = vld [vmem:[#allocation9 + $0x134] ss:$8 sps:$4 sm:$0xff]  }
 0x38c   : > { %4712 = vmatpush1.bf16.msra.mxu0 %v6859_v15  ;;  %v6877_v45 = vld [vmem:[#allocation9 + $0x30] ss:$8 sps:$4 sm:$0xff]   ;;  %v6879_v47 = vld [vmem:[#allocation9 + $0x24] ss:$8 sps:$4 sm:$0xff]   ;;  %v6883_v50 = vld [vmem:[#allocation9 + $0x20] ss:$8 sps:$4 sm:$0xff]  }
 0x38d   : > { %4753 = vmatpush1.bf16.msra.mxu1 %v6860_v38  ;;  %4713 = vmatprep.subr.bf16.mxu0 %v6861_v60  ;;  %v6878_v46 = vld [vmem:[#allocation9 + $0x130] ss:$8 sps:$4 sm:$0xff]   ;;  %v6881_v49 = vld [vmem:[#allocation9 + $0x124] ss:$8 sps:$4 sm:$0xff]   ;;  %v6884_v59 = vld [vmem:[#allocation9 + $0x120] ss:$8 sps:$4 sm:$0xff]  }
 0x38e   : > { %4754 = vmatprep.subr.bf16.mxu1 %v6863_v63  ;;  %v6885_v61 = vld [vmem:[#allocation9 + $0x14] ss:$8 sps:$4 sm:$0xff]   ;;  %v6889_v55 = vld [vmem:[#allocation9 + $0x10] ss:$8 sps:$4 sm:$0xff]   ;;  %v6891_v57 = vld [vmem:[#allocation9 + $0x4] ss:$8 sps:$4 sm:$0xff]  }
 0x38f   : > { %v6887_v52 = vld [vmem:[#allocation9 + $0x114] ss:$8 sps:$4 sm:$0xff]   ;;  %v6890_v56 = vld [vmem:[#allocation9 + $0x110] ss:$8 sps:$4 sm:$0xff]   ;;  %v6893_v58 = vld [vmem:[#allocation9 + $0x104] ss:$8 sps:$4 sm:$0xff]  }
 0x390   : > { %4714 = vmatpush1.bf16.msra.mxu0 %v6865_v10  ;;  %v6895_v62 = vld [vmem:[#allocation9] ss:$8 sps:$4 sm:$0xff]   ;;  %v6897_v20 = vld [vmem:[#allocation9 + $0xf4] ss:$8 sps:$4 sm:$0xff]   ;;  %v6901_v23 = vld [vmem:[#allocation9 + $0xf0] ss:$8 sps:$4 sm:$0xff]  }
 0x391   : > { %4755 = vmatpush1.bf16.msra.mxu1 %v6866_v39  ;;  %4715 = vmatprep.subr.bf16.mxu0 %v6867_v41  ;;  %v6896_v19 = vld [vmem:[#allocation9 + $0x100] ss:$8 sps:$4 sm:$0xff]   ;;  %v6899_v11 = vld [vmem:[#allocation9 + $0x1f4] ss:$8 sps:$4 sm:$0xff]   ;;  %v6902_v12 = vld [vmem:[#allocation9 + $0x1f0] ss:$8 sps:$4 sm:$0xff]  }
 0x392   : > { %4756 = vmatprep.subr.bf16.mxu1 %v6869_v53  ;;  %v6903_v2 = vld [vmem:[#allocation9 + $0xe4] ss:$8 sps:$4 sm:$0xff]   ;;  %v6907_v4 = vld [vmem:[#allocation9 + $0xe0] ss:$8 sps:$4 sm:$0xff]   ;;  %v6909_v48 = vld [vmem:[#allocation9 + $0xd4] ss:$8 sps:$4 sm:$0xff]  }
 0x393   : > { %v6905_v3 = vld [vmem:[#allocation9 + $0x1e4] ss:$8 sps:$4 sm:$0xff]   ;;  %v6908_v5 = vld [vmem:[#allocation9 + $0x1e0] ss:$8 sps:$4 sm:$0xff]   ;;  %v6911_v51 = vld [vmem:[#allocation9 + $0x1d4] ss:$8 sps:$4 sm:$0xff]  }
 0x394   : > { %4716 = vmatpush1.bf16.msra.mxu0 %v6871_v54  ;;  %v6913_v28 = vld [vmem:[#allocation9 + $0xd0] ss:$8 sps:$4 sm:$0xff]   ;;  %v6915_v7 = vld [vmem:[#allocation9 + $0xc4] ss:$8 sps:$4 sm:$0xff]   ;;  %v6919_v13 = vld [vmem:[#allocation9 + $0xc0] ss:$8 sps:$4 sm:$0xff]  }
 0x395   : > { %4757 = vmatpush1.bf16.msra.mxu1 %v6872_v16  ;;  %4717 = vmatprep.subr.bf16.mxu0 %v6873_v42  ;;  %v6914_v6 = vld [vmem:[#allocation9 + $0x1d0] ss:$8 sps:$4 sm:$0xff]   ;;  %v6917_v8 = vld [vmem:[#allocation9 + $0x1c4] ss:$8 sps:$4 sm:$0xff]   ;;  %v4302_v14 = vld [vmem:[#allocation2] sm:$0xff]  ;;  %vm7323_vm0 = vmmov 0  }
 0x396   : > { %4758 = vmatprep.subr.bf16.mxu1 %v6875_v44  ;;  %v6920_v17 = vld [vmem:[#allocation9 + $0x1c0] ss:$8 sps:$4 sm:$0xff]   ;;  %v6921_v18 = vld [vmem:[#allocation9 + $0xb4] ss:$8 sps:$4 sm:$0xff]   ;;  %v4306_v31 = vmax.f32 %v4302_v14, 0.0  ;;  %v4301_v33 = vld [vmem:[#allocation2 + $0x10] sm:$0xff] }
 0x397   : > { %v4304_v32 = vld [vmem:[#allocation2 + $0x8] sm:$0xff]  ;;  %v6923_v21 = vld [vmem:[#allocation9 + $0x1b4] ss:$8 sps:$4 sm:$0xff]   ;;  %v6925_v25 = vld [vmem:[#allocation9 + $0xb0] ss:$8 sps:$4 sm:$0xff]   ;;  %v4305_v1 = vmax.f32 %v4301_v33, 0.0 }
 0x398   : > { %4718 = vmatpush1.bf16.msra.mxu0 %v6877_v45  ;;  %v4308_v22 = vmax.f32 %v4304_v32, 0.0  ;;  %v4310_v24 = vpack.c.bf16 %v4306_v31, %v4306_v31  ;;  %v6926_v40 = vld [vmem:[#allocation9 + $0x1b0] ss:$8 sps:$4 sm:$0xff]   ;;  %v6927_v43 = vld [vmem:[#allocation9 + $0xa4] ss:$8 sps:$4 sm:$0xff]  }
 0x399   : > { %4759 = vmatpush1.bf16.msra.mxu1 %v6878_v46  ;;  %4719 = vmatprep.subr.bf16.mxu0 %v6879_v47  ;;  %v6929_v27 = vld [vmem:[#allocation9 + $0x1a4] ss:$8 sps:$4 sm:$0xff]   ;;  %v6931_v29 = vld [vmem:[#allocation9 + $0xa0] ss:$8 sps:$4 sm:$0xff]   ;;  %v4303_v34 = vld [vmem:[#allocation2 + $0x18] sm:$0xff]  ;;  %v4309_v39 = vpack.c.bf16 %v4305_v1, %v4305_v1 }
 0x39a   : > { %4760 = vmatprep.subr.bf16.mxu1 %v6881_v49  ;;  %v4312_v26 = vpack.c.bf16 %v4308_v22, %v4308_v22  ;;  %4741 = vmatprep.mubr.bf16.mxu0 %v4310_v24  ;;  %v6932_v30 = vld [vmem:[#allocation9 + $0x1a0] ss:$8 sps:$4 sm:$0xff]   ;;  %v6933_v35 = vld [vmem:[#allocation9 + $0x94] ss:$8 sps:$4 sm:$0xff]   ;;  %v6937_v37 = vld [vmem:[#allocation9 + $0x90] ss:$8 sps:$4 sm:$0xff]  }
 0x39b   : > { %v6935_v36 = vld [vmem:[#allocation9 + $0x194] ss:$8 sps:$4 sm:$0xff]   ;;  %v6938_v0 = vld [vmem:[#allocation9 + $0x190] ss:$8 sps:$4 sm:$0xff]   ;;  %v4307_v9 = vmax.f32 %v4303_v34, 0.0  ;;  %v6951_v45 = vld [vmem:[#allocation12 + $0x60] sm:$0xff]  }
 0x39c   : > { %4720 = vmatpush1.bf16.msra.mxu0 %v6883_v50  ;;  %4782 = vmatprep.mubr.bf16.mxu1 %v4312_v26  ;;  %v6939_v15 = vld [vmem:[#allocation9 + $0x84] ss:$8 sps:$4 sm:$0xff]   ;;  %v6943_v60 = vld [vmem:[#allocation9 + $0x80] ss:$8 sps:$4 sm:$0xff]   ;;  %v6947_v54 = vld [vmem:[#allocation12 + $0x70] sm:$0xff]  }
 0x39d   : > { %4761 = vmatpush1.bf16.msra.mxu1 %v6884_v59  ;;  %4721 = vmatprep.subr.bf16.mxu0 %v6885_v61  ;;  %v6941_v38 = vld [vmem:[#allocation9 + $0x184] ss:$8 sps:$4 sm:$0xff]   ;;  %v6944_v63 = vld [vmem:[#allocation9 + $0x180] ss:$8 sps:$4 sm:$0xff]   ;;  %v4311_v41 = vpack.c.bf16 %v4307_v9, %v4307_v9  ;;  %v6948_v16 = vld [vmem:[#allocation12 + $0x30] sm:$0xff]  }
 0x39e   : > { %4762 = vmatprep.subr.bf16.mxu1 %v6887_v52  ;;  %v6945_v10 = vld [vmem:[#allocation12 + $0x78] sm:$0xff]   ;;  %v6949_v42 = vld [vmem:[#allocation12 + $0x68] sm:$0xff]   ;;  %v6952_v46 = vld [vmem:[#allocation12 + $0x20] sm:$0xff]  }
 0x39f   : > { %v6946_v53 = vld [vmem:[#allocation12 + $0x38] sm:$0xff]   ;;  %v6950_v44 = vld [vmem:[#allocation12 + $0x28] sm:$0xff]   ;;  %v6955_v50 = vld [vmem:[#allocation12 + $0x50] sm:$0xff]  }
 0x3a0   : > { %4722 = vmatpush1.bf16.msra.mxu0 %v6889_v55  ;;  %v6953_v47 = vld [vmem:[#allocation12 + $0x58] sm:$0xff]   ;;  %v6956_v59 = vld [vmem:[#allocation12 + $0x10] sm:$0xff]   ;;  %v6957_v61 = vld [vmem:[#allocation12 + $0x48] sm:$0xff]  }
 0x3a1   : > { %4763 = vmatpush1.bf16.msra.mxu1 %v6890_v56  ;;  %4723 = vmatprep.subr.bf16.mxu0 %v6891_v57  ;;  %v6954_v49 = vld [vmem:[#allocation12 + $0x18] sm:$0xff]   ;;  %v6958_v52 = vld [vmem:[#allocation12 + $0x8] sm:$0xff]   ;;  %v6959_v55 = vld [vmem:[#allocation12 + $0x40] sm:$0xff]  }
 0x3a2   : > { %4764 = vmatprep.subr.bf16.mxu1 %v6893_v58  ;;  %v6960_v56 = vld [vmem:[#allocation12] sm:$0xff]   ;;  %v7322_v58 = vmov 0.0  }
 0x3a3   : > { %v6961_v57 = vld [vmem:[#allocation15 + $0x38] sm:$0xff]   ;;  %v5868_v9 = vld [vmem:[#allocation17] ss:$0 sm:$0xff] }
 0x3a4   : > { %4724 = vmatpush1.bf16.msra.mxu0 %v6895_v62  ;;  %v6962_v62 = vld [vmem:[#allocation15 + $0x30] sm:$0xff]  }
 0x3a5   : > { %4765 = vmatpush1.bf16.msra.mxu1 %v6896_v19  ;;  %4725 = vmatprep.subr.bf16.mxu0 %v6897_v20  ;;  %v6963_v19 = vld [vmem:[#allocation15 + $0x28] sm:$0xff]   ;;  %v6964_v20 = vld [vmem:[#allocation15 + $0x20] sm:$0xff]  }
 0x3a6   : > { %4766 = vmatprep.subr.bf16.mxu1 %v6899_v11  ;;  %v6965_v11 = vld [vmem:[#allocation15 + $0x18] sm:$0xff]  }
 0x3a8   : > { %4726 = vmatpush2.bf16.msra.mxu0 %v6901_v23  ;;  %v4379_v23 = vlaneseq }
 0x3a9   : > { %4767 = vmatpush2.bf16.msra.mxu1 %v6902_v12  ;;  %4727 = vmatprep.subr.bf16.mxu0 %v6903_v2 }
 0x3aa   : > { %4768 = vmatprep.subr.bf16.mxu1 %v6905_v3  ;;  %v4380_v12 = vshrl.u32 %v4379_v23, 7  ;;  %v4377_v3 = vld [vmem:[#allocation11] sm:$0x3] }
 0x3ac   : > { %4728 = vmatpush2.bf16.msra.mxu0 %v6907_v4  ;;  %v4381_v2 = vsub.s32 0, %v4380_v12  ;;  %v4385_v4 = vsub.s32 1, %v4380_v12 }
 0x3ad   : > { %4769 = vmatpush2.bf16.msra.mxu1 %v6908_v5  ;;  %4729 = vmatprep.subr.bf16.mxu0 %v6909_v48 }
 0x3ae   : > { %4770 = vmatprep.subr.bf16.mxu1 %v6911_v51  ;;  %v4382_v5 = vrot.slane %v4377_v3, %v4381_v2  ;;  %v4386_v48 = vrot.slane %v4377_v3, %v4385_v4 }
 0x3b0   : > { %4730 = vmatpush2.bf16.msra.mxu0 %v6913_v28 }
 0x3b1   : > { %4771 = vmatpush2.bf16.msra.mxu1 %v6914_v6  ;;  %4731 = vmatprep.subr.bf16.mxu0 %v6915_v7 }
 0x3b2   : > { %4772 = vmatprep.subr.bf16.mxu1 %v6917_v8 }
 0x3b4   : > { %4732 = vmatpush2.bf16.msra.mxu0 %v6919_v13 }
 0x3b5   : > { %4773 = vmatpush2.bf16.msra.mxu1 %v6920_v17  ;;  %4733 = vmatprep.subr.bf16.mxu0 %v6921_v18 }
 0x3b6   : > { %4774 = vmatprep.subr.bf16.mxu1 %v6923_v21 }
 0x3b8   : > { %4734 = vmatpush2.bf16.msra.mxu0 %v6925_v25 }
 0x3b9   : > { %4775 = vmatpush2.bf16.msra.mxu1 %v6926_v40  ;;  %4735 = vmatprep.subr.bf16.mxu0 %v6927_v43  ;;  %v6966_v40 = vld [vmem:[#allocation15 + $0x10] sm:$0xff]   ;;  %v6967_v43 = vld [vmem:[#allocation15 + $0x8] sm:$0xff]  }
 0x3ba   : > { %4776 = vmatprep.subr.bf16.mxu1 %v6929_v27  ;;  %v6968_v27 = vld [vmem:[#allocation15] sm:$0xff]  }
 0x3bc   : > { %4736 = vmatpush2.bf16.msra.mxu0 %v6931_v29 }
 0x3bd   : > { %4777 = vmatpush2.bf16.msra.mxu1 %v6932_v30  ;;  %4737 = vmatprep.subr.bf16.mxu0 %v6933_v35  ;;  %v5851_v30 = vld [vmem:[#allocation14] ss:$0 sm:$0xff] }
 0x3be   : > { %4778 = vmatprep.subr.bf16.mxu1 %v6935_v36 }
 0x3c0   : > { %4738 = vmatpush2.bf16.msra.mxu0 %v6937_v37 }
 0x3c1   : > { %4779 = vmatpush2.bf16.msra.mxu1 %v6938_v0  ;;  %4739 = vmatprep.subr.bf16.mxu0 %v6939_v15 }
 0x3c2   : > { %4780 = vmatprep.subr.bf16.mxu1 %v6941_v38 }
 0x3c4   : > { %4740 = vmatpush2.bf16.msra.mxu0 %v6943_v60 }
 0x3c5   : > { %4781 = vmatpush2.bf16.msra.mxu1 %v6944_v63  ;;  %5884 = vmatprep.subr.bf16.mxu0 %v6945_v10 }
 0x3c6   : > { %5915 = vmatprep.subr.bf16.mxu1 %v7322_v58 }
 0x3c7   : > { %4742 = vmatmul.mubr.bf16.vlgmr.msra.gmra.mxu0 %v4309_v39 }
 0x3c8   : > { %4783 = vmatmul.mubr.bf16.vlgmr.msra.gmra.mxu1 %v4311_v41  ;;  %5885 = vmatpush3.bf16.msra.mxu0 %v6946_v53 }
 0x3c9   : > { %5886 = vmatprep.subr.bf16.mxu0 %v6947_v54  ;;  %5916 = vmatpush3.bf16.msra.mxu1 %v6961_v57 }
 0x3ca   : > { %5917 = vmatprep.subr.bf16.mxu1 %v7322_v58  ;;  %5931 = vmatprep.mubr.msk.bf16.mxu1 %vm7323_vm0, %v7322_v58 }
 0x3cc   : > { %5887 = vmatpush3.bf16.msra.mxu0 %v6948_v16 }
 0x3cd   : > { %5888 = vmatprep.subr.bf16.mxu0 %v6949_v42  ;;  %5918 = vmatpush3.bf16.msra.mxu1 %v6962_v62 }
 0x3ce   : > { %5919 = vmatprep.subr.bf16.mxu1 %v7322_v58 }
 0x3d0   : > { %5889 = vmatpush3.bf16.msra.mxu0 %v6950_v44 }
 0x3d1   : > { %5890 = vmatprep.subr.bf16.mxu0 %v6951_v45  ;;  %5920 = vmatpush3.bf16.msra.mxu1 %v6963_v19 }
 0x3d2   : > { %5921 = vmatprep.subr.bf16.mxu1 %v7322_v58 }
 0x3d4   : > { %5891 = vmatpush3.bf16.msra.mxu0 %v6952_v46 }
 0x3d5   : > { %5892 = vmatprep.subr.bf16.mxu0 %v6953_v47  ;;  %5922 = vmatpush3.bf16.msra.mxu1 %v6964_v20 }
 0x3d6   : > { %5923 = vmatprep.subr.bf16.mxu1 %v7322_v58 }
 0x3d8   : > { %5893 = vmatpush3.bf16.msra.mxu0 %v6954_v49 }
 0x3d9   : > { %5894 = vmatprep.subr.bf16.mxu0 %v6955_v50  ;;  %5924 = vmatpush3.bf16.msra.mxu1 %v6965_v11 }
 0x3da   : > { %5925 = vmatprep.subr.bf16.mxu1 %v7322_v58 }
 0x3dc   : > { %5895 = vmatpush3.bf16.msra.mxu0 %v6956_v59 }
 0x3dd   : > { %5896 = vmatprep.subr.bf16.mxu0 %v6957_v61  ;;  %5926 = vmatpush3.bf16.msra.mxu1 %v6966_v40 }
 0x3de   : > { %5927 = vmatprep.subr.bf16.mxu1 %v7322_v58 }
 0x3e0   : > { %5897 = vmatpush3.bf16.msra.mxu0 %v6958_v52 }
 0x3e1   : > { %5898 = vmatprep.subr.bf16.mxu0 %v6959_v55  ;;  %5928 = vmatpush3.bf16.msra.mxu1 %v6967_v43 }
 0x3e2   : > { %5929 = vmatprep.subr.bf16.mxu1 %v7322_v58 }
 0x3e4   : > { %5899 = vmatpush3.bf16.msra.mxu0 %v6960_v56 }
 0x3e5   : > { %5930 = vmatpush3.bf16.msra.mxu1 %v6968_v27 }
 0x487   : > { %v4743_v51 = vpop.f32.mrf.mxu0 }
 0x488   : > { %v4784_v28 = vpop.f32.mrf.mxu1  ;;  %v4744_v6 = vadd.f32 %v4743_v51, %v4382_v5 }
 0x489   : > { %v4745_v7 = vpop.f32.mrf.mxu0 }
 0x48a   : > { %v4786_v8 = vpop.f32.mrf.mxu1  ;;  %v4785_v13 = vadd.f32 %v4784_v28, %v4744_v6  ;;  %v4746_v14 = vadd.f32 %v4745_v7, %v4386_v48 }
 0x48b   : > { %v4747_v17 = vpop.f32.mrf.mxu0 }
 0x48c   : > { %v4788_v18 = vpop.f32.mrf.mxu1  ;;  %v4787_v31 = vadd.f32 %v4786_v8, %v4746_v14  ;;  %v4791_v32 = vmax.f32 %v4785_v13, 0.0 }
 0x48d   : > { %v4748_v21 = vpop.f32.mrf.mxu0 }
 0x48e   : > { %v4789_v22 = vpop.f32.mrf.mxu1  ;;  %v4792_v24 = vmax.f32 %v4787_v31, 0.0  ;;  %v4793_v26 = vpack.c.bf16 %v4791_v32, %v4791_v32 }
 0x490   : > { %v4794_v25 = vpack.c.bf16 %v4792_v24, %v4792_v24 }
 0x492   : > { %4962 = vmatprep.mubr.bf16.mxu0 %v4794_v25 }
 0x493   : > { %4963 = vmatmul.mubr.bf16.vlgmr.msra.gmra.mxu0 %v4793_v26 }
 0x553   : > { %v5900_v29 = vpop.f32.mrf.mxu0 }
 0x555   : > { %v5901_v33 = vpop.f32.mrf.mxu0 }
 0x556   : > { %v5902_v34 = vadd.f32 %v5901_v33, %v5900_v29 }
 0x557   : > { %v5903_v35 = vpop.f32.mrf.mxu0 }
 0x558   : > { %v4965_v36 = vadd.f32 %v5902_v34, %v5851_v30 }
 0x559   : > { %v5904_v37 = vpop.f32.mrf.mxu0 }
 0x55a   : > { %v4970_v0 = vmax.f32 %v4965_v36, 0.0 }
 0x55c   : > { %v4971_v1 = vpack.c.bf16 %v4970_v0, %v4970_v0 }
 0x55e   : > { %5932 = vmatmul.mubr.bf16.vlgmr.msra.gmra.mxu1 %v4971_v1 }
 0x61e   : > { %v5077_v15 = vpop.f32.mrf.mxu1 }
 0x61f   : > { %v5078_v38 = vadd.f32 %v5868_v9, %v5077_v15 }
 0x620   : > { %v5933_v60 = vpop.f32.mrf.mxu1 }
 0x621   : > { %5083 = vst [vmem:[#allocation18] sm:$0xff] %v5078_v38 }
 0x622   : > { %v5080_v63 = vpop.f32.mrf.mxu1 }
 0x624   : > { %v5934_v10 = vpop.f32.mrf.mxu1 }
 0x625 PF: > { %p6015_p2 = scmp.eq.s32.totalorder %s7406_s15, 1  ;;  %s7324_s12 = smov [#allocation18]  }
 0x626   : > { %s5093_s16 = sshll.u32 %s7324_s12, 4  ;;  %s5094_s16 = int_to_ptr.vmem [resolvable:$true] %s5093_s16 }
 0x627   : > { %s7207_s29 = scalar_lea.vmem %s5094_s16, 128  ;;  %p7214_p5 = scmp.lt.s32.totalorder %s5094_s16, %s5094_s16 }
 0x628   : > { %p7208_p4 = scmp.ne.s32.totalorder %s5094_s16, %s7207_s29  ;;  %p7215_p3 = scmp.lt.s32.totalorder %s7207_s29, %s7207_s29 }
 0x62a   : > { %p7209_p7 = pnand %p7208_p4, %p6015_p2  ;;  %p7216_p8 = por %p7215_p3, %p7214_p5 }
 0x62c   : > { %p7210_p6 = pneg %p7209_p7 }
 0x62e   : > { %p7217_p9 = pnand %p7216_p8, %p7210_p6 }
 0x630   : > { %7220 = shalt.err (!%p7217_p9)
}
 0x631   : > { %5968 = dma.vmem_to_hbm [thread:$0]  (%p6015_p2), %s5094_s16, 128, %s8220_s9, [#allocation5]  }
 0x632   : > { %7280 = dma.done.wait (%p6015_p2), [#allocation5], 128  }
 0x633   : > { %7282 = vsyncadd (%p6015_p2), [#allocation5], 4294967168 }
 0x634 PF: > { %s29_s14 = sadd.s32 1, %s7305_s14   ;;  %s8249_s30 = smov %s7289_s10 }
 0x635   : > { %p26_p10 = scmp.ge.s32.totalorder %s29_s14, 4   ;;  %s8250_s10 = smov %s7293_s11 }
 0x636   : > { %s8251_s11 = smov %s7503_s27  ;;  %s8252_s12 = smov %s7301_s13 }
 0x637   : > { %s8253_s13 = smov %s8255_s24  ;;  %28 = sbr.rel (!%p26_p10) target bundleno = 16 (0x10), region = 143 }
 0x63c   :  { %5106 = vsyncpa [#allocation4], 1 }
 0x63d   :  { %5108 = vsyncpa [#allocation4 + $0x1], 1 }
 0x63e   :  { %5109 = vsyncpa [#allocation7], 1 }
 0x63f   :  { %5111 = vsyncpa [#allocation7 + $0x1], 1 }
 0x640   :  { %5112 = vsyncpa [#allocation10], 1 }
 0x641   :  { %5113 = vsyncpa [#allocation13], 1 }
 0x642   :  { %5114 = vsyncpa [#allocation16], 1 }
 0x643   :  { %5115 = vsyncpa [#allocation5], 1 }
 0x644   :  { %5117 = vsyncpa [#allocation5 + $0x1], 1 }

</bundles_post_ra>
